<compile_context>
chip_gen: v7x
topology: tpu7x:2x2x1
jax: 0.10.0
libtpu: 0.0.40
codegen_flags: <defaults>
</compile_context>

<pallas_src>
import jax
import jax.numpy as jnp
import numpy as np
from jax import lax
from jax.experimental import pallas as pl
from jax.experimental.pallas import tpu as pltpu

ACTIONS = 2
CPAD = 128          # lane-dense padded channel count for conv outputs


# ----------------------------- Pallas kernels ------------------------------ #

def _matmul_bias_relu_kernel(x_ref, w_ref, b_ref, o_ref):
    """o = relu(x @ w + b) for one (tm, K) x (K, N) tile; bf16 in, f32 acc."""
    acc = jnp.dot(x_ref[...], w_ref[...], preferred_element_type=jnp.float32)
    o_ref[...] = jnp.maximum(acc + b_ref[...], 0.0).astype(o_ref.dtype)


def _pick_tile_m(m):
    # Largest sublane-friendly tile that divides M (keeps a small grid).
    # For this net M is always a multiple of 144 (conv2) or 576 (conv1).
    for t in (576, 512, 384, 256, 144, 128, 64, 16):
        if m % t == 0:
            return t
    return m


def matmul_bias_relu(x, w, b):
    """relu(x @ w + b): x (M,K) bf16, w (K,N) bf16, b (1,N) f32 -> (M,N) bf16."""
    M, K = x.shape
    K2, N = w.shape
    assert K == K2, (K, K2)
    tm = _pick_tile_m(M)
    return pl.pallas_call(
        _matmul_bias_relu_kernel,
        out_shape=jax.ShapeDtypeStruct((M, N), jnp.bfloat16),
        grid=(M // tm,),
        in_specs=[
            pl.BlockSpec((tm, K), lambda i: (i, 0)),   # activation row tile
            pl.BlockSpec((K, N), lambda i: (0, 0)),    # full weight
            pl.BlockSpec((1, N), lambda i: (0, 0)),    # bias row (full dims)
        ],
        out_specs=pl.BlockSpec((tm, N), lambda i: (i, 0)),
        compiler_params=pltpu.CompilerParams(
            dimension_semantics=("parallel",),         # megacore-shardable
        ),
    )(x, w, b)


def _fc_fused_kernel(x_ref, w1_ref, b1_ref, w2_ref, b2_ref, q_ref, acc_ref):
    """K-tiled fc1 (relu) with fused fc2 epilogue on the last K step."""
    k = pl.program_id(0)

    @pl.when(k == 0)
    def _init():
        acc_ref[...] = jnp.zeros_like(acc_ref)

    acc_ref[...] += jnp.dot(x_ref[...], w1_ref[...],
                            preferred_element_type=jnp.float32)

    @pl.when(k == pl.num_programs(0) - 1)
    def _finalize():
        h = jnp.maximum(acc_ref[...] + b1_ref[...], 0.0)          # (B,256) f32
        q = jnp.dot(h.astype(w2_ref.dtype), w2_ref[...],
                    preferred_element_type=jnp.float32) + b2_ref[...]
        q_ref[...] = q.astype(q_ref.dtype)


def fc_fused(x, w1, b1, w2, b2, *, tk=2304):
    """q = (relu(x @ w1 + b1)) @ w2 + b2 in one Pallas call."""
    B, K = x.shape
    K2, H = w1.shape
    H2, N = w2.shape
    assert K == K2 and H == H2 and K % tk == 0
    return pl.pallas_call(
        _fc_fused_kernel,
        out_shape=jax.ShapeDtypeStruct((B, N), jnp.float32),
        grid=(K // tk,),
        in_specs=[
            pl.BlockSpec((B, tk), lambda k: (0, k)),   # activation K chunk
            pl.BlockSpec((tk, H), lambda k: (k, 0)),   # fc1 weight K chunk
            pl.BlockSpec((1, H), lambda k: (0, 0)),    # fc1 bias
            pl.BlockSpec((H, N), lambda k: (0, 0)),    # fc2 weight (tiny)
            pl.BlockSpec((1, N), lambda k: (0, 0)),    # fc2 bias
        ],
        out_specs=pl.BlockSpec((B, N), lambda k: (0, 0)),
        scratch_shapes=[pltpu.VMEM((B, H), jnp.float32)],   # f32 accumulator
        compiler_params=pltpu.CompilerParams(
            dimension_semantics=("arbitrary",),        # reduction axis
        ),
    )(x, w1, b1, w2, b2)


# ------------------------------- glue (JAX) -------------------------------- #

def im2col_nhwc(x, kh, kw, stride, pad):
    """(B,H,W,C) -> (B*Ho*Wo, kh*kw*C); patch K order (kh, kw, C)."""
    B, H, W, C = x.shape
    xp = jnp.pad(x, ((0, 0), (pad, pad), (pad, pad), (0, 0)))
    Ho = (H + 2 * pad - kh) // stride + 1
    Wo = (W + 2 * pad - kw) // stride + 1
    cols = []
    for i in range(kh):
        for j in range(kw):
            cols.append(xp[:, i:i + stride * (Ho - 1) + 1:stride,
                            j:j + stride * (Wo - 1) + 1:stride, :])
    patches = jnp.concatenate(cols, axis=-1)           # (B, Ho, Wo, kh*kw*C)
    return patches.reshape(B * Ho * Wo, kh * kw * C), Ho, Wo


def conv2d_relu_nhwc(x, w_mat, b_row, *, kh, kw, stride, pad):
    """NHWC conv+ReLU via im2col + Pallas matmul; output channels are CPAD."""
    B = x.shape[0]
    x_col, Ho, Wo = im2col_nhwc(x, kh, kw, stride, pad)
    y = matmul_bias_relu(x_col, w_mat, b_row)          # (B*Ho*Wo, CPAD) bf16
    return y.reshape(B, Ho, Wo, w_mat.shape[1]), Ho, Wo


def brain_dqn_forward(prep, o):
    """Q(o): NCHW f32 (B, 4, 128, 72) -> (B, 2) f32."""
    B = o.shape[0]
    x = o.astype(jnp.bfloat16).transpose(0, 2, 3, 1)   # one-time NHWC layout

    y1, _, _ = conv2d_relu_nhwc(x, prep['w1'], prep['b1'],
                                kh=8, kw=8, stride=4, pad=2)     # (B,32,18,128)
    y2, H2, W2 = conv2d_relu_nhwc(y1, prep['w2'], prep['b2'],
                                  kh=4, kw=4, stride=2, pad=1)   # (B,16, 9,128)
    flat = y2[..., :64].reshape(B, H2 * W2 * 64)                 # (B, 9216)
    return fc_fused(flat, prep['wf1'], prep['bf1'], prep['wf2'], prep['bf2'])


# --------------------------- parameter preparation -------------------------- #

def prepare_params(params):
    """One-time conversion of PyTorch-layout f32 params to kernel layout.

    * conv weights OIHW -> (kh*kw*Cin, Cout) matching the NHWC im2col K order,
      with Cout zero-padded to 128 (lane-dense) and conv2's Cin rows >= 32 zero.
    * fc1 weight columns permuted from (C,H,W) flatten order to (H,W,C).
    * matmul operands cast to bf16; biases stay f32.
    """
    w1, w2 = params['w1'], params['w2']        # (32,4,8,8), (64,32,4,4)
    wf1, wf2 = params['wf1'], params['wf2']    # (256,9216), (2,256)

    w1m = w1.transpose(2, 3, 1, 0).reshape(8 * 8 * 4, 32)         # (kh,kw,c,o)
    w1m = jnp.pad(w1m, ((0, 0), (0, CPAD - 32)))
    b1m = jnp.pad(params['b1'], (0, CPAD - 32)).reshape(1, CPAD)

    w2t = w2.transpose(2, 3, 1, 0)                                 # (4,4,32,64)
    w2t = jnp.pad(w2t, ((0, 0), (0, 0), (0, CPAD - 32), (0, CPAD - 64)))
    w2m = w2t.reshape(4 * 4 * CPAD, CPAD)
    b2m = jnp.pad(params['b2'], (0, CPAD - 64)).reshape(1, CPAD)

    wf1m = wf1.reshape(256, 64, 16, 9).transpose(2, 3, 1, 0).reshape(9216, 256)

    return {
        'w1': w1m.astype(jnp.bfloat16), 'b1': b1m.astype(jnp.float32),
        'w2': w2m.astype(jnp.bfloat16), 'b2': b2m.astype(jnp.float32),
        'wf1': wf1m.astype(jnp.bfloat16),
        'bf1': params['bf1'].reshape(1, 256).astype(jnp.float32),
        'wf2': wf2.T.astype(jnp.bfloat16),
        'bf2': params['bf2'].reshape(1, ACTIONS).astype(jnp.float32),
    }


# --------------------------- params / reference ---------------------------- #

def _uniform(key, shape, bound):
    return jax.random.uniform(key, shape, jnp.float32, -bound, bound)


def init_params(key):
    ks = jax.random.split(key, 8)
    f1 = 4 * 8 * 8
    f2 = 32 * 4 * 4
    f3 = 64 * 16 * 9     # = 9216, matches self.map_size
    f4 = 256
    return {
        'w1': _uniform(ks[0], (32, 4, 8, 8), f1 ** -0.5),
        'b1': _uniform(ks[1], (32,), f1 ** -0.5),
        'w2': _uniform(ks[2], (64, 32, 4, 4), f2 ** -0.5),
        'b2': _uniform(ks[3], (64,), f2 ** -0.5),
        'wf1': _uniform(ks[4], (256, f3), f3 ** -0.5),
        'bf1': _uniform(ks[5], (256,), f3 ** -0.5),
        'wf2': _uniform(ks[6], (ACTIONS, 256), f4 ** -0.5),
        'bf2': _uniform(ks[7], (ACTIONS,), f4 ** -0.5),
    }


def _q16(x):
    """Round to bf16 and back (mirrors the kernel's bf16 MXU operands)."""
    return x.astype(jnp.bfloat16).astype(jnp.float32)


def reference_forward(params, o):
    """Pure-JAX reference: PyTorch semantics with the same bf16 operand
    rounding / f32 accumulation the Pallas path uses."""
    dn = ('NCHW', 'OIHW', 'NCHW')
    hi = lax.Precision.HIGHEST
    y = lax.conv_general_dilated(_q16(o), _q16(params['w1']), (4, 4),
                                 [(2, 2), (2, 2)], dimension_numbers=dn,
                                 precision=hi)
    y = jax.nn.relu(y + params['b1'][None, :, None, None])
    y = lax.conv_general_dilated(_q16(y), _q16(params['w2']), (2, 2),
                                 [(1, 1), (1, 1)], dimension_numbers=dn,
                                 precision=hi)
    y = jax.nn.relu(y + params['b2'][None, :, None, None])
    flat = y.reshape(y.shape[0], -1)
    h = jax.nn.relu(jnp.dot(_q16(flat), _q16(params['wf1']).T, precision=hi)
                    + params['bf1'])
    return jnp.dot(_q16(h), _q16(params['wf2']).T, precision=hi) + params['bf2']


if __name__ == "__main__":
    key = jax.random.PRNGKey(0)
    pkey, xkey = jax.random.split(key)
    params = init_params(pkey)
    prep = prepare_params(params)

    # Observation: batch of 2 stacked 4-frame 128x72 states (NCHW, float32).
    o = jax.random.uniform(xkey, (2, 4, 128, 72), dtype=jnp.float32)

    fwd = jax.jit(brain_dqn_forward)
    q = jax.block_until_ready(fwd(prep, o))

    q_ref = reference_forward(params, o)
    np.testing.assert_allclose(np.asarray(q), np.asarray(q_ref),
                               rtol=2e-3, atol=2e-3)
    print("KERNEL_OK")
</pallas_src>

<mosaic_0001>
module attributes {stable_mosaic.version = 11 : i64} {
  func.func @_matmul_bias_relu_kernel(%arg0: i32, %arg1: memref<576x256xbf16, #tpu.memory_space<vmem>>, %arg2: memref<256x128xbf16, #tpu.memory_space<vmem>>, %arg3: memref<1x128xf32, #tpu.memory_space<vmem>>, %arg4: memref<576x128xbf16, #tpu.memory_space<vmem>>) attributes {dimension_semantics = [#tpu.dimension_semantics<parallel>], iteration_bounds = array<i64: 2>, scalar_prefetch = 0 : i64, scratch_operands = 0 : i64, tpu.core_type = #tpu.core_type<tc>, window_params = [{transform_indices = @transform_0, window_bounds = array<i64: 576, 256>}, {pipeline_mode = #tpu.pipeline_mode<synchronous>, transform_indices = @transform_1, window_bounds = array<i64: 256, 128>}, {pipeline_mode = #tpu.pipeline_mode<synchronous>, transform_indices = @transform_2, window_bounds = array<i64: 1, 128>}, {transform_indices = @transform_3, window_bounds = array<i64: 576, 128>}]} {
    %c0 = arith.constant 0 : index
    %c0_0 = arith.constant 0 : index
    %0 = vector.load %arg1[%c0, %c0_0] : memref<576x256xbf16, #tpu.memory_space<vmem>>, vector<576x256xbf16>
    %c0_1 = arith.constant 0 : index
    %c0_2 = arith.constant 0 : index
    %1 = vector.load %arg2[%c0_1, %c0_2] : memref<256x128xbf16, #tpu.memory_space<vmem>>, vector<256x128xbf16>
    %cst = arith.constant dense<0.000000e+00> : vector<576x128xf32>
    %2 = tpu.matmul %0, %1, %cst {dimension_numbers = #tpu.dot_dimension_numbers<[1], [0], [0], [1], [0, 0, 1, 1], [], []>} : vector<576x256xbf16>, vector<256x128xbf16>, vector<576x128xf32> -> vector<576x128xf32>
    %c0_3 = arith.constant 0 : index
    %c0_4 = arith.constant 0 : index
    %3 = vector.load %arg3[%c0_3, %c0_4] : memref<1x128xf32, #tpu.memory_space<vmem>>, vector<1x128xf32>
    %4 = vector.broadcast %3 : vector<1x128xf32> to vector<576x128xf32>
    %5 = arith.addf %2, %4 : vector<576x128xf32>
    %cst_5 = arith.constant 0.000000e+00 : f32
    %6 = vector.broadcast %cst_5 : f32 to vector<576x128xf32>
    %7 = arith.maximumf %5, %6 : vector<576x128xf32>
    %8 = arith.truncf %7 : vector<576x128xf32> to vector<576x128xbf16>
    %c0_6 = arith.constant 0 : index
    %c0_7 = arith.constant 0 : index
    %9 = vector.load %arg4[%c0_6, %c0_7] : memref<576x128xbf16, #tpu.memory_space<vmem>>, vector<576x128xbf16>
    tpu.vector_store %arg4[%c0_6, %c0_7], %8 {strides = array<i32>} : memref<576x128xbf16, #tpu.memory_space<vmem>>, vector<576x128xbf16>,
    return
  }
  func.func @transform_0(%arg0: i32) -> (i32, i32) {
    %c0_i32 = arith.constant 0 : i32
    %c0_i32_0 = arith.constant 0 : i32
    return %arg0, %c0_i32 : i32, i32
  }
  func.func @transform_1(%arg0: i32) -> (i32, i32) {
    %c0_i32 = arith.constant 0 : i32
    %c0_i32_0 = arith.constant 0 : i32
    %c0_i32_1 = arith.constant 0 : i32
    return %c0_i32, %c0_i32_0 : i32, i32
  }
  func.func @transform_2(%arg0: i32) -> (i32, i32) {
    %c0_i32 = arith.constant 0 : i32
    %c0_i32_0 = arith.constant 0 : i32
    %c0_i32_1 = arith.constant 0 : i32
    return %c0_i32, %c0_i32_0 : i32, i32
  }
  func.func @transform_3(%arg0: i32) -> (i32, i32) {
    %c0_i32 = arith.constant 0 : i32
    %c0_i32_0 = arith.constant 0 : i32
    return %arg0, %c0_i32 : i32, i32
  }
}

module attributes {stable_mosaic.version = 11 : i64} {
  func.func @_matmul_bias_relu_kernel(%arg0: i32, %arg1: memref<144x2048xbf16, #tpu.memory_space<vmem>>, %arg2: memref<2048x128xbf16, #tpu.memory_space<vmem>>, %arg3: memref<1x128xf32, #tpu.memory_space<vmem>>, %arg4: memref<144x128xbf16, #tpu.memory_space<vmem>>) attributes {dimension_semantics = [#tpu.dimension_semantics<parallel>], iteration_bounds = array<i64: 2>, scalar_prefetch = 0 : i64, scratch_operands = 0 : i64, tpu.core_type = #tpu.core_type<tc>, window_params = [{transform_indices = @transform_0, window_bounds = array<i64: 144, 2048>}, {pipeline_mode = #tpu.pipeline_mode<synchronous>, transform_indices = @transform_1, window_bounds = array<i64: 2048, 128>}, {pipeline_mode = #tpu.pipeline_mode<synchronous>, transform_indices = @transform_2, window_bounds = array<i64: 1, 128>}, {transform_indices = @transform_3, window_bounds = array<i64: 144, 128>}]} {
    %c0 = arith.constant 0 : index
    %c0_0 = arith.constant 0 : index
    %0 = vector.load %arg1[%c0, %c0_0] : memref<144x2048xbf16, #tpu.memory_space<vmem>>, vector<144x2048xbf16>
    %c0_1 = arith.constant 0 : index
    %c0_2 = arith.constant 0 : index
    %1 = vector.load %arg2[%c0_1, %c0_2] : memref<2048x128xbf16, #tpu.memory_space<vmem>>, vector<2048x128xbf16>
    %cst = arith.constant dense<0.000000e+00> : vector<144x128xf32>
    %2 = tpu.matmul %0, %1, %cst {dimension_numbers = #tpu.dot_dimension_numbers<[1], [0], [0], [1], [0, 0, 1, 1], [], []>} : vector<144x2048xbf16>, vector<2048x128xbf16>, vector<144x128xf32> -> vector<144x128xf32>
    %c0_3 = arith.constant 0 : index
    %c0_4 = arith.constant 0 : index
    %3 = vector.load %arg3[%c0_3, %c0_4] : memref<1x128xf32, #tpu.memory_space<vmem>>, vector<1x128xf32>
    %4 = vector.broadcast %3 : vector<1x128xf32> to vector<144x128xf32>
    %5 = arith.addf %2, %4 : vector<144x128xf32>
    %cst_5 = arith.constant 0.000000e+00 : f32
    %6 = vector.broadcast %cst_5 : f32 to vector<144x128xf32>
    %7 = arith.maximumf %5, %6 : vector<144x128xf32>
    %8 = arith.truncf %7 : vector<144x128xf32> to vector<144x128xbf16>
    %c0_6 = arith.constant 0 : index
    %c0_7 = arith.constant 0 : index
    %9 = vector.load %arg4[%c0_6, %c0_7] : memref<144x128xbf16, #tpu.memory_space<vmem>>, vector<144x128xbf16>
    tpu.vector_store %arg4[%c0_6, %c0_7], %8 {strides = array<i32>} : memref<144x128xbf16, #tpu.memory_space<vmem>>, vector<144x128xbf16>,
    return
  }
  func.func @transform_0(%arg0: i32) -> (i32, i32) {
    %c0_i32 = arith.constant 0 : i32
    %c0_i32_0 = arith.constant 0 : i32
    return %arg0, %c0_i32 : i32, i32
  }
  func.func @transform_1(%arg0: i32) -> (i32, i32) {
    %c0_i32 = arith.constant 0 : i32
    %c0_i32_0 = arith.constant 0 : i32
    %c0_i32_1 = arith.constant 0 : i32
    return %c0_i32, %c0_i32_0 : i32, i32
  }
  func.func @transform_2(%arg0: i32) -> (i32, i32) {
    %c0_i32 = arith.constant 0 : i32
    %c0_i32_0 = arith.constant 0 : i32
    %c0_i32_1 = arith.constant 0 : i32
    return %c0_i32, %c0_i32_0 : i32, i32
  }
  func.func @transform_3(%arg0: i32) -> (i32, i32) {
    %c0_i32 = arith.constant 0 : i32
    %c0_i32_0 = arith.constant 0 : i32
    return %arg0, %c0_i32 : i32, i32
  }
}

module attributes {stable_mosaic.version = 11 : i64} {
  func.func @_fc_fused_kernel(%arg0: i32, %arg1: memref<2x2304xbf16, #tpu.memory_space<vmem>>, %arg2: memref<2304x256xbf16, #tpu.memory_space<vmem>>, %arg3: memref<1x256xf32, #tpu.memory_space<vmem>>, %arg4: memref<256x2xbf16, #tpu.memory_space<vmem>>, %arg5: memref<1x2xf32, #tpu.memory_space<vmem>>, %arg6: memref<2x2xf32, #tpu.memory_space<vmem>>, %arg7: memref<2x256xf32, #tpu.memory_space<vmem>>) attributes {dimension_semantics = [#tpu.dimension_semantics<arbitrary>], iteration_bounds = array<i64: 4>, scalar_prefetch = 0 : i64, scratch_operands = 1 : i64, tpu.core_type = #tpu.core_type<tc>, window_params = [{transform_indices = @transform_0, window_bounds = array<i64: 2, 2304>}, {transform_indices = @transform_1, window_bounds = array<i64: 2304, 256>}, {pipeline_mode = #tpu.pipeline_mode<synchronous>, transform_indices = @transform_2, window_bounds = array<i64: 1, 256>}, {pipeline_mode = #tpu.pipeline_mode<synchronous>, transform_indices = @transform_3, window_bounds = array<i64: 256, 2>}, {pipeline_mode = #tpu.pipeline_mode<synchronous>, transform_indices = @transform_4, window_bounds = array<i64: 1, 2>}, {pipeline_mode = #tpu.pipeline_mode<synchronous>, transform_indices = @transform_5, window_bounds = array<i64: 2, 2>}]} {
    %c0_i32 = arith.constant 0 : i32
    %0 = arith.cmpi eq, %arg0, %c0_i32 : i32
    %1 = arith.extui %0 : i1 to i32
    %c0_i32_0 = arith.constant 0 : i32
    %2 = arith.cmpi ne, %1, %c0_i32_0 : i32
    scf.if %2 {
      %cst_9 = arith.constant 0.000000e+00 : f32
      %12 = vector.broadcast %cst_9 : f32 to vector<2x256xf32>
      %c0_10 = arith.constant 0 : index
      %c0_11 = arith.constant 0 : index
      %13 = vector.load %arg7[%c0_10, %c0_11] : memref<2x256xf32, #tpu.memory_space<vmem>>, vector<2x256xf32>
      tpu.vector_store %arg7[%c0_10, %c0_11], %12 {strides = array<i32>} : memref<2x256xf32, #tpu.memory_space<vmem>>, vector<2x256xf32>,
    } else {
    }
    %c0 = arith.constant 0 : index
    %c0_1 = arith.constant 0 : index
    %3 = vector.load %arg7[%c0, %c0_1] : memref<2x256xf32, #tpu.memory_space<vmem>>, vector<2x256xf32>
    %c0_2 = arith.constant 0 : index
    %c0_3 = arith.constant 0 : index
    %4 = vector.load %arg1[%c0_2, %c0_3] : memref<2x2304xbf16, #tpu.memory_space<vmem>>, vector<2x2304xbf16>
    %c0_4 = arith.constant 0 : index
    %c0_5 = arith.constant 0 : index
    %5 = vector.load %arg2[%c0_4, %c0_5] : memref<2304x256xbf16, #tpu.memory_space<vmem>>, vector<2304x256xbf16>
    %cst = arith.constant dense<0.000000e+00> : vector<2x256xf32>
    %6 = tpu.matmul %4, %5, %cst {dimension_numbers = #tpu.dot_dimension_numbers<[1], [0], [0], [1], [0, 0, 1, 1], [], []>} : vector<2x2304xbf16>, vector<2304x256xbf16>, vector<2x256xf32> -> vector<2x256xf32>
    %7 = arith.addf %3, %6 : vector<2x256xf32>
    %c0_6 = arith.constant 0 : index
    %c0_7 = arith.constant 0 : index
    %8 = vector.load %arg7[%c0_6, %c0_7] : memref<2x256xf32, #tpu.memory_space<vmem>>, vector<2x256xf32>
    tpu.vector_store %arg7[%c0_6, %c0_7], %7 {strides = array<i32>} : memref<2x256xf32, #tpu.memory_space<vmem>>, vector<2x256xf32>,
    %c3_i32 = arith.constant 3 : i32
    %9 = arith.cmpi eq, %arg0, %c3_i32 : i32
    %10 = arith.extui %9 : i1 to i32
    %c0_i32_8 = arith.constant 0 : i32
    %11 = arith.cmpi ne, %10, %c0_i32_8 : i32
    scf.if %11 {
      %c0_9 = arith.constant 0 : index
      %c0_10 = arith.constant 0 : index
      %12 = vector.load %arg7[%c0_9, %c0_10] : memref<2x256xf32, #tpu.memory_space<vmem>>, vector<2x256xf32>
      %c0_11 = arith.constant 0 : index
      %c0_12 = arith.constant 0 : index
      %13 = vector.load %arg3[%c0_11, %c0_12] : memref<1x256xf32, #tpu.memory_space<vmem>>, vector<1x256xf32>
      %14 = vector.broadcast %13 : vector<1x256xf32> to vector<2x256xf32>
      %15 = arith.addf %12, %14 : vector<2x256xf32>
      %cst_13 = arith.constant 0.000000e+00 : f32
      %16 = vector.broadcast %cst_13 : f32 to vector<2x256xf32>
      %17 = arith.maximumf %15, %16 : vector<2x256xf32>
      %18 = arith.truncf %17 : vector<2x256xf32> to vector<2x256xbf16>
      %c0_14 = arith.constant 0 : index
      %c0_15 = arith.constant 0 : index
      %19 = vector.load %arg4[%c0_14, %c0_15] : memref<256x2xbf16, #tpu.memory_space<vmem>>, vector<256x2xbf16>
      %cst_16 = arith.constant dense<0.000000e+00> : vector<2x2xf32>
      %20 = tpu.matmul %18, %19, %cst_16 {dimension_numbers = #tpu.dot_dimension_numbers<[1], [0], [0], [1], [0, 0, 1, 1], [], []>} : vector<2x256xbf16>, vector<256x2xbf16>, vector<2x2xf32> -> vector<2x2xf32>
      %c0_17 = arith.constant 0 : index
      %c0_18 = arith.constant 0 : index
      %21 = vector.load %arg5[%c0_17, %c0_18] : memref<1x2xf32, #tpu.memory_space<vmem>>, vector<1x2xf32>
      %22 = vector.broadcast %21 : vector<1x2xf32> to vector<2x2xf32>
      %23 = arith.addf %20, %22 : vector<2x2xf32>
      %c0_19 = arith.constant 0 : index
      %c0_20 = arith.constant 0 : index
      %24 = vector.load %arg6[%c0_19, %c0_20] : memref<2x2xf32, #tpu.memory_space<vmem>>, vector<2x2xf32>
      tpu.vector_store %arg6[%c0_19, %c0_20], %23 {strides = array<i32>} : memref<2x2xf32, #tpu.memory_space<vmem>>, vector<2x2xf32>,
    } else {
    }
    return
  }
  func.func @transform_0(%arg0: i32) -> (i32, i32) {
    %c0_i32 = arith.constant 0 : i32
    %c0_i32_0 = arith.constant 0 : i32
    return %c0_i32, %arg0 : i32, i32
  }
  func.func @transform_1(%arg0: i32) -> (i32, i32) {
    %c0_i32 = arith.constant 0 : i32
    %c0_i32_0 = arith.constant 0 : i32
    return %arg0, %c0_i32 : i32, i32
  }
  func.func @transform_2(%arg0: i32) -> (i32, i32) {
    %c0_i32 = arith.constant 0 : i32
    %c0_i32_0 = arith.constant 0 : i32
    %c0_i32_1 = arith.constant 0 : i32
    return %c0_i32, %c0_i32_0 : i32, i32
  }
  func.func @transform_3(%arg0: i32) -> (i32, i32) {
    %c0_i32 = arith.constant 0 : i32
    %c0_i32_0 = arith.constant 0 : i32
    %c0_i32_1 = arith.constant 0 : i32
    return %c0_i32, %c0_i32_0 : i32, i32
  }
  func.func @transform_4(%arg0: i32) -> (i32, i32) {
    %c0_i32 = arith.constant 0 : i32
    %c0_i32_0 = arith.constant 0 : i32
    %c0_i32_1 = arith.constant 0 : i32
    return %c0_i32, %c0_i32_0 : i32, i32
  }
  func.func @transform_5(%arg0: i32) -> (i32, i32) {
    %c0_i32 = arith.constant 0 : i32
    %c0_i32_0 = arith.constant 0 : i32
    %c0_i32_1 = arith.constant 0 : i32
    return %c0_i32, %c0_i32_0 : i32, i32
  }
}

</mosaic_0001>

<bundles_post_ra>
// kernel: brain_dqn_forward.3
= control target key start
LH: loop header
LB: loop body
LE: loop exit
PB: predicated region body
PF: predicated region fallthrough
CT: control target
= control target key end

     0   :  { %s2207_s12 = smov 0   ;;  %s2497_s0 = inlined_call_operand.vmem [shape: bf16[1152,256], index: 0, kind: input, shape index: {}]   ;;  %s2498_s1 = inlined_call_operand.vmem [shape: bf16[256,128], index: 1, kind: input, shape index: {}]   ;;  %s2499_s2 = inlined_call_operand.vmem [shape: f32[1,128], index: 2, kind: input, shape index: {}]   ;;  %s2500_s3 = inlined_call_operand.vmem [shape: bf16[1152,128], index: 3, kind: output, shape index: {}]  }
   0x1 LB: > { %s1554_s13 = sadd.s32 4294967295, %s2184_s12   ;;  %p1558_p0 = scmp.ge.s32.totalorder %s2184_s12, 1  ;;  %s2184_s12 = sphi %s2207_s12, %s13_s12  }
   0x2   : > { %p139_p1 = scmp.lt.s32.totalorder %s2184_s12, 3 }
   0x4   : > { %p140_p2 = pnand %p1558_p0, %p139_p1 }
   0x5   : > { %v2054_v0 = vld [vmem:[%s2498_s1] sm:$0xff] (!%p140_p2)   ;;  %v2186_v1 = vmov (!%p140_p2), 0   ;;  %s164_s16 = smul.u32 (!%p140_p2), 72, %s1554_s13  ;;  %v2055_v2 = vld [vmem:[%s2498_s1 + $0x8] sm:$0xff] (!%p140_p2)   ;;  %v2056_v3 = vld [vmem:[%s2498_s1 + $0x10] sm:$0xff] (!%p140_p2)  }
   0x6   : > { %143 = sbr.rel (%p140_p2) target bundleno = 427 (0x1ab), region = 32  ;;  %745 = vmatprep.subr.bf16.mxu0 (!%p140_p2), %v2186_v1  ;;  %2013 = vmatprep.subr.bf16.mxu1 (!%p140_p2), %v2186_v1  ;;  %v2057_v4 = vld [vmem:[%s2498_s1 + $0x18] sm:$0xff] (!%p140_p2)   ;;  %v2058_v5 = vld [vmem:[%s2498_s1 + $0x20] sm:$0xff] (!%p140_p2)   ;;  %v2059_v7 = vld [vmem:[%s2498_s1 + $0x28] sm:$0xff] (!%p140_p2)  }
   0x7   : > { %746 = vmatpush1.bf16.msra.mxu0 (!%p140_p2), %v2054_v0  ;;  %2029 = vmatpush1.bf16.msra.mxu1 (!%p140_p2), %v2054_v0  ;;  %p165_p3 = scmp.lt.s32.totalorder (!%p140_p2), %s164_s16, 143  ;;  %v2060_v9 = vld [vmem:[%s2498_s1 + $0x30] sm:$0xff] (!%p140_p2)   ;;  %v2061_v10 = vld [vmem:[%s2498_s1 + $0x38] sm:$0xff] (!%p140_p2)   ;;  %v2062_v11 = vld [vmem:[%s2498_s1 + $0x40] sm:$0xff] (!%p140_p2)  }
   0x8   : > { %747 = vmatprep.subr.bf16.mxu0 (!%p140_p2), %v2186_v1  ;;  %2014 = vmatprep.subr.bf16.mxu1 (!%p140_p2), %v2186_v1  ;;  %v2063_v12 = vld [vmem:[%s2498_s1 + $0x48] sm:$0xff] (!%p140_p2)   ;;  %v2064_v13 = vld [vmem:[%s2498_s1 + $0x50] sm:$0xff] (!%p140_p2)   ;;  %v2065_v14 = vld [vmem:[%s2498_s1 + $0x58] sm:$0xff] (!%p140_p2)  }
   0x9   : > { %v2066_v15 = vld [vmem:[%s2498_s1 + $0x60] sm:$0xff] (!%p140_p2)   ;;  %v2067_v16 = vld [vmem:[%s2498_s1 + $0x68] sm:$0xff] (!%p140_p2)   ;;  %v2068_v17 = vld [vmem:[%s2498_s1 + $0x70] sm:$0xff] (!%p140_p2)  }
   0xa   : > { %v2069_v18 = vld [vmem:[%s2498_s1 + $0x78] sm:$0xff] (!%p140_p2)  }
   0xb   : > { %748 = vmatpush1.bf16.msra.mxu0 (!%p140_p2), %v2055_v2  ;;  %2030 = vmatpush1.bf16.msra.mxu1 (!%p140_p2), %v2055_v2 }
   0xc   : > { %749 = vmatprep.subr.bf16.mxu0 (!%p140_p2), %v2186_v1  ;;  %2015 = vmatprep.subr.bf16.mxu1 (!%p140_p2), %v2186_v1 }
   0xd   : > { %s2502_s16 = smov (!%p165_p3, %s164_s16), 143 }
   0xe   : > { %s1725_s23 = sshll.u32 %s2502_s16, 3  ;;  %s1561_s29 = sshll.u32 %s2502_s16, 2 }
   0xf   : > { %750 = vmatpush1.bf16.msra.mxu0 %v2056_v3  ;;  %2031 = vmatpush1.bf16.msra.mxu1 %v2056_v3  ;;  %s2244_s28 = scalar_lea.vmem %s2497_s0, %s1725_s23  ;;  %s2388_s4 = scalar_lea.vmem %s2500_s3, %s1561_s29 }
  0x10   : > { %751 = vmatprep.subr.bf16.mxu0 %v2186_v1  ;;  %2016 = vmatprep.subr.bf16.mxu1 %v2186_v1  ;;  %v2072_v6 = vld [vmem:[%s2244_s28 + $0x4] ss:$8 sps:$4 sm:$0xff]   ;;  %v2070_v19 = vld [vmem:[%s2244_s28] ss:$8 sps:$4 sm:$0xff]   ;;  %v2076_v21 = vld [vmem:[%s2244_s28 + $0x14] ss:$8 sps:$4 sm:$0xff]  }
  0x11   : > { %v2075_v8 = vld [vmem:[%s2244_s28 + $0x124] ss:$8 sps:$4 sm:$0xff]   ;;  %777 = vmatprep.mubr.bf16.mxu0 %v2072_v6  ;;  %v2073_v20 = vld [vmem:[%s2244_s28 + $0x120] ss:$8 sps:$4 sm:$0xff]   ;;  %v2078_v22 = vld [vmem:[%s2244_s28 + $0x134] ss:$8 sps:$4 sm:$0xff]  }
  0x12   : > { %921 = vmatprep.mubr.bf16.mxu1 %v2075_v8  ;;  %v2080_v23 = vld [vmem:[%s2244_s28 + $0x10] ss:$8 sps:$4 sm:$0xff]   ;;  %v2082_v25 = vld [vmem:[%s2244_s28 + $0x24] ss:$8 sps:$4 sm:$0xff]   ;;  %v2086_v27 = vld [vmem:[%s2244_s28 + $0x20] ss:$8 sps:$4 sm:$0xff]  }
  0x13   : > { %752 = vmatpush1.bf16.msra.mxu0 %v2057_v4  ;;  %2032 = vmatpush1.bf16.msra.mxu1 %v2057_v4  ;;  %v2081_v24 = vld [vmem:[%s2244_s28 + $0x130] ss:$8 sps:$4 sm:$0xff]   ;;  %v2084_v26 = vld [vmem:[%s2244_s28 + $0x144] ss:$8 sps:$4 sm:$0xff]   ;;  %v2087_v28 = vld [vmem:[%s2244_s28 + $0x140] ss:$8 sps:$4 sm:$0xff]  }
  0x14   : > { %753 = vmatprep.subr.bf16.mxu0 %v2186_v1  ;;  %2017 = vmatprep.subr.bf16.mxu1 %v2186_v1  ;;  %v2088_v29 = vld [vmem:[%s2244_s28 + $0x34] ss:$8 sps:$4 sm:$0xff]   ;;  %v2092_v31 = vld [vmem:[%s2244_s28 + $0x30] ss:$8 sps:$4 sm:$0xff]   ;;  %v2094_v33 = vld [vmem:[%s2244_s28 + $0x44] ss:$8 sps:$4 sm:$0xff]  }
  0x15   : > { %v2090_v30 = vld [vmem:[%s2244_s28 + $0x154] ss:$8 sps:$4 sm:$0xff]   ;;  %v2093_v32 = vld [vmem:[%s2244_s28 + $0x150] ss:$8 sps:$4 sm:$0xff]   ;;  %v2096_v34 = vld [vmem:[%s2244_s28 + $0x164] ss:$8 sps:$4 sm:$0xff]  }
  0x16   : > { %v2098_v35 = vld [vmem:[%s2244_s28 + $0x40] ss:$8 sps:$4 sm:$0xff]   ;;  %v2100_v37 = vld [vmem:[%s2244_s28 + $0x54] ss:$8 sps:$4 sm:$0xff]   ;;  %v2104_v39 = vld [vmem:[%s2244_s28 + $0x50] ss:$8 sps:$4 sm:$0xff]  }
  0x17   : > { %754 = vmatpush1.bf16.msra.mxu0 %v2058_v5  ;;  %2033 = vmatpush1.bf16.msra.mxu1 %v2058_v5  ;;  %v2099_v36 = vld [vmem:[%s2244_s28 + $0x160] ss:$8 sps:$4 sm:$0xff]   ;;  %v2102_v38 = vld [vmem:[%s2244_s28 + $0x174] ss:$8 sps:$4 sm:$0xff]   ;;  %v2105_v40 = vld [vmem:[%s2244_s28 + $0x170] ss:$8 sps:$4 sm:$0xff]  }
  0x18   : > { %755 = vmatprep.subr.bf16.mxu0 %v2186_v1  ;;  %2018 = vmatprep.subr.bf16.mxu1 %v2186_v1  ;;  %v2106_v41 = vld [vmem:[%s2244_s28 + $0x64] ss:$8 sps:$4 sm:$0xff]   ;;  %v2110_v43 = vld [vmem:[%s2244_s28 + $0x60] ss:$8 sps:$4 sm:$0xff]   ;;  %v2112_v45 = vld [vmem:[%s2244_s28 + $0x74] ss:$8 sps:$4 sm:$0xff]  }
  0x19   : > { %v2108_v42 = vld [vmem:[%s2244_s28 + $0x184] ss:$8 sps:$4 sm:$0xff]   ;;  %v2111_v44 = vld [vmem:[%s2244_s28 + $0x180] ss:$8 sps:$4 sm:$0xff]   ;;  %v2114_v46 = vld [vmem:[%s2244_s28 + $0x194] ss:$8 sps:$4 sm:$0xff]  }
  0x1a   : > { %v2116_v47 = vld [vmem:[%s2244_s28 + $0x70] ss:$8 sps:$4 sm:$0xff]   ;;  %v2118_v49 = vld [vmem:[%s2244_s28 + $0x84] ss:$8 sps:$4 sm:$0xff]   ;;  %v2122_v51 = vld [vmem:[%s2244_s28 + $0x80] ss:$8 sps:$4 sm:$0xff]  }
  0x1b   : > { %756 = vmatpush1.bf16.msra.mxu0 %v2059_v7  ;;  %2034 = vmatpush1.bf16.msra.mxu1 %v2059_v7  ;;  %v2117_v48 = vld [vmem:[%s2244_s28 + $0x190] ss:$8 sps:$4 sm:$0xff]   ;;  %v2120_v50 = vld [vmem:[%s2244_s28 + $0x1a4] ss:$8 sps:$4 sm:$0xff]   ;;  %v2123_v52 = vld [vmem:[%s2244_s28 + $0x1a0] ss:$8 sps:$4 sm:$0xff]  }
  0x1c   : > { %757 = vmatprep.subr.bf16.mxu0 %v2186_v1  ;;  %2019 = vmatprep.subr.bf16.mxu1 %v2186_v1  ;;  %v2124_v53 = vld [vmem:[%s2244_s28 + $0x94] ss:$8 sps:$4 sm:$0xff]   ;;  %v2128_v55 = vld [vmem:[%s2244_s28 + $0x90] ss:$8 sps:$4 sm:$0xff]   ;;  %v2130_v57 = vld [vmem:[%s2244_s28 + $0xa4] ss:$8 sps:$4 sm:$0xff]  }
  0x1d   : > { %v2126_v54 = vld [vmem:[%s2244_s28 + $0x1b4] ss:$8 sps:$4 sm:$0xff]   ;;  %v2129_v56 = vld [vmem:[%s2244_s28 + $0x1b0] ss:$8 sps:$4 sm:$0xff]   ;;  %v2132_v58 = vld [vmem:[%s2244_s28 + $0x1c4] ss:$8 sps:$4 sm:$0xff]  }
  0x1e   : > { %v2134_v59 = vld [vmem:[%s2244_s28 + $0xa0] ss:$8 sps:$4 sm:$0xff]   ;;  %v2136_v61 = vld [vmem:[%s2244_s28 + $0xb4] ss:$8 sps:$4 sm:$0xff]   ;;  %v2140_v63 = vld [vmem:[%s2244_s28 + $0xb0] ss:$8 sps:$4 sm:$0xff]  }
  0x1f   : > { %758 = vmatpush1.bf16.msra.mxu0 %v2060_v9  ;;  %2035 = vmatpush1.bf16.msra.mxu1 %v2060_v9  ;;  %v2135_v60 = vld [vmem:[%s2244_s28 + $0x1c0] ss:$8 sps:$4 sm:$0xff]   ;;  %v2138_v62 = vld [vmem:[%s2244_s28 + $0x1d4] ss:$8 sps:$4 sm:$0xff]   ;;  %v2141_v0 = vld [vmem:[%s2244_s28 + $0x1d0] ss:$8 sps:$4 sm:$0xff]  }
  0x20   : > { %759 = vmatprep.subr.bf16.mxu0 %v2186_v1  ;;  %2020 = vmatprep.subr.bf16.mxu1 %v2186_v1  ;;  %v2144_v2 = vld [vmem:[%s2244_s28 + $0x1e4] ss:$8 sps:$4 sm:$0xff]   ;;  %v2146_v3 = vld [vmem:[%s2244_s28 + $0xc0] ss:$8 sps:$4 sm:$0xff]   ;;  %v2148_v5 = vld [vmem:[%s2244_s28 + $0xd4] ss:$8 sps:$4 sm:$0xff]  }
  0x21   : > { %v2147_v4 = vld [vmem:[%s2244_s28 + $0x1e0] ss:$8 sps:$4 sm:$0xff]   ;;  %v2150_v6 = vld [vmem:[%s2244_s28 + $0x1f4] ss:$8 sps:$4 sm:$0xff]   ;;  %v2152_v7 = vld [vmem:[%s2244_s28 + $0xd0] ss:$8 sps:$4 sm:$0xff]  }
  0x22   : > { %v2153_v8 = vld [vmem:[%s2244_s28 + $0x1f0] ss:$8 sps:$4 sm:$0xff]   ;;  %v2154_v9 = vld [vmem:[%s2244_s28 + $0xe4] ss:$8 sps:$4 sm:$0xff]  }
  0x23   : > { %760 = vmatpush1.bf16.msra.mxu0 %v2061_v10  ;;  %2036 = vmatpush1.bf16.msra.mxu1 %v2061_v10  ;;  %v2156_v10 = vld [vmem:[%s2244_s28 + $0x204] ss:$8 sps:$4 sm:$0xff]  }
  0x24   : > { %761 = vmatprep.subr.bf16.mxu0 %v2186_v1  ;;  %2021 = vmatprep.subr.bf16.mxu1 %v2186_v1 }
  0x27   : > { %762 = vmatpush1.bf16.msra.mxu0 %v2062_v11  ;;  %2037 = vmatpush1.bf16.msra.mxu1 %v2062_v11  ;;  %v2158_v11 = vld [vmem:[%s2244_s28 + $0xe0] ss:$8 sps:$4 sm:$0xff]  }
  0x28   : > { %763 = vmatprep.subr.bf16.mxu0 %v2186_v1  ;;  %2022 = vmatprep.subr.bf16.mxu1 %v2186_v1 }
  0x2b   : > { %764 = vmatpush1.bf16.msra.mxu0 %v2063_v12  ;;  %2038 = vmatpush1.bf16.msra.mxu1 %v2063_v12  ;;  %v2159_v12 = vld [vmem:[%s2244_s28 + $0x200] ss:$8 sps:$4 sm:$0xff]  }
  0x2c   : > { %765 = vmatprep.subr.bf16.mxu0 %v2186_v1  ;;  %2023 = vmatprep.subr.bf16.mxu1 %v2186_v1 }
  0x2f   : > { %766 = vmatpush1.bf16.msra.mxu0 %v2064_v13  ;;  %2039 = vmatpush1.bf16.msra.mxu1 %v2064_v13  ;;  %v2160_v13 = vld [vmem:[%s2244_s28 + $0xf4] ss:$8 sps:$4 sm:$0xff]  }
  0x30   : > { %767 = vmatprep.subr.bf16.mxu0 %v2186_v1  ;;  %2024 = vmatprep.subr.bf16.mxu1 %v2186_v1 }
  0x33   : > { %768 = vmatpush1.bf16.msra.mxu0 %v2065_v14  ;;  %2040 = vmatpush1.bf16.msra.mxu1 %v2065_v14  ;;  %v2162_v14 = vld [vmem:[%s2244_s28 + $0x214] ss:$8 sps:$4 sm:$0xff]  }
  0x34   : > { %769 = vmatprep.subr.bf16.mxu0 %v2186_v1  ;;  %2025 = vmatprep.subr.bf16.mxu1 %v2186_v1 }
  0x37   : > { %770 = vmatpush1.bf16.msra.mxu0 %v2066_v15  ;;  %2041 = vmatpush1.bf16.msra.mxu1 %v2066_v15  ;;  %v2164_v15 = vld [vmem:[%s2244_s28 + $0xf0] ss:$8 sps:$4 sm:$0xff]  }
  0x38   : > { %771 = vmatprep.subr.bf16.mxu0 %v2186_v1  ;;  %2026 = vmatprep.subr.bf16.mxu1 %v2186_v1 }
  0x3b   : > { %772 = vmatpush1.bf16.msra.mxu0 %v2067_v16  ;;  %2042 = vmatpush1.bf16.msra.mxu1 %v2067_v16  ;;  %v2165_v16 = vld [vmem:[%s2244_s28 + $0x210] ss:$8 sps:$4 sm:$0xff]  }
  0x3c   : > { %773 = vmatprep.subr.bf16.mxu0 %v2186_v1  ;;  %2027 = vmatprep.subr.bf16.mxu1 %v2186_v1 }
  0x3f   : > { %774 = vmatpush1.bf16.msra.mxu0 %v2068_v17  ;;  %2043 = vmatpush1.bf16.msra.mxu1 %v2068_v17  ;;  %v2166_v17 = vld [vmem:[%s2244_s28 + $0x104] ss:$8 sps:$4 sm:$0xff]  }
  0x40   : > { %775 = vmatprep.subr.bf16.mxu0 %v2186_v1  ;;  %2028 = vmatprep.subr.bf16.mxu1 %v2186_v1  ;;  %v2142_v1 = vld [vmem:[%s2244_s28 + $0xc4] ss:$8 sps:$4 sm:$0xff]  }
  0x43   : > { %776 = vmatpush1.bf16.msra.mxu0 %v2069_v18  ;;  %2044 = vmatpush1.bf16.msra.mxu1 %v2069_v18  ;;  %v2168_v18 = vld [vmem:[%s2244_s28 + $0x224] ss:$8 sps:$4 sm:$0xff]  }
  0x46   : > { %778 = vmatmul.mubr.bf16.vlgmr.msra.gmra.mrb[0].mxu0 %v2070_v19  ;;  %922 = vmatmul.mubr.bf16.vlgmr.msra.gmra.mrb[0].mxu1 %v2073_v20  ;;  %v2170_v19 = vld [vmem:[%s2244_s28 + $0x100] ss:$8 sps:$4 sm:$0xff]  }
  0x47   : > { %785 = vmatprep.mubr.bf16.mxu0 %v2076_v21  ;;  %929 = vmatprep.mubr.bf16.mxu1 %v2078_v22  ;;  %v2171_v20 = vld [vmem:[%s2244_s28 + $0x220] ss:$8 sps:$4 sm:$0xff]   ;;  %v2172_v21 = vld [vmem:[%s2244_s28 + $0x114] ss:$8 sps:$4 sm:$0xff]  }
  0x48   : > { %v2174_v22 = vld [vmem:[%s2244_s28 + $0x234] ss:$8 sps:$4 sm:$0xff]  }
  0x4e   : > { %786 = vmatmul.mubr.bf16.gmra.mrb[4].mxu0 %v2080_v23  ;;  %930 = vmatmul.mubr.bf16.gmra.mrb[4].mxu1 %v2081_v24  ;;  %v2176_v23 = vld [vmem:[%s2244_s28 + $0x110] ss:$8 sps:$4 sm:$0xff]  }
  0x4f   : > { %793 = vmatprep.mubr.bf16.mxu0 %v2082_v25  ;;  %937 = vmatprep.mubr.bf16.mxu1 %v2084_v26  ;;  %v2177_v24 = vld [vmem:[%s2244_s28 + $0x230] ss:$8 sps:$4 sm:$0xff]   ;;  %v2378_v25 = vld [vmem:[%s2499_s2] ss:$0 sm:$0xff] }
  0x56   : > { %794 = vmatmul.mubr.bf16.gmra.mrb[8].mxu0 %v2086_v27  ;;  %938 = vmatmul.mubr.bf16.gmra.mrb[8].mxu1 %v2087_v28 }
  0x57   : > { %801 = vmatprep.mubr.bf16.mxu0 %v2088_v29  ;;  %945 = vmatprep.mubr.bf16.mxu1 %v2090_v30 }
  0x5e   : > { %802 = vmatmul.mubr.bf16.gmra.mrb[12].mxu0 %v2092_v31  ;;  %946 = vmatmul.mubr.bf16.gmra.mrb[12].mxu1 %v2093_v32 }
  0x5f   : > { %809 = vmatprep.mubr.bf16.mxu0 %v2094_v33  ;;  %953 = vmatprep.mubr.bf16.mxu1 %v2096_v34 }
  0x66   : > { %810 = vmatmul.mubr.bf16.gmra.mrb[16].mxu0 %v2098_v35  ;;  %954 = vmatmul.mubr.bf16.gmra.mrb[16].mxu1 %v2099_v36 }
  0x67   : > { %817 = vmatprep.mubr.bf16.mxu0 %v2100_v37  ;;  %961 = vmatprep.mubr.bf16.mxu1 %v2102_v38 }
  0x6e   : > { %818 = vmatmul.mubr.bf16.gmra.mrb[20].mxu0 %v2104_v39  ;;  %962 = vmatmul.mubr.bf16.gmra.mrb[20].mxu1 %v2105_v40 }
  0x6f   : > { %825 = vmatprep.mubr.bf16.mxu0 %v2106_v41  ;;  %969 = vmatprep.mubr.bf16.mxu1 %v2108_v42 }
  0x76   : > { %826 = vmatmul.mubr.bf16.gmra.mrb[24].mxu0 %v2110_v43  ;;  %970 = vmatmul.mubr.bf16.gmra.mrb[24].mxu1 %v2111_v44 }
  0x77   : > { %833 = vmatprep.mubr.bf16.mxu0 %v2112_v45  ;;  %977 = vmatprep.mubr.bf16.mxu1 %v2114_v46 }
  0x7e   : > { %834 = vmatmul.mubr.bf16.gmra.mrb[28].mxu0 %v2116_v47  ;;  %978 = vmatmul.mubr.bf16.gmra.mrb[28].mxu1 %v2117_v48 }
  0x7f   : > { %841 = vmatprep.mubr.bf16.mxu0 %v2118_v49  ;;  %985 = vmatprep.mubr.bf16.mxu1 %v2120_v50 }
  0x86   : > { %842 = vmatmul.mubr.bf16.gmra.mrb[32].mxu0 %v2122_v51  ;;  %986 = vmatmul.mubr.bf16.gmra.mrb[32].mxu1 %v2123_v52 }
  0x87   : > { %849 = vmatprep.mubr.bf16.mxu0 %v2124_v53  ;;  %993 = vmatprep.mubr.bf16.mxu1 %v2126_v54 }
  0x8e   : > { %850 = vmatmul.mubr.bf16.gmra.mrb[36].mxu0 %v2128_v55  ;;  %994 = vmatmul.mubr.bf16.gmra.mrb[36].mxu1 %v2129_v56 }
  0x8f   : > { %857 = vmatprep.mubr.bf16.mxu0 %v2130_v57  ;;  %1001 = vmatprep.mubr.bf16.mxu1 %v2132_v58 }
  0x96   : > { %858 = vmatmul.mubr.bf16.gmra.mrb[40].mxu0 %v2134_v59  ;;  %1002 = vmatmul.mubr.bf16.gmra.mrb[40].mxu1 %v2135_v60 }
  0x97   : > { %865 = vmatprep.mubr.bf16.mxu0 %v2136_v61  ;;  %1009 = vmatprep.mubr.bf16.mxu1 %v2138_v62 }
  0x9e   : > { %866 = vmatmul.mubr.bf16.gmra.mrb[44].mxu0 %v2140_v63  ;;  %1010 = vmatmul.mubr.bf16.gmra.mrb[44].mxu1 %v2141_v0 }
  0x9f   : > { %873 = vmatprep.mubr.bf16.mxu0 %v2142_v1  ;;  %1017 = vmatprep.mubr.bf16.mxu1 %v2144_v2 }
  0xa6   : > { %874 = vmatmul.mubr.bf16.gmra.mrb[48].mxu0 %v2146_v3  ;;  %1018 = vmatmul.mubr.bf16.gmra.mrb[48].mxu1 %v2147_v4 }
  0xa7   : > { %881 = vmatprep.mubr.bf16.mxu0 %v2148_v5  ;;  %1025 = vmatprep.mubr.bf16.mxu1 %v2150_v6 }
  0xae   : > { %882 = vmatmul.mubr.bf16.gmra.mrb[52].mxu0 %v2152_v7  ;;  %1026 = vmatmul.mubr.bf16.gmra.mrb[52].mxu1 %v2153_v8 }
  0xaf   : > { %889 = vmatprep.mubr.bf16.mxu0 %v2154_v9  ;;  %1033 = vmatprep.mubr.bf16.mxu1 %v2156_v10 }
  0xb6   : > { %890 = vmatmul.mubr.bf16.gmra.mrb[56].mxu0 %v2158_v11  ;;  %1034 = vmatmul.mubr.bf16.gmra.mrb[56].mxu1 %v2159_v12 }
  0xb7   : > { %897 = vmatprep.mubr.bf16.mxu0 %v2160_v13  ;;  %1041 = vmatprep.mubr.bf16.mxu1 %v2162_v14 }
  0xbe   : > { %898 = vmatmul.mubr.bf16.gmra.mrb[60].mxu0 %v2164_v15  ;;  %1042 = vmatmul.mubr.bf16.gmra.mrb[60].mxu1 %v2165_v16 }
  0xbf   : > { %905 = vmatprep.mubr.bf16.mxu0 %v2166_v17  ;;  %1049 = vmatprep.mubr.bf16.mxu1 %v2168_v18 }
  0xc6   : > { %906 = vmatmul.mubr.bf16.gmra.mrb[64].mxu0 %v2170_v19  ;;  %1050 = vmatmul.mubr.bf16.gmra.mrb[64].mxu1 %v2171_v20 }
  0xc7   : > { %913 = vmatprep.mubr.bf16.mxu0 %v2172_v21  ;;  %1057 = vmatprep.mubr.bf16.mxu1 %v2174_v22 }
  0xce   : > { %914 = vmatmul.mubr.bf16.gmra.mrb[68].mxu0 %v2176_v23  ;;  %1058 = vmatmul.mubr.bf16.gmra.mrb[68].mxu1 %v2177_v24 }
 0x119   : > { %v779_v26 = vpop.f32.mrb[0].mxu0  ;;  %v923_v27 = vpop.f32.mrb[0].mxu1 }
 0x11a   : > { %v780_v28 = vadd.f32 %v2378_v25, %v779_v26  ;;  %v924_v29 = vadd.f32 %v2378_v25, %v923_v27  ;;  %v781_v30 = vpop.f32.mrb[1].mxu0  ;;  %v925_v31 = vpop.f32.mrb[1].mxu1 }
 0x11b   : > { %v782_v32 = vpop.f32.mrb[2].mxu0  ;;  %v926_v33 = vpop.f32.mrb[2].mxu1 }
 0x11c   : > { %v783_v34 = vadd.f32 %v2378_v25, %v782_v32  ;;  %v927_v35 = vadd.f32 %v2378_v25, %v926_v33  ;;  %v784_v36 = vpop.f32.mrb[3].mxu0  ;;  %v928_v37 = vpop.f32.mrb[3].mxu1  ;;  %v1066_v38 = vmax.f32 %v780_v28, 0.0  ;;  %v1102_v39 = vmax.f32 %v924_v29, 0.0 }
 0x11e   : > { %v1067_v40 = vmax.f32 %v783_v34, 0.0  ;;  %v1103_v41 = vmax.f32 %v927_v35, 0.0 }
 0x120   : > { %v1801_v42 = vpack.c.bf16 %v1067_v40, %v1066_v38  ;;  %v1891_v43 = vpack.c.bf16 %v1103_v41, %v1102_v39 }
 0x121   : > { %v787_v44 = vpop.f32.mrb[4].mxu0  ;;  %v931_v45 = vpop.f32.mrb[4].mxu1 }
 0x122   : > { %1802 = vst [vmem:[%s2388_s4] sm:$0xff] %v1801_v42   ;;  %1995 = vst [vmem:[%s2388_s4 + $0x90] sm:$0xff] %v1891_v43   ;;  %v788_v46 = vadd.f32 %v2378_v25, %v787_v44  ;;  %v932_v47 = vadd.f32 %v2378_v25, %v931_v45  ;;  %v789_v48 = vpop.f32.mrb[5].mxu0  ;;  %v933_v49 = vpop.f32.mrb[5].mxu1 }
 0x123   : > { %v790_v50 = vpop.f32.mrb[6].mxu0  ;;  %v934_v51 = vpop.f32.mrb[6].mxu1 }
 0x124   : > { %v791_v52 = vadd.f32 %v2378_v25, %v790_v50  ;;  %v935_v53 = vadd.f32 %v2378_v25, %v934_v51  ;;  %v792_v54 = vpop.f32.mrb[7].mxu0  ;;  %v936_v55 = vpop.f32.mrb[7].mxu1  ;;  %v1068_v56 = vmax.f32 %v788_v46, 0.0  ;;  %v1104_v57 = vmax.f32 %v932_v47, 0.0 }
 0x126   : > { %v1069_v58 = vmax.f32 %v791_v52, 0.0  ;;  %v1105_v59 = vmax.f32 %v935_v53, 0.0 }
 0x128   : > { %v1806_v60 = vpack.c.bf16 %v1069_v58, %v1068_v56  ;;  %v1896_v61 = vpack.c.bf16 %v1105_v59, %v1104_v57 }
 0x129   : > { %v795_v62 = vpop.f32.mrb[8].mxu0  ;;  %v939_v63 = vpop.f32.mrb[8].mxu1 }
 0x12a   : > { %1978 = vst [vmem:[%s2388_s4 + $0x8] sm:$0xff] %v1806_v60   ;;  %1996 = vst [vmem:[%s2388_s4 + $0x98] sm:$0xff] %v1896_v61   ;;  %v796_v0 = vadd.f32 %v2378_v25, %v795_v62  ;;  %v940_v1 = vadd.f32 %v2378_v25, %v939_v63  ;;  %v797_v2 = vpop.f32.mrb[9].mxu0  ;;  %v941_v3 = vpop.f32.mrb[9].mxu1 }
 0x12b   : > { %v798_v4 = vpop.f32.mrb[10].mxu0  ;;  %v942_v5 = vpop.f32.mrb[10].mxu1 }
 0x12c   : > { %v799_v6 = vadd.f32 %v2378_v25, %v798_v4  ;;  %v943_v7 = vadd.f32 %v2378_v25, %v942_v5  ;;  %v800_v8 = vpop.f32.mrb[11].mxu0  ;;  %v944_v9 = vpop.f32.mrb[11].mxu1  ;;  %v1070_v10 = vmax.f32 %v796_v0, 0.0  ;;  %v1106_v11 = vmax.f32 %v940_v1, 0.0 }
 0x12e   : > { %v1071_v12 = vmax.f32 %v799_v6, 0.0  ;;  %v1107_v13 = vmax.f32 %v943_v7, 0.0 }
 0x130   : > { %v1811_v14 = vpack.c.bf16 %v1071_v12, %v1070_v10  ;;  %v1901_v15 = vpack.c.bf16 %v1107_v13, %v1106_v11 }
 0x131   : > { %v803_v16 = vpop.f32.mrb[12].mxu0  ;;  %v947_v17 = vpop.f32.mrb[12].mxu1 }
 0x132   : > { %1979 = vst [vmem:[%s2388_s4 + $0x10] sm:$0xff] %v1811_v14   ;;  %1997 = vst [vmem:[%s2388_s4 + $0xa0] sm:$0xff] %v1901_v15   ;;  %v804_v18 = vadd.f32 %v2378_v25, %v803_v16  ;;  %v948_v19 = vadd.f32 %v2378_v25, %v947_v17  ;;  %v805_v20 = vpop.f32.mrb[13].mxu0  ;;  %v949_v21 = vpop.f32.mrb[13].mxu1 }
 0x133   : > { %v806_v22 = vpop.f32.mrb[14].mxu0  ;;  %v950_v23 = vpop.f32.mrb[14].mxu1 }
 0x134   : > { %v807_v24 = vadd.f32 %v2378_v25, %v806_v22  ;;  %v951_v26 = vadd.f32 %v2378_v25, %v950_v23  ;;  %v808_v27 = vpop.f32.mrb[15].mxu0  ;;  %v952_v28 = vpop.f32.mrb[15].mxu1  ;;  %v1072_v29 = vmax.f32 %v804_v18, 0.0  ;;  %v1108_v30 = vmax.f32 %v948_v19, 0.0 }
 0x136   : > { %v1073_v31 = vmax.f32 %v807_v24, 0.0  ;;  %v1109_v32 = vmax.f32 %v951_v26, 0.0 }
 0x138   : > { %v1816_v33 = vpack.c.bf16 %v1073_v31, %v1072_v29  ;;  %v1906_v34 = vpack.c.bf16 %v1109_v32, %v1108_v30 }
 0x139   : > { %v811_v35 = vpop.f32.mrb[16].mxu0  ;;  %v955_v36 = vpop.f32.mrb[16].mxu1 }
 0x13a   : > { %1980 = vst [vmem:[%s2388_s4 + $0x18] sm:$0xff] %v1816_v33   ;;  %1998 = vst [vmem:[%s2388_s4 + $0xa8] sm:$0xff] %v1906_v34   ;;  %v812_v37 = vadd.f32 %v2378_v25, %v811_v35  ;;  %v956_v38 = vadd.f32 %v2378_v25, %v955_v36  ;;  %v813_v39 = vpop.f32.mrb[17].mxu0  ;;  %v957_v40 = vpop.f32.mrb[17].mxu1 }
 0x13b   : > { %v814_v41 = vpop.f32.mrb[18].mxu0  ;;  %v958_v42 = vpop.f32.mrb[18].mxu1 }
 0x13c   : > { %v815_v43 = vadd.f32 %v2378_v25, %v814_v41  ;;  %v959_v44 = vadd.f32 %v2378_v25, %v958_v42  ;;  %v816_v45 = vpop.f32.mrb[19].mxu0  ;;  %v960_v46 = vpop.f32.mrb[19].mxu1  ;;  %v1074_v47 = vmax.f32 %v812_v37, 0.0  ;;  %v1110_v48 = vmax.f32 %v956_v38, 0.0 }
 0x13e   : > { %v1075_v49 = vmax.f32 %v815_v43, 0.0  ;;  %v1111_v50 = vmax.f32 %v959_v44, 0.0 }
 0x140   : > { %v1821_v51 = vpack.c.bf16 %v1075_v49, %v1074_v47  ;;  %v1911_v52 = vpack.c.bf16 %v1111_v50, %v1110_v48 }
 0x141   : > { %v819_v53 = vpop.f32.mrb[20].mxu0  ;;  %v963_v54 = vpop.f32.mrb[20].mxu1 }
 0x142   : > { %1981 = vst [vmem:[%s2388_s4 + $0x20] sm:$0xff] %v1821_v51   ;;  %1999 = vst [vmem:[%s2388_s4 + $0xb0] sm:$0xff] %v1911_v52   ;;  %v820_v55 = vadd.f32 %v2378_v25, %v819_v53  ;;  %v964_v56 = vadd.f32 %v2378_v25, %v963_v54  ;;  %v821_v57 = vpop.f32.mrb[21].mxu0  ;;  %v965_v58 = vpop.f32.mrb[21].mxu1 }
 0x143   : > { %v822_v59 = vpop.f32.mrb[22].mxu0  ;;  %v966_v60 = vpop.f32.mrb[22].mxu1 }
 0x144   : > { %v823_v61 = vadd.f32 %v2378_v25, %v822_v59  ;;  %v967_v62 = vadd.f32 %v2378_v25, %v966_v60  ;;  %v824_v63 = vpop.f32.mrb[23].mxu0  ;;  %v968_v0 = vpop.f32.mrb[23].mxu1  ;;  %v1076_v1 = vmax.f32 %v820_v55, 0.0  ;;  %v1112_v2 = vmax.f32 %v964_v56, 0.0 }
 0x146   : > { %v1077_v3 = vmax.f32 %v823_v61, 0.0  ;;  %v1113_v4 = vmax.f32 %v967_v62, 0.0 }
 0x148   : > { %v1826_v5 = vpack.c.bf16 %v1077_v3, %v1076_v1  ;;  %v1916_v6 = vpack.c.bf16 %v1113_v4, %v1112_v2 }
 0x149   : > { %v827_v7 = vpop.f32.mrb[24].mxu0  ;;  %v971_v8 = vpop.f32.mrb[24].mxu1 }
 0x14a   : > { %1982 = vst [vmem:[%s2388_s4 + $0x28] sm:$0xff] %v1826_v5   ;;  %2000 = vst [vmem:[%s2388_s4 + $0xb8] sm:$0xff] %v1916_v6   ;;  %v828_v9 = vadd.f32 %v2378_v25, %v827_v7  ;;  %v972_v10 = vadd.f32 %v2378_v25, %v971_v8  ;;  %v829_v11 = vpop.f32.mrb[25].mxu0  ;;  %v973_v12 = vpop.f32.mrb[25].mxu1 }
 0x14b   : > { %v830_v13 = vpop.f32.mrb[26].mxu0  ;;  %v974_v14 = vpop.f32.mrb[26].mxu1 }
 0x14c   : > { %v831_v15 = vadd.f32 %v2378_v25, %v830_v13  ;;  %v975_v16 = vadd.f32 %v2378_v25, %v974_v14  ;;  %v832_v17 = vpop.f32.mrb[27].mxu0  ;;  %v976_v18 = vpop.f32.mrb[27].mxu1  ;;  %v1078_v19 = vmax.f32 %v828_v9, 0.0  ;;  %v1114_v20 = vmax.f32 %v972_v10, 0.0 }
 0x14e   : > { %v1079_v21 = vmax.f32 %v831_v15, 0.0  ;;  %v1115_v22 = vmax.f32 %v975_v16, 0.0 }
 0x150   : > { %v1831_v23 = vpack.c.bf16 %v1079_v21, %v1078_v19  ;;  %v1921_v24 = vpack.c.bf16 %v1115_v22, %v1114_v20 }
 0x151   : > { %v835_v26 = vpop.f32.mrb[28].mxu0  ;;  %v979_v27 = vpop.f32.mrb[28].mxu1 }
 0x152   : > { %1983 = vst [vmem:[%s2388_s4 + $0x30] sm:$0xff] %v1831_v23   ;;  %2001 = vst [vmem:[%s2388_s4 + $0xc0] sm:$0xff] %v1921_v24   ;;  %v836_v28 = vadd.f32 %v2378_v25, %v835_v26  ;;  %v980_v29 = vadd.f32 %v2378_v25, %v979_v27  ;;  %v837_v30 = vpop.f32.mrb[29].mxu0  ;;  %v981_v31 = vpop.f32.mrb[29].mxu1 }
 0x153   : > { %v838_v32 = vpop.f32.mrb[30].mxu0  ;;  %v982_v33 = vpop.f32.mrb[30].mxu1 }
 0x154   : > { %v839_v34 = vadd.f32 %v2378_v25, %v838_v32  ;;  %v983_v35 = vadd.f32 %v2378_v25, %v982_v33  ;;  %v840_v36 = vpop.f32.mrb[31].mxu0  ;;  %v984_v37 = vpop.f32.mrb[31].mxu1  ;;  %v1080_v38 = vmax.f32 %v836_v28, 0.0  ;;  %v1116_v39 = vmax.f32 %v980_v29, 0.0 }
 0x156   : > { %v1081_v40 = vmax.f32 %v839_v34, 0.0  ;;  %v1117_v41 = vmax.f32 %v983_v35, 0.0 }
 0x158   : > { %v1836_v42 = vpack.c.bf16 %v1081_v40, %v1080_v38  ;;  %v1926_v43 = vpack.c.bf16 %v1117_v41, %v1116_v39 }
 0x159   : > { %v843_v44 = vpop.f32.mrb[32].mxu0  ;;  %v987_v45 = vpop.f32.mrb[32].mxu1 }
 0x15a   : > { %1984 = vst [vmem:[%s2388_s4 + $0x38] sm:$0xff] %v1836_v42   ;;  %2002 = vst [vmem:[%s2388_s4 + $0xc8] sm:$0xff] %v1926_v43   ;;  %v844_v46 = vadd.f32 %v2378_v25, %v843_v44  ;;  %v988_v47 = vadd.f32 %v2378_v25, %v987_v45  ;;  %v845_v48 = vpop.f32.mrb[33].mxu0  ;;  %v989_v49 = vpop.f32.mrb[33].mxu1 }
 0x15b   : > { %v846_v50 = vpop.f32.mrb[34].mxu0  ;;  %v990_v51 = vpop.f32.mrb[34].mxu1 }
 0x15c   : > { %v847_v52 = vadd.f32 %v2378_v25, %v846_v50  ;;  %v991_v53 = vadd.f32 %v2378_v25, %v990_v51  ;;  %v848_v54 = vpop.f32.mrb[35].mxu0  ;;  %v992_v55 = vpop.f32.mrb[35].mxu1  ;;  %v1082_v56 = vmax.f32 %v844_v46, 0.0  ;;  %v1118_v57 = vmax.f32 %v988_v47, 0.0 }
 0x15e   : > { %v1083_v58 = vmax.f32 %v847_v52, 0.0  ;;  %v1119_v59 = vmax.f32 %v991_v53, 0.0 }
 0x160   : > { %v1841_v60 = vpack.c.bf16 %v1083_v58, %v1082_v56  ;;  %v1931_v61 = vpack.c.bf16 %v1119_v59, %v1118_v57 }
 0x161   : > { %v851_v62 = vpop.f32.mrb[36].mxu0  ;;  %v995_v63 = vpop.f32.mrb[36].mxu1 }
 0x162   : > { %1985 = vst [vmem:[%s2388_s4 + $0x40] sm:$0xff] %v1841_v60   ;;  %2003 = vst [vmem:[%s2388_s4 + $0xd0] sm:$0xff] %v1931_v61   ;;  %v852_v0 = vadd.f32 %v2378_v25, %v851_v62  ;;  %v996_v1 = vadd.f32 %v2378_v25, %v995_v63  ;;  %v853_v2 = vpop.f32.mrb[37].mxu0  ;;  %v997_v3 = vpop.f32.mrb[37].mxu1 }
 0x163   : > { %v854_v4 = vpop.f32.mrb[38].mxu0  ;;  %v998_v5 = vpop.f32.mrb[38].mxu1 }
 0x164   : > { %v855_v6 = vadd.f32 %v2378_v25, %v854_v4  ;;  %v999_v7 = vadd.f32 %v2378_v25, %v998_v5  ;;  %v856_v8 = vpop.f32.mrb[39].mxu0  ;;  %v1000_v9 = vpop.f32.mrb[39].mxu1  ;;  %v1084_v10 = vmax.f32 %v852_v0, 0.0  ;;  %v1120_v11 = vmax.f32 %v996_v1, 0.0 }
 0x166   : > { %v1085_v12 = vmax.f32 %v855_v6, 0.0  ;;  %v1121_v13 = vmax.f32 %v999_v7, 0.0 }
 0x168   : > { %v1846_v14 = vpack.c.bf16 %v1085_v12, %v1084_v10  ;;  %v1936_v15 = vpack.c.bf16 %v1121_v13, %v1120_v11 }
 0x169   : > { %v859_v16 = vpop.f32.mrb[40].mxu0  ;;  %v1003_v17 = vpop.f32.mrb[40].mxu1 }
 0x16a   : > { %1986 = vst [vmem:[%s2388_s4 + $0x48] sm:$0xff] %v1846_v14   ;;  %2004 = vst [vmem:[%s2388_s4 + $0xd8] sm:$0xff] %v1936_v15   ;;  %v860_v18 = vadd.f32 %v2378_v25, %v859_v16  ;;  %v1004_v19 = vadd.f32 %v2378_v25, %v1003_v17  ;;  %v861_v20 = vpop.f32.mrb[41].mxu0  ;;  %v1005_v21 = vpop.f32.mrb[41].mxu1 }
 0x16b   : > { %v862_v22 = vpop.f32.mrb[42].mxu0  ;;  %v1006_v23 = vpop.f32.mrb[42].mxu1 }
 0x16c   : > { %v863_v24 = vadd.f32 %v2378_v25, %v862_v22  ;;  %v1007_v26 = vadd.f32 %v2378_v25, %v1006_v23  ;;  %v864_v27 = vpop.f32.mrb[43].mxu0  ;;  %v1008_v28 = vpop.f32.mrb[43].mxu1  ;;  %v1086_v29 = vmax.f32 %v860_v18, 0.0  ;;  %v1122_v30 = vmax.f32 %v1004_v19, 0.0 }
 0x16e   : > { %v1087_v31 = vmax.f32 %v863_v24, 0.0  ;;  %v1123_v32 = vmax.f32 %v1007_v26, 0.0 }
 0x170   : > { %v1851_v33 = vpack.c.bf16 %v1087_v31, %v1086_v29  ;;  %v1941_v34 = vpack.c.bf16 %v1123_v32, %v1122_v30 }
 0x171   : > { %v867_v35 = vpop.f32.mrb[44].mxu0  ;;  %v1011_v36 = vpop.f32.mrb[44].mxu1 }
 0x172   : > { %1987 = vst [vmem:[%s2388_s4 + $0x50] sm:$0xff] %v1851_v33   ;;  %2005 = vst [vmem:[%s2388_s4 + $0xe0] sm:$0xff] %v1941_v34   ;;  %v868_v37 = vadd.f32 %v2378_v25, %v867_v35  ;;  %v1012_v38 = vadd.f32 %v2378_v25, %v1011_v36  ;;  %v869_v39 = vpop.f32.mrb[45].mxu0  ;;  %v1013_v40 = vpop.f32.mrb[45].mxu1 }
 0x173   : > { %v870_v41 = vpop.f32.mrb[46].mxu0  ;;  %v1014_v42 = vpop.f32.mrb[46].mxu1 }
 0x174   : > { %v871_v43 = vadd.f32 %v2378_v25, %v870_v41  ;;  %v1015_v44 = vadd.f32 %v2378_v25, %v1014_v42  ;;  %v872_v45 = vpop.f32.mrb[47].mxu0  ;;  %v1016_v46 = vpop.f32.mrb[47].mxu1  ;;  %v1088_v47 = vmax.f32 %v868_v37, 0.0  ;;  %v1124_v48 = vmax.f32 %v1012_v38, 0.0 }
 0x176   : > { %v1089_v49 = vmax.f32 %v871_v43, 0.0  ;;  %v1125_v50 = vmax.f32 %v1015_v44, 0.0 }
 0x178   : > { %v1856_v51 = vpack.c.bf16 %v1089_v49, %v1088_v47  ;;  %v1946_v52 = vpack.c.bf16 %v1125_v50, %v1124_v48 }
 0x179   : > { %v875_v53 = vpop.f32.mrb[48].mxu0  ;;  %v1019_v54 = vpop.f32.mrb[48].mxu1 }
 0x17a   : > { %1988 = vst [vmem:[%s2388_s4 + $0x58] sm:$0xff] %v1856_v51   ;;  %2006 = vst [vmem:[%s2388_s4 + $0xe8] sm:$0xff] %v1946_v52   ;;  %v876_v55 = vadd.f32 %v2378_v25, %v875_v53  ;;  %v1020_v56 = vadd.f32 %v2378_v25, %v1019_v54  ;;  %v877_v57 = vpop.f32.mrb[49].mxu0  ;;  %v1021_v58 = vpop.f32.mrb[49].mxu1 }
 0x17b   : > { %v878_v59 = vpop.f32.mrb[50].mxu0  ;;  %v1022_v60 = vpop.f32.mrb[50].mxu1 }
 0x17c   : > { %v879_v61 = vadd.f32 %v2378_v25, %v878_v59  ;;  %v1023_v62 = vadd.f32 %v2378_v25, %v1022_v60  ;;  %v880_v63 = vpop.f32.mrb[51].mxu0  ;;  %v1024_v0 = vpop.f32.mrb[51].mxu1  ;;  %v1090_v1 = vmax.f32 %v876_v55, 0.0  ;;  %v1126_v2 = vmax.f32 %v1020_v56, 0.0 }
 0x17e   : > { %v1091_v3 = vmax.f32 %v879_v61, 0.0  ;;  %v1127_v4 = vmax.f32 %v1023_v62, 0.0 }
 0x180   : > { %v1861_v5 = vpack.c.bf16 %v1091_v3, %v1090_v1  ;;  %v1951_v6 = vpack.c.bf16 %v1127_v4, %v1126_v2 }
 0x181   : > { %v883_v7 = vpop.f32.mrb[52].mxu0  ;;  %v1027_v8 = vpop.f32.mrb[52].mxu1 }
 0x182   : > { %1989 = vst [vmem:[%s2388_s4 + $0x60] sm:$0xff] %v1861_v5   ;;  %2007 = vst [vmem:[%s2388_s4 + $0xf0] sm:$0xff] %v1951_v6   ;;  %v884_v9 = vadd.f32 %v2378_v25, %v883_v7  ;;  %v1028_v10 = vadd.f32 %v2378_v25, %v1027_v8  ;;  %v885_v11 = vpop.f32.mrb[53].mxu0  ;;  %v1029_v12 = vpop.f32.mrb[53].mxu1 }
 0x183   : > { %v886_v13 = vpop.f32.mrb[54].mxu0  ;;  %v1030_v14 = vpop.f32.mrb[54].mxu1 }
 0x184   : > { %v887_v15 = vadd.f32 %v2378_v25, %v886_v13  ;;  %v1031_v16 = vadd.f32 %v2378_v25, %v1030_v14  ;;  %v888_v17 = vpop.f32.mrb[55].mxu0  ;;  %v1032_v18 = vpop.f32.mrb[55].mxu1  ;;  %v1092_v19 = vmax.f32 %v884_v9, 0.0  ;;  %v1128_v20 = vmax.f32 %v1028_v10, 0.0 }
 0x186   : > { %v1093_v21 = vmax.f32 %v887_v15, 0.0  ;;  %v1129_v22 = vmax.f32 %v1031_v16, 0.0 }
 0x188   : > { %v1866_v23 = vpack.c.bf16 %v1093_v21, %v1092_v19  ;;  %v1956_v24 = vpack.c.bf16 %v1129_v22, %v1128_v20 }
 0x189   : > { %v891_v26 = vpop.f32.mrb[56].mxu0  ;;  %v1035_v27 = vpop.f32.mrb[56].mxu1 }
 0x18a   : > { %1990 = vst [vmem:[%s2388_s4 + $0x68] sm:$0xff] %v1866_v23   ;;  %2008 = vst [vmem:[%s2388_s4 + $0xf8] sm:$0xff] %v1956_v24   ;;  %v892_v28 = vadd.f32 %v2378_v25, %v891_v26  ;;  %v1036_v29 = vadd.f32 %v2378_v25, %v1035_v27  ;;  %v893_v30 = vpop.f32.mrb[57].mxu0  ;;  %v1037_v31 = vpop.f32.mrb[57].mxu1 }
 0x18b   : > { %v894_v32 = vpop.f32.mrb[58].mxu0  ;;  %v1038_v33 = vpop.f32.mrb[58].mxu1 }
 0x18c   : > { %v895_v34 = vadd.f32 %v2378_v25, %v894_v32  ;;  %v1039_v35 = vadd.f32 %v2378_v25, %v1038_v33  ;;  %v896_v36 = vpop.f32.mrb[59].mxu0  ;;  %v1040_v37 = vpop.f32.mrb[59].mxu1  ;;  %v1094_v38 = vmax.f32 %v892_v28, 0.0  ;;  %v1130_v39 = vmax.f32 %v1036_v29, 0.0 }
 0x18e   : > { %v1095_v40 = vmax.f32 %v895_v34, 0.0  ;;  %v1131_v41 = vmax.f32 %v1039_v35, 0.0 }
 0x190   : > { %v1871_v42 = vpack.c.bf16 %v1095_v40, %v1094_v38  ;;  %v1961_v43 = vpack.c.bf16 %v1131_v41, %v1130_v39 }
 0x191   : > { %v899_v44 = vpop.f32.mrb[60].mxu0  ;;  %v1043_v45 = vpop.f32.mrb[60].mxu1 }
 0x192   : > { %1991 = vst [vmem:[%s2388_s4 + $0x70] sm:$0xff] %v1871_v42   ;;  %2009 = vst [vmem:[%s2388_s4 + $0x100] sm:$0xff] %v1961_v43   ;;  %v900_v46 = vadd.f32 %v2378_v25, %v899_v44  ;;  %v1044_v47 = vadd.f32 %v2378_v25, %v1043_v45  ;;  %v901_v48 = vpop.f32.mrb[61].mxu0  ;;  %v1045_v49 = vpop.f32.mrb[61].mxu1 }
 0x193   : > { %v902_v50 = vpop.f32.mrb[62].mxu0  ;;  %v1046_v51 = vpop.f32.mrb[62].mxu1 }
 0x194   : > { %v903_v52 = vadd.f32 %v2378_v25, %v902_v50  ;;  %v1047_v53 = vadd.f32 %v2378_v25, %v1046_v51  ;;  %v904_v54 = vpop.f32.mrb[63].mxu0  ;;  %v1048_v55 = vpop.f32.mrb[63].mxu1  ;;  %v1096_v56 = vmax.f32 %v900_v46, 0.0  ;;  %v1132_v57 = vmax.f32 %v1044_v47, 0.0 }
 0x196   : > { %v1097_v58 = vmax.f32 %v903_v52, 0.0  ;;  %v1133_v59 = vmax.f32 %v1047_v53, 0.0 }
 0x198   : > { %v1876_v60 = vpack.c.bf16 %v1097_v58, %v1096_v56  ;;  %v1966_v61 = vpack.c.bf16 %v1133_v59, %v1132_v57 }
 0x199   : > { %v907_v62 = vpop.f32.mrb[64].mxu0  ;;  %v1051_v63 = vpop.f32.mrb[64].mxu1 }
 0x19a   : > { %1992 = vst [vmem:[%s2388_s4 + $0x78] sm:$0xff] %v1876_v60   ;;  %2010 = vst [vmem:[%s2388_s4 + $0x108] sm:$0xff] %v1966_v61   ;;  %v908_v0 = vadd.f32 %v2378_v25, %v907_v62  ;;  %v1052_v1 = vadd.f32 %v2378_v25, %v1051_v63  ;;  %v909_v2 = vpop.f32.mrb[65].mxu0  ;;  %v1053_v3 = vpop.f32.mrb[65].mxu1 }
 0x19b   : > { %v910_v4 = vpop.f32.mrb[66].mxu0  ;;  %v1054_v5 = vpop.f32.mrb[66].mxu1 }
 0x19c   : > { %v911_v6 = vadd.f32 %v2378_v25, %v910_v4  ;;  %v1055_v7 = vadd.f32 %v2378_v25, %v1054_v5  ;;  %v912_v8 = vpop.f32.mrb[67].mxu0  ;;  %v1056_v9 = vpop.f32.mrb[67].mxu1  ;;  %v1098_v10 = vmax.f32 %v908_v0, 0.0  ;;  %v1134_v11 = vmax.f32 %v1052_v1, 0.0 }
 0x19e   : > { %v1099_v12 = vmax.f32 %v911_v6, 0.0  ;;  %v1135_v13 = vmax.f32 %v1055_v7, 0.0 }
 0x1a0   : > { %v1881_v14 = vpack.c.bf16 %v1099_v12, %v1098_v10  ;;  %v1971_v15 = vpack.c.bf16 %v1135_v13, %v1134_v11 }
 0x1a1   : > { %v915_v16 = vpop.f32.mrb[68].mxu0  ;;  %v1059_v17 = vpop.f32.mrb[68].mxu1 }
 0x1a2   : > { %1993 = vst [vmem:[%s2388_s4 + $0x80] sm:$0xff] %v1881_v14   ;;  %2011 = vst [vmem:[%s2388_s4 + $0x110] sm:$0xff] %v1971_v15   ;;  %v916_v18 = vadd.f32 %v2378_v25, %v915_v16  ;;  %v1060_v19 = vadd.f32 %v2378_v25, %v1059_v17  ;;  %v917_v20 = vpop.f32.mrb[69].mxu0  ;;  %v1061_v21 = vpop.f32.mrb[69].mxu1 }
 0x1a3   : > { %v918_v22 = vpop.f32.mrb[70].mxu0  ;;  %v1062_v23 = vpop.f32.mrb[70].mxu1 }
 0x1a4   : > { %v919_v24 = vadd.f32 %v2378_v25, %v918_v22  ;;  %v1063_v26 = vadd.f32 %v2378_v25, %v1062_v23  ;;  %v920_v27 = vpop.f32.mrb[71].mxu0  ;;  %v1064_v28 = vpop.f32.mrb[71].mxu1  ;;  %v1100_v29 = vmax.f32 %v916_v18, 0.0  ;;  %v1136_v30 = vmax.f32 %v1060_v19, 0.0 }
 0x1a6   : > { %v1101_v31 = vmax.f32 %v919_v24, 0.0  ;;  %v1137_v32 = vmax.f32 %v1063_v26, 0.0 }
 0x1a8   : > { %v1886_v33 = vpack.c.bf16 %v1101_v31, %v1100_v29  ;;  %v1976_v34 = vpack.c.bf16 %v1137_v32, %v1136_v30 }
 0x1aa   : > { %1994 = vst [vmem:[%s2388_s4 + $0x88] sm:$0xff] %v1886_v33   ;;  %2012 = vst [vmem:[%s2388_s4 + $0x118] sm:$0xff] %v1976_v34  }
 0x1ab PF: > { %s13_s12 = sadd.s32 1, %s2184_s12  }
 0x1ac   : > { %p10_p4 = scmp.ge.s32.totalorder %s13_s12, 4  }
 0x1ae   :  { %12 = sbr.rel (!%p10_p4) target bundleno = 1 (0x1), region = 62 }

// kernel: brain_dqn_forward.4
= control target key start
LH: loop header
LB: loop body
LE: loop exit
PB: predicated region body
PF: predicated region fallthrough
CT: control target
= control target key end

     0   :  { %s4174_s12 = smov 0   ;;  %s4923_s0 = inlined_call_operand.vmem [shape: bf16[288,2048], index: 0, kind: input, shape index: {}]   ;;  %s4924_s1 = inlined_call_operand.vmem [shape: bf16[2048,128], index: 1, kind: input, shape index: {}]   ;;  %s4925_s2 = inlined_call_operand.vmem [shape: f32[1,128], index: 2, kind: input, shape index: {}]   ;;  %s4926_s3 = inlined_call_operand.vmem [shape: bf16[288,128], index: 3, kind: output, shape index: {}]  }
   0x1 LB: > { %s3077_s13 = sadd.s32 4294967295, %s4152_s12   ;;  %p3081_p0 = scmp.ge.s32.totalorder %s4152_s12, 1  ;;  %s4152_s12 = sphi %s4174_s12, %s13_s12  }
   0x2   : > { %p139_p1 = scmp.lt.s32.totalorder %s4152_s12, 3 }
   0x4   : > { %p140_p2 = pnand %p3081_p0, %p139_p1 }
   0x5   : > { %v4018_v0 = vld [vmem:[%s4924_s1 + $0x40] sm:$0xff] (!%p140_p2)   ;;  %v4022_v4 = vld [vmem:[%s4924_s1 + $0x48] sm:$0xff] (!%p140_p2)   ;;  %v4026_v8 = vld [vmem:[%s4924_s1 + $0x50] sm:$0xff] (!%p140_p2)   ;;  %s164_s19 = smul.u32 (!%p140_p2), 18, %s3077_s13 }
   0x6   : > { %143 = sbr.rel (%p140_p2) target bundleno = 545 (0x221), region = 32  ;;  %v4019_v1 = vld [vmem:[%s4924_s1 + $0xc0] sm:$0xff] (!%p140_p2)   ;;  %3450 = vmatprep.subr.bf16.mxu0 (!%p140_p2), %v4018_v0  ;;  %v4023_v5 = vld [vmem:[%s4924_s1 + $0xc8] sm:$0xff] (!%p140_p2)   ;;  %v4027_v9 = vld [vmem:[%s4924_s1 + $0xd0] sm:$0xff] (!%p140_p2)  }
   0x7   : > { %v4020_v2 = vld [vmem:[%s4924_s1] sm:$0xff] (!%p140_p2)   ;;  %3520 = vmatprep.subr.bf16.mxu1 (!%p140_p2), %v4019_v1  ;;  %v4024_v6 = vld [vmem:[%s4924_s1 + $0x8] sm:$0xff] (!%p140_p2)   ;;  %v4028_v10 = vld [vmem:[%s4924_s1 + $0x10] sm:$0xff] (!%p140_p2)   ;;  %p165_p3 = scmp.lt.s32.totalorder (!%p140_p2), %s164_s19, 35 }
   0x8   : > { %v4021_v3 = vld [vmem:[%s4924_s1 + $0x80] sm:$0xff] (!%p140_p2)   ;;  %3451 = vmatpush3.bf16.msra.mxu0 (!%p140_p2), %v4020_v2  ;;  %v4025_v7 = vld [vmem:[%s4924_s1 + $0x88] sm:$0xff] (!%p140_p2)   ;;  %v4029_v11 = vld [vmem:[%s4924_s1 + $0x90] sm:$0xff] (!%p140_p2)  }
   0x9   : > { %3521 = vmatpush3.bf16.msra.mxu1 (!%p140_p2), %v4021_v3  ;;  %3452 = vmatprep.subr.bf16.mxu0 (!%p140_p2), %v4022_v4  ;;  %v4030_v12 = vld [vmem:[%s4924_s1 + $0x58] sm:$0xff] (!%p140_p2)   ;;  %v4034_v16 = vld [vmem:[%s4924_s1 + $0x60] sm:$0xff] (!%p140_p2)   ;;  %v4038_v20 = vld [vmem:[%s4924_s1 + $0x68] sm:$0xff] (!%p140_p2)  }
   0xa   : > { %3522 = vmatprep.subr.bf16.mxu1 (!%p140_p2), %v4023_v5  ;;  %v4031_v13 = vld [vmem:[%s4924_s1 + $0xd8] sm:$0xff] (!%p140_p2)   ;;  %v4035_v17 = vld [vmem:[%s4924_s1 + $0xe0] sm:$0xff] (!%p140_p2)   ;;  %v4039_v21 = vld [vmem:[%s4924_s1 + $0xe8] sm:$0xff] (!%p140_p2)  }
   0xb   : > { %v4032_v14 = vld [vmem:[%s4924_s1 + $0x18] sm:$0xff] (!%p140_p2)   ;;  %v4036_v18 = vld [vmem:[%s4924_s1 + $0x20] sm:$0xff] (!%p140_p2)   ;;  %v4040_v22 = vld [vmem:[%s4924_s1 + $0x28] sm:$0xff] (!%p140_p2)  }
   0xc   : > { %3453 = vmatpush3.bf16.msra.mxu0 (!%p140_p2), %v4024_v6  ;;  %v4033_v15 = vld [vmem:[%s4924_s1 + $0x98] sm:$0xff] (!%p140_p2)   ;;  %v4037_v19 = vld [vmem:[%s4924_s1 + $0xa0] sm:$0xff] (!%p140_p2)   ;;  %v4041_v23 = vld [vmem:[%s4924_s1 + $0xa8] sm:$0xff] (!%p140_p2)  }
   0xd   : > { %3523 = vmatpush3.bf16.msra.mxu1 %v4025_v7  ;;  %3454 = vmatprep.subr.bf16.mxu0 %v4026_v8  ;;  %s4928_s19 = smov (!%p165_p3, %s164_s19), 35  ;;  %v4042_v24 = vld [vmem:[%s4924_s1 + $0x70] sm:$0xff]   ;;  %v4046_v28 = vld [vmem:[%s4924_s1 + $0x78] sm:$0xff]   ;;  %v4050_v40 = vld [vmem:[%s4924_s1 + $0x140] sm:$0xff]  }
   0xe   : > { %3524 = vmatprep.subr.bf16.mxu1 %v4027_v9  ;;  %v4043_v25 = vld [vmem:[%s4924_s1 + $0xf0] sm:$0xff]   ;;  %s3378_s18 = sshll.u32 %s4928_s19, 6  ;;  %v4047_v29 = vld [vmem:[%s4924_s1 + $0xf8] sm:$0xff]   ;;  %v4051_v41 = vld [vmem:[%s4924_s1 + $0x100] sm:$0xff]  }
   0xf   : > { %v4044_v26 = vld [vmem:[%s4924_s1 + $0x30] sm:$0xff]   ;;  %s4280_s13 = scalar_lea.vmem %s4923_s0, %s3378_s18  ;;  %v4048_v30 = vld [vmem:[%s4924_s1 + $0x38] sm:$0xff]   ;;  %v4052_v42 = vld [vmem:[%s4924_s1 + $0x1c0] sm:$0xff]  }
  0x10   : > { %3455 = vmatpush3.bf16.msra.mxu0 %v4028_v10  ;;  %v4045_v27 = vld [vmem:[%s4924_s1 + $0xb0] sm:$0xff]   ;;  %v4049_v31 = vld [vmem:[%s4924_s1 + $0xb8] sm:$0xff]   ;;  %v178_v32 = vld [vmem:[%s4280_s13] sm:$0xff] }
  0x11   : > { %3525 = vmatpush3.bf16.msra.mxu1 %v4029_v11  ;;  %3456 = vmatprep.subr.bf16.mxu0 %v4030_v12  ;;  %v186_v33 = vld [vmem:[%s4280_s13 + $0x40] sm:$0xff]  ;;  %v179_v34 = vld [vmem:[%s4280_s13 + $0x8] sm:$0xff]  ;;  %v4058_v62 = vld [vmem:[%s4924_s1 + $0x150] sm:$0xff]  }
  0x12   : > { %3526 = vmatprep.subr.bf16.mxu1 %v4031_v13  ;;  %v3086_v35 = vcombine.low %v178_v32, %v186_v33  ;;  %v3087_v36 = vcombine.high %v178_v32, %v186_v33  ;;  %v187_v37 = vld [vmem:[%s4280_s13 + $0x48] sm:$0xff]  ;;  %v4053_v43 = vld [vmem:[%s4924_s1 + $0x180] sm:$0xff]   ;;  %v4059_v63 = vld [vmem:[%s4924_s1 + $0x110] sm:$0xff]  }
  0x13   : > { %v3088_v38 = vcombine.low %v179_v34, %v187_v37  ;;  %v3089_v39 = vcombine.high %v179_v34, %v187_v37  ;;  %v194_v44 = vld [vmem:[%s4280_s13 + $0x80] sm:$0xff]  ;;  %v195_v47 = vld [vmem:[%s4280_s13 + $0x88] sm:$0xff]  ;;  %v4060_v0 = vld [vmem:[%s4924_s1 + $0x1d0] sm:$0xff]  }
  0x14   : > { %3457 = vmatpush3.bf16.msra.mxu0 %v4032_v14  ;;  %2105 = vmatprep.mubr.bf16.mxu0 %v3087_v36  ;;  %v202_v45 = vld [vmem:[%s4280_s13 + $0xc0] sm:$0xff]  ;;  %v203_v48 = vld [vmem:[%s4280_s13 + $0xc8] sm:$0xff]  ;;  %v4061_v1 = vld [vmem:[%s4924_s1 + $0x190] sm:$0xff]  }
  0x15   : > { %3527 = vmatpush3.bf16.msra.mxu1 %v4033_v15  ;;  %3458 = vmatprep.subr.bf16.mxu0 %v4034_v16  ;;  %v3103_v46 = vcombine.high %v194_v44, %v202_v45  ;;  %v3105_v49 = vcombine.high %v195_v47, %v203_v48  ;;  %v4054_v50 = vld [vmem:[%s4924_s1 + $0x148] sm:$0xff]   ;;  %v3102_v51 = vcombine.low %v194_v44, %v202_v45  ;;  %v210_v56 = vld [vmem:[%s4280_s13 + $0x100] sm:$0xff]  ;;  %v4062_v10 = vld [vmem:[%s4924_s1 + $0x158] sm:$0xff]  }
  0x16   : > { %3528 = vmatprep.subr.bf16.mxu1 %v4035_v17  ;;  %2210 = vmatprep.mubr.bf16.mxu1 %v3089_v39  ;;  %v4055_v52 = vld [vmem:[%s4924_s1 + $0x108] sm:$0xff]   ;;  %v3104_v53 = vcombine.low %v195_v47, %v203_v48  ;;  %v218_v57 = vld [vmem:[%s4280_s13 + $0x140] sm:$0xff]  ;;  %v4063_v11 = vld [vmem:[%s4924_s1 + $0x118] sm:$0xff]  }
  0x17   : > { %v4056_v54 = vld [vmem:[%s4924_s1 + $0x1c8] sm:$0xff]   ;;  %v3119_v60 = vcombine.high %v210_v56, %v218_v57  ;;  %v3118_v2 = vcombine.low %v210_v56, %v218_v57  ;;  %v226_v3 = vld [vmem:[%s4280_s13 + $0x180] sm:$0xff]  ;;  %v4064_v12 = vld [vmem:[%s4924_s1 + $0x1d8] sm:$0xff]  }
  0x18   : > { %3459 = vmatpush3.bf16.msra.mxu0 %v4036_v18  ;;  %v4057_v55 = vld [vmem:[%s4924_s1 + $0x188] sm:$0xff]   ;;  %v234_v4 = vld [vmem:[%s4280_s13 + $0x1c0] sm:$0xff]  ;;  %v4065_v13 = vld [vmem:[%s4924_s1 + $0x198] sm:$0xff]  }
  0x19   : > { %3529 = vmatpush3.bf16.msra.mxu1 %v4037_v19  ;;  %3460 = vmatprep.subr.bf16.mxu0 %v4038_v20  ;;  %v211_v58 = vld [vmem:[%s4280_s13 + $0x108] sm:$0xff]  ;;  %v3135_v7 = vcombine.high %v226_v3, %v234_v4  ;;  %v242_v14 = vld [vmem:[%s4280_s13 + $0x200] sm:$0xff]  ;;  %v3134_v19 = vcombine.low %v226_v3, %v234_v4  ;;  %v4078_v47 = vld [vmem:[%s4924_s1 + $0x178] sm:$0xff]  }
  0x1a   : > { %3530 = vmatprep.subr.bf16.mxu1 %v4039_v21  ;;  %v219_v59 = vld [vmem:[%s4280_s13 + $0x148] sm:$0xff]  ;;  %v250_v15 = vld [vmem:[%s4280_s13 + $0x240] sm:$0xff] }
  0x1b   : > { %v3121_v61 = vcombine.high %v211_v58, %v219_v59  ;;  %v227_v5 = vld [vmem:[%s4280_s13 + $0x188] sm:$0xff]  ;;  %v3120_v6 = vcombine.low %v211_v58, %v219_v59  ;;  %v4066_v18 = vld [vmem:[%s4924_s1 + $0x160] sm:$0xff]   ;;  %v3150_v32 = vcombine.low %v242_v14, %v250_v15 }
  0x1c   : > { %3461 = vmatpush3.bf16.msra.mxu0 %v4040_v22  ;;  %v235_v8 = vld [vmem:[%s4280_s13 + $0x1c8] sm:$0xff]  ;;  %v4067_v20 = vld [vmem:[%s4924_s1 + $0x120] sm:$0xff]   ;;  %v3151_v22 = vcombine.high %v242_v14, %v250_v15 }
  0x1d   : > { %3531 = vmatpush3.bf16.msra.mxu1 %v4041_v23  ;;  %3462 = vmatprep.subr.bf16.mxu0 %v4042_v24  ;;  %v3137_v9 = vcombine.high %v227_v5, %v235_v8  ;;  %v243_v16 = vld [vmem:[%s4280_s13 + $0x208] sm:$0xff]  ;;  %v3136_v21 = vcombine.low %v227_v5, %v235_v8  ;;  %v4068_v23 = vld [vmem:[%s4924_s1 + $0x1e0] sm:$0xff]   ;;  %v180_v8 = vld [vmem:[%s4280_s13 + $0x10] sm:$0xff] }
  0x1e   : > { %3532 = vmatprep.subr.bf16.mxu1 %v4043_v25  ;;  %v251_v17 = vld [vmem:[%s4280_s13 + $0x248] sm:$0xff]  ;;  %v4069_v25 = vld [vmem:[%s4924_s1 + $0x1a0] sm:$0xff]  }
  0x1f   : > { %v3153_v24 = vcombine.high %v243_v16, %v251_v17  ;;  %v4072_v33 = vld [vmem:[%s4924_s1 + $0x1e8] sm:$0xff]   ;;  %v3152_v34 = vcombine.low %v243_v16, %v251_v17  ;;  %v274_v39 = vld [vmem:[%s4280_s13 + $0x300] sm:$0xff]  ;;  %v196_v16 = vld [vmem:[%s4280_s13 + $0x90] sm:$0xff] }
  0x20   : > { %3463 = vmatpush3.bf16.msra.mxu0 %v4044_v26  ;;  %v4070_v26 = vld [vmem:[%s4924_s1 + $0x168] sm:$0xff]   ;;  %v4082_v57 = vld [vmem:[%s4924_s1 + $0x240] sm:$0xff]   ;;  %v204_v17 = vld [vmem:[%s4280_s13 + $0xd0] sm:$0xff] }
  0x21   : > { %3533 = vmatpush3.bf16.msra.mxu1 %v4045_v27  ;;  %3464 = vmatprep.subr.bf16.mxu0 %v4046_v28  ;;  %v4071_v27 = vld [vmem:[%s4924_s1 + $0x128] sm:$0xff]   ;;  %v258_v28 = vld [vmem:[%s4280_s13 + $0x280] sm:$0xff] }
  0x22   : > { %3534 = vmatprep.subr.bf16.mxu1 %v4047_v29  ;;  %v266_v29 = vld [vmem:[%s4280_s13 + $0x2c0] sm:$0xff]  ;;  %v4073_v36 = vld [vmem:[%s4924_s1 + $0x1a8] sm:$0xff]  }
  0x23   : > { %v275_v44 = vld [vmem:[%s4280_s13 + $0x308] sm:$0xff] }
  0x24   : > { %3465 = vmatpush3.bf16.msra.mxu0 %v4048_v30  ;;  %v259_v30 = vld [vmem:[%s4280_s13 + $0x288] sm:$0xff] }
  0x25   : > { %3535 = vmatpush3.bf16.msra.mxu1 %v4049_v31  ;;  %3590 = vmatprep.subr.bf16.mxu0 %v4050_v40  ;;  %v267_v31 = vld [vmem:[%s4280_s13 + $0x2c8] sm:$0xff]  ;;  %v4075_v40 = vld [vmem:[%s4924_s1 + $0x130] sm:$0xff]  }
  0x26   : > { %3660 = vmatprep.subr.bf16.mxu1 %v4052_v42  ;;  %v3169_v37 = vcombine.high %v259_v30, %v267_v31  ;;  %v282_v42 = vld [vmem:[%s4280_s13 + $0x340] sm:$0xff]  ;;  %v283_v45 = vld [vmem:[%s4280_s13 + $0x348] sm:$0xff]  ;;  %v3168_v48 = vcombine.low %v259_v30, %v267_v31  ;;  %v212_v30 = vld [vmem:[%s4280_s13 + $0x110] sm:$0xff] }
  0x27   : > { %2106 = vmatmul.mubr.bf16.vlgmr.msra.gmra.mrb[0].mxu0 %v3086_v35  ;;  %v3167_v35 = vcombine.high %v258_v28, %v266_v29  ;;  %v291_v56 = vld [vmem:[%s4280_s13 + $0x388] sm:$0xff]  ;;  %v3182_v59 = vcombine.low %v274_v39, %v282_v42  ;;  %v220_v31 = vld [vmem:[%s4280_s13 + $0x150] sm:$0xff] }
  0x28   : > { %2211 = vmatmul.mubr.bf16.vlgmr.msra.gmra.mrb[0].mxu1 %v3088_v38  ;;  %3591 = vmatpush3.bf16.msra.mxu0 %v4051_v41  ;;  %v4074_v38 = vld [vmem:[%s4924_s1 + $0x170] sm:$0xff]   ;;  %v299_v58 = vld [vmem:[%s4280_s13 + $0x3c8] sm:$0xff] }
  0x29   : > { %3661 = vmatpush3.bf16.msra.mxu1 %v4053_v43  ;;  %2113 = vmatprep.mubr.bf16.mxu0 %v3103_v46  ;;  %v4076_v41 = vld [vmem:[%s4924_s1 + $0x1f0] sm:$0xff]   ;;  %v3166_v46 = vcombine.low %v258_v28, %v266_v29  ;;  %v315_v3 = vld [vmem:[%s4280_s13 + $0x448] sm:$0xff]  ;;  %v3200_v5 = vcombine.low %v291_v56, %v299_v58 }
  0x2a   : > { %2218 = vmatprep.mubr.bf16.mxu1 %v3105_v49  ;;  %3592 = vmatprep.subr.bf16.mxu0 %v4054_v50  ;;  %v4077_v43 = vld [vmem:[%s4924_s1 + $0x1b0] sm:$0xff]   ;;  %v3183_v49 = vcombine.high %v274_v39, %v282_v42  ;;  %v4079_v50 = vld [vmem:[%s4924_s1 + $0x138] sm:$0xff]   ;;  %v4088_v28 = vld [vmem:[%s4924_s1 + $0x2c8] sm:$0xff]  }
  0x2b   : > { %3662 = vmatprep.subr.bf16.mxu1 %v4056_v54  ;;  %v290_v54 = vld [vmem:[%s4280_s13 + $0x380] sm:$0xff]  ;;  %v4089_v29 = vld [vmem:[%s4924_s1 + $0x288] sm:$0xff]   ;;  %v4094_v42 = vld [vmem:[%s4924_s1 + $0x258] sm:$0xff]  }
  0x2c   : > { %3593 = vmatpush3.bf16.msra.mxu0 %v4055_v52  ;;  %v4080_v52 = vld [vmem:[%s4924_s1 + $0x1f8] sm:$0xff]  }
  0x2d   : > { %3663 = vmatpush3.bf16.msra.mxu1 %v4057_v55  ;;  %3594 = vmatprep.subr.bf16.mxu0 %v4058_v62  ;;  %v298_v55 = vld [vmem:[%s4280_s13 + $0x3c0] sm:$0xff] }
  0x2e   : > { %3664 = vmatprep.subr.bf16.mxu1 %v4060_v0  ;;  %v3199_v62 = vcombine.high %v290_v54, %v298_v55  ;;  %v306_v0 = vld [vmem:[%s4280_s13 + $0x400] sm:$0xff]  ;;  %v3198_v4 = vcombine.low %v290_v54, %v298_v55 }
  0x2f   : > { %2114 = vmatmul.mubr.bf16.gmra.mrb[4].mxu0 %v3102_v51  ;;  %v3185_v51 = vcombine.high %v275_v44, %v283_v45  ;;  %v4099_v55 = vld [vmem:[%s4924_s1 + $0x220] sm:$0xff]  }
  0x30   : > { %2219 = vmatmul.mubr.bf16.gmra.mrb[4].mxu1 %v3104_v53  ;;  %2121 = vmatprep.mubr.bf16.mxu0 %v3119_v60  ;;  %v4081_v53 = vld [vmem:[%s4924_s1 + $0x1b8] sm:$0xff]   ;;  %v4084_v60 = vld [vmem:[%s4924_s1 + $0x2c0] sm:$0xff]  }
  0x31   : > { %2226 = vmatprep.mubr.bf16.mxu1 %v3121_v61  ;;  %3595 = vmatpush3.bf16.msra.mxu0 %v4059_v63  ;;  %v3184_v61 = vcombine.low %v275_v44, %v283_v45  ;;  %v3201_v63 = vcombine.high %v291_v56, %v299_v58  ;;  %v236_v44 = vld [vmem:[%s4280_s13 + $0x1d0] sm:$0xff]  ;;  %v4096_v45 = vld [vmem:[%s4924_s1 + $0x2d8] sm:$0xff]   ;;  %v4102_v58 = vld [vmem:[%s4924_s1 + $0x268] sm:$0xff]  }
  0x32   : > { %3665 = vmatpush3.bf16.msra.mxu1 %v4061_v1  ;;  %3596 = vmatprep.subr.bf16.mxu0 %v4062_v10  ;;  %v314_v1 = vld [vmem:[%s4280_s13 + $0x440] sm:$0xff]  ;;  %v181_v10 = vld [vmem:[%s4280_s13 + $0x18] sm:$0xff] }
  0x33   : > { %3666 = vmatprep.subr.bf16.mxu1 %v4064_v12  ;;  %v3214_v12 = vcombine.low %v306_v0, %v314_v1 }
  0x35   : > { %3597 = vmatpush3.bf16.msra.mxu0 %v4063_v11  ;;  %v189_v11 = vld [vmem:[%s4280_s13 + $0x58] sm:$0xff] }
  0x36   : > { %3667 = vmatpush3.bf16.msra.mxu1 %v4065_v13  ;;  %3598 = vmatprep.subr.bf16.mxu0 %v4066_v18  ;;  %v3093_v15 = vcombine.high %v181_v10, %v189_v11  ;;  %v197_v18 = vld [vmem:[%s4280_s13 + $0x98] sm:$0xff] }
  0x37   : > { %2122 = vmatmul.mubr.bf16.gmra.mrb[8].mxu0 %v3118_v2  ;;  %3668 = vmatprep.subr.bf16.mxu1 %v4068_v23  ;;  %v307_v2 = vld [vmem:[%s4280_s13 + $0x408] sm:$0xff]  ;;  %v4085_v23 = vld [vmem:[%s4924_s1 + $0x280] sm:$0xff]  }
  0x38   : > { %2227 = vmatmul.mubr.bf16.gmra.mrb[8].mxu1 %v3120_v6  ;;  %2129 = vmatprep.mubr.bf16.mxu0 %v3135_v7  ;;  %v3215_v6 = vcombine.high %v306_v0, %v314_v1  ;;  %v3217_v7 = vcombine.high %v307_v2, %v315_v3  ;;  %v3216_v13 = vcombine.low %v307_v2, %v315_v3  ;;  %v4103_v0 = vld [vmem:[%s4924_s1 + $0x228] sm:$0xff]   ;;  %v4106_v2 = vld [vmem:[%s4924_s1 + $0x270] sm:$0xff]  }
  0x39   : > { %2234 = vmatprep.mubr.bf16.mxu1 %v3137_v9  ;;  %3599 = vmatpush3.bf16.msra.mxu0 %v4067_v20  ;;  %v188_v9 = vld [vmem:[%s4280_s13 + $0x50] sm:$0xff]  ;;  %v205_v20 = vld [vmem:[%s4280_s13 + $0xd8] sm:$0xff]  ;;  %v4105_v1 = vld [vmem:[%s4924_s1 + $0x2a8] sm:$0xff]  }
  0x3a   : > { %3669 = vmatpush3.bf16.msra.mxu1 %v4069_v25  ;;  %3600 = vmatprep.subr.bf16.mxu0 %v4070_v26  ;;  %v3091_v14 = vcombine.high %v180_v8, %v188_v9  ;;  %v4086_v25 = vld [vmem:[%s4924_s1 + $0x248] sm:$0xff]   ;;  %v3109_v26 = vcombine.high %v197_v18, %v205_v20 }
  0x3b   : > { %3670 = vmatprep.subr.bf16.mxu1 %v4072_v33  ;;  %v4090_v33 = vld [vmem:[%s4924_s1 + $0x250] sm:$0xff]  }
  0x3d   : > { %3601 = vmatpush3.bf16.msra.mxu0 %v4071_v27  ;;  %v4087_v27 = vld [vmem:[%s4924_s1 + $0x208] sm:$0xff]  }
  0x3e   : > { %3671 = vmatpush3.bf16.msra.mxu1 %v4073_v36  ;;  %3602 = vmatprep.subr.bf16.mxu0 %v4074_v38  ;;  %v3106_v36 = vcombine.low %v196_v16, %v204_v17  ;;  %v3123_v38 = vcombine.high %v212_v30, %v220_v31 }
  0x3f   : > { %2130 = vmatmul.mubr.bf16.gmra.mrb[12].mxu0 %v3134_v19  ;;  %3672 = vmatprep.subr.bf16.mxu1 %v4076_v41  ;;  %v3090_v19 = vcombine.low %v180_v8, %v188_v9  ;;  %v4093_v41 = vld [vmem:[%s4924_s1 + $0x290] sm:$0xff]  }
  0x40   : > { %2235 = vmatmul.mubr.bf16.gmra.mrb[12].mxu1 %v3136_v21  ;;  %2137 = vmatprep.mubr.bf16.mxu0 %v3151_v22  ;;  %v3092_v21 = vcombine.low %v181_v10, %v189_v11  ;;  %v4083_v22 = vld [vmem:[%s4924_s1 + $0x200] sm:$0xff]   ;;  %v4107_v8 = vld [vmem:[%s4924_s1 + $0x230] sm:$0xff]   ;;  %v4110_v10 = vld [vmem:[%s4924_s1 + $0x278] sm:$0xff]  }
  0x41   : > { %2242 = vmatprep.mubr.bf16.mxu1 %v3153_v24  ;;  %3603 = vmatpush3.bf16.msra.mxu0 %v4075_v40  ;;  %v3107_v24 = vcombine.high %v196_v16, %v204_v17  ;;  %v4091_v40 = vld [vmem:[%s4924_s1 + $0x210] sm:$0xff]   ;;  %v4111_v16 = vld [vmem:[%s4924_s1 + $0x238] sm:$0xff]  }
  0x42   : > { %3673 = vmatpush3.bf16.msra.mxu1 %v4077_v43  ;;  %3604 = vmatprep.subr.bf16.mxu0 %v4078_v47  ;;  %v228_v43 = vld [vmem:[%s4280_s13 + $0x190] sm:$0xff]  ;;  %v237_v47 = vld [vmem:[%s4280_s13 + $0x1d8] sm:$0xff] }
  0x43   : > { %3674 = vmatprep.subr.bf16.mxu1 %v4080_v52  ;;  %v4100_v52 = vld [vmem:[%s4924_s1 + $0x2e0] sm:$0xff]   ;;  %v3139_v54 = vcombine.high %v228_v43, %v236_v44  ;;  %v3138_v3 = vcombine.low %v228_v43, %v236_v44  ;;  %v4109_v9 = vld [vmem:[%s4924_s1 + $0x2b0] sm:$0xff]   ;;  %v4113_v17 = vld [vmem:[%s4924_s1 + $0x2b8] sm:$0xff]  }
  0x44   : > { %v260_v11 = vld [vmem:[%s4280_s13 + $0x290] sm:$0xff]  ;;  %v317_v43 = vld [vmem:[%s4280_s13 + $0x458] sm:$0xff] }
  0x45   : > { %3605 = vmatpush3.bf16.msra.mxu0 %v4079_v50  ;;  %v4098_v50 = vld [vmem:[%s4924_s1 + $0x260] sm:$0xff]  }
  0x46   : > { %3675 = vmatpush3.bf16.msra.mxu1 %v4081_v53  ;;  %3730 = vmatprep.subr.bf16.mxu0 %v4082_v57  ;;  %v4101_v57 = vld [vmem:[%s4924_s1 + $0x2a0] sm:$0xff]  }
  0x47   : > { %2138 = vmatmul.mubr.bf16.gmra.mrb[16].mxu0 %v3150_v32  ;;  %3800 = vmatprep.subr.bf16.mxu1 %v4084_v60  ;;  %v213_v32 = vld [vmem:[%s4280_s13 + $0x118] sm:$0xff]  ;;  %v4104_v60 = vld [vmem:[%s4924_s1 + $0x2e8] sm:$0xff]  }
  0x48   : > { %2243 = vmatmul.mubr.bf16.gmra.mrb[16].mxu1 %v3152_v34  ;;  %2145 = vmatprep.mubr.bf16.mxu0 %v3167_v35  ;;  %v221_v34 = vld [vmem:[%s4280_s13 + $0x158] sm:$0xff]  ;;  %v4092_v35 = vld [vmem:[%s4924_s1 + $0x2d0] sm:$0xff]  }
  0x49   : > { %2250 = vmatprep.mubr.bf16.mxu1 %v3169_v37  ;;  %v3108_v37 = vcombine.low %v197_v18, %v205_v20  ;;  %v3125_v39 = vcombine.high %v213_v32, %v221_v34  ;;  %v3124_v53 = vcombine.low %v213_v32, %v221_v34  ;;  %v4114_v18 = vld [vmem:[%s4924_s1 + $0x340] sm:$0xff]   ;;  %v292_v32 = vld [vmem:[%s4280_s13 + $0x390] sm:$0xff]  ;;  %v293_v34 = vld [vmem:[%s4280_s13 + $0x398] sm:$0xff] }
  0x4a   : > { %v4116_v20 = vld [vmem:[%s4924_s1 + $0x3c0] sm:$0xff]  }
  0x4f   : > { %2146 = vmatmul.mubr.bf16.gmra.mrb[20].mxu0 %v3166_v46  ;;  %v229_v46 = vld [vmem:[%s4280_s13 + $0x198] sm:$0xff] }
  0x50   : > { %2251 = vmatmul.mubr.bf16.gmra.mrb[20].mxu1 %v3168_v48  ;;  %2153 = vmatprep.mubr.bf16.mxu0 %v3183_v49  ;;  %v4095_v48 = vld [vmem:[%s4924_s1 + $0x218] sm:$0xff]   ;;  %v3141_v56 = vcombine.high %v229_v46, %v237_v47 }
  0x51   : > { %2258 = vmatprep.mubr.bf16.mxu1 %v3185_v51  ;;  %v4097_v49 = vld [vmem:[%s4924_s1 + $0x298] sm:$0xff]   ;;  %v3122_v51 = vcombine.low %v212_v30, %v220_v31 }
  0x57   : > { %2154 = vmatmul.mubr.bf16.gmra.mrb[24].mxu0 %v3182_v59  ;;  %v244_v59 = vld [vmem:[%s4280_s13 + $0x210] sm:$0xff] }
  0x58   : > { %2259 = vmatmul.mubr.bf16.gmra.mrb[24].mxu1 %v3184_v61  ;;  %2161 = vmatprep.mubr.bf16.mxu0 %v3199_v62  ;;  %v252_v61 = vld [vmem:[%s4280_s13 + $0x250] sm:$0xff]  ;;  %v245_v62 = vld [vmem:[%s4280_s13 + $0x218] sm:$0xff] }
  0x59   : > { %2266 = vmatprep.mubr.bf16.mxu1 %v3201_v63  ;;  %v253_v63 = vld [vmem:[%s4280_s13 + $0x258] sm:$0xff] }
  0x5f   : > { %2162 = vmatmul.mubr.bf16.gmra.mrb[28].mxu0 %v3198_v4  ;;  %v4108_v4 = vld [vmem:[%s4924_s1 + $0x2f0] sm:$0xff]  }
  0x60   : > { %2267 = vmatmul.mubr.bf16.gmra.mrb[28].mxu1 %v3200_v5  ;;  %2169 = vmatprep.mubr.bf16.mxu0 %v3215_v6  ;;  %v3140_v5 = vcombine.low %v229_v46, %v237_v47  ;;  %v3155_v6 = vcombine.high %v244_v59, %v252_v61 }
  0x61   : > { %2274 = vmatprep.mubr.bf16.mxu1 %v3217_v7  ;;  %v3157_v7 = vcombine.high %v245_v62, %v253_v63 }
  0x67   : > { %2170 = vmatmul.mubr.bf16.gmra.mrb[32].mxu0 %v3214_v12  ;;  %v268_v12 = vld [vmem:[%s4280_s13 + $0x2d0] sm:$0xff] }
  0x68   : > { %2275 = vmatmul.mubr.bf16.gmra.mrb[32].mxu1 %v3216_v13  ;;  %2315 = vmatprep.mubr.bf16.mxu0 %v3091_v14  ;;  %v4112_v13 = vld [vmem:[%s4924_s1 + $0x2f8] sm:$0xff]  }
  0x69   : > { %2420 = vmatprep.mubr.bf16.mxu1 %v3093_v15  ;;  %v261_v14 = vld [vmem:[%s4280_s13 + $0x298] sm:$0xff] }
  0x6a   : > { %v269_v15 = vld [vmem:[%s4280_s13 + $0x2d8] sm:$0xff] }
  0x6f   : > { %2316 = vmatmul.mubr.bf16.vlgmr.msra.gmra.mrb[36].mxu0 %v3090_v19  ;;  %v3154_v19 = vcombine.low %v244_v59, %v252_v61  ;;  %v199_v59 = vld [vmem:[%s4280_s13 + $0xa8] sm:$0xff] }
  0x70   : > { %2421 = vmatmul.mubr.bf16.vlgmr.msra.gmra.mrb[36].mxu1 %v3092_v21  ;;  %3731 = vmatpush3.bf16.msra.mxu0 %v4083_v22  ;;  %v3156_v21 = vcombine.low %v245_v62, %v253_v63  ;;  %v3171_v22 = vcombine.high %v260_v11, %v268_v12  ;;  %v4115_v62 = vld [vmem:[%s4924_s1 + $0x300] sm:$0xff]  }
  0x71   : > { %3801 = vmatpush3.bf16.msra.mxu1 %v4085_v23  ;;  %2323 = vmatprep.mubr.bf16.mxu0 %v3107_v24  ;;  %v3173_v23 = vcombine.high %v261_v14, %v269_v15  ;;  %v276_v24 = vld [vmem:[%s4280_s13 + $0x310] sm:$0xff]  ;;  %v4117_v63 = vld [vmem:[%s4924_s1 + $0x380] sm:$0xff]  }
  0x72   : > { %2428 = vmatprep.mubr.bf16.mxu1 %v3109_v26  ;;  %3732 = vmatprep.subr.bf16.mxu0 %v4086_v25  ;;  %v284_v25 = vld [vmem:[%s4280_s13 + $0x350] sm:$0xff]  ;;  %v277_v26 = vld [vmem:[%s4280_s13 + $0x318] sm:$0xff] }
  0x73   : > { %3802 = vmatprep.subr.bf16.mxu1 %v4088_v28  ;;  %v3170_v28 = vcombine.low %v260_v11, %v268_v12  ;;  %v3187_v30 = vcombine.high %v276_v24, %v284_v25  ;;  %v4124_v11 = vld [vmem:[%s4924_s1 + $0x3d0] sm:$0xff]  }
  0x74   : > { %3733 = vmatpush3.bf16.msra.mxu0 %v4087_v27  ;;  %v285_v27 = vld [vmem:[%s4280_s13 + $0x358] sm:$0xff] }
  0x75   : > { %3803 = vmatpush3.bf16.msra.mxu1 %v4089_v29  ;;  %3734 = vmatprep.subr.bf16.mxu0 %v4090_v33  ;;  %v3172_v29 = vcombine.low %v261_v14, %v269_v15  ;;  %v3189_v31 = vcombine.high %v277_v26, %v285_v27  ;;  %v300_v33 = vld [vmem:[%s4280_s13 + $0x3d0] sm:$0xff] }
  0x76   : > { %3804 = vmatprep.subr.bf16.mxu1 %v4092_v35  ;;  %v301_v35 = vld [vmem:[%s4280_s13 + $0x3d8] sm:$0xff]  ;;  %v3202_v44 = vcombine.low %v292_v32, %v300_v33 }
  0x77   : > { %2324 = vmatmul.mubr.bf16.gmra.mrb[40].mxu0 %v3106_v36  ;;  %v3186_v36 = vcombine.low %v276_v24, %v284_v25  ;;  %v239_v24 = vld [vmem:[%s4280_s13 + $0x1e8] sm:$0xff]  ;;  %v4129_v25 = vld [vmem:[%s4924_s1 + $0x398] sm:$0xff]  }
  0x78   : > { %2429 = vmatmul.mubr.bf16.gmra.mrb[40].mxu1 %v3108_v37  ;;  %2331 = vmatprep.mubr.bf16.mxu0 %v3123_v38  ;;  %v3188_v37 = vcombine.low %v277_v26, %v285_v27  ;;  %v3203_v38 = vcombine.high %v292_v32, %v300_v33  ;;  %v4130_v26 = vld [vmem:[%s4924_s1 + $0x360] sm:$0xff]  }
  0x79   : > { %2436 = vmatprep.mubr.bf16.mxu1 %v3125_v39  ;;  %3735 = vmatpush3.bf16.msra.mxu0 %v4091_v40  ;;  %v3205_v39 = vcombine.high %v293_v34, %v301_v35  ;;  %v308_v40 = vld [vmem:[%s4280_s13 + $0x410] sm:$0xff]  ;;  %v4131_v32 = vld [vmem:[%s4924_s1 + $0x320] sm:$0xff]  }
  0x7a   : > { %3805 = vmatpush3.bf16.msra.mxu1 %v4093_v41  ;;  %3736 = vmatprep.subr.bf16.mxu0 %v4094_v42  ;;  %v316_v41 = vld [vmem:[%s4280_s13 + $0x450] sm:$0xff]  ;;  %v309_v42 = vld [vmem:[%s4280_s13 + $0x418] sm:$0xff]  ;;  %v4133_v33 = vld [vmem:[%s4924_s1 + $0x3a0] sm:$0xff]  }
  0x7b   : > { %3806 = vmatprep.subr.bf16.mxu1 %v4096_v45  ;;  %v3204_v45 = vcombine.low %v293_v34, %v301_v35  ;;  %v3219_v46 = vcombine.high %v308_v40, %v316_v41  ;;  %v3221_v47 = vcombine.high %v309_v42, %v317_v43  ;;  %v4134_v34 = vld [vmem:[%s4924_s1 + $0x368] sm:$0xff]  }
  0x7c   : > { %v4136_v35 = vld [vmem:[%s4924_s1 + $0x3e8] sm:$0xff]  }
  0x7d   : > { %3737 = vmatpush3.bf16.msra.mxu0 %v4095_v48  ;;  %v182_v48 = vld [vmem:[%s4280_s13 + $0x20] sm:$0xff] }
  0x7e   : > { %3807 = vmatpush3.bf16.msra.mxu1 %v4097_v49  ;;  %3738 = vmatprep.subr.bf16.mxu0 %v4098_v50  ;;  %v190_v49 = vld [vmem:[%s4280_s13 + $0x60] sm:$0xff]  ;;  %v183_v50 = vld [vmem:[%s4280_s13 + $0x28] sm:$0xff] }
  0x7f   : > { %2332 = vmatmul.mubr.bf16.gmra.mrb[44].mxu0 %v3122_v51  ;;  %3808 = vmatprep.subr.bf16.mxu1 %v4100_v52  ;;  %v191_v51 = vld [vmem:[%s4280_s13 + $0x68] sm:$0xff]  ;;  %v3218_v52 = vcombine.low %v308_v40, %v316_v41 }
  0x80   : > { %2437 = vmatmul.mubr.bf16.gmra.mrb[44].mxu1 %v3124_v53  ;;  %2339 = vmatprep.mubr.bf16.mxu0 %v3139_v54  ;;  %v3220_v53 = vcombine.low %v309_v42, %v317_v43  ;;  %v3095_v54 = vcombine.high %v182_v48, %v190_v49  ;;  %v3096_v61 = vcombine.low %v183_v50, %v191_v51  ;;  %v255_v40 = vld [vmem:[%s4280_s13 + $0x268] sm:$0xff]  ;;  %v4138_v42 = vld [vmem:[%s4924_s1 + $0x370] sm:$0xff]  }
  0x81   : > { %2444 = vmatprep.mubr.bf16.mxu1 %v3141_v56  ;;  %3739 = vmatpush3.bf16.msra.mxu0 %v4099_v55  ;;  %v3097_v55 = vcombine.high %v183_v50, %v191_v51  ;;  %v198_v56 = vld [vmem:[%s4280_s13 + $0xa0] sm:$0xff]  ;;  %v4137_v41 = vld [vmem:[%s4924_s1 + $0x3a8] sm:$0xff]   ;;  %v4142_v50 = vld [vmem:[%s4924_s1 + $0x378] sm:$0xff]  }
  0x82   : > { %3809 = vmatpush3.bf16.msra.mxu1 %v4101_v57  ;;  %3740 = vmatprep.subr.bf16.mxu0 %v4102_v58  ;;  %v206_v57 = vld [vmem:[%s4280_s13 + $0xe0] sm:$0xff]  ;;  %v3094_v58 = vcombine.low %v182_v48, %v190_v49  ;;  %v4139_v48 = vld [vmem:[%s4924_s1 + $0x330] sm:$0xff]   ;;  %v4144_v51 = vld [vmem:[%s4924_s1 + $0x3f8] sm:$0xff]  }
  0x83   : > { %3810 = vmatprep.subr.bf16.mxu1 %v4104_v60  ;;  %v207_v60 = vld [vmem:[%s4280_s13 + $0xe8] sm:$0xff]  ;;  %v3110_v12 = vcombine.low %v198_v56, %v206_v57  ;;  %v4141_v49 = vld [vmem:[%s4924_s1 + $0x3b0] sm:$0xff]  }
  0x85   : > { %3741 = vmatpush3.bf16.msra.mxu0 %v4103_v0  ;;  %v3111_v0 = vcombine.high %v198_v56, %v206_v57  ;;  %v271_v56 = vld [vmem:[%s4280_s13 + $0x2e8] sm:$0xff]  ;;  %v4145_v57 = vld [vmem:[%s4924_s1 + $0x3b8] sm:$0xff]  }
  0x86   : > { %3811 = vmatpush3.bf16.msra.mxu1 %v4105_v1  ;;  %3742 = vmatprep.subr.bf16.mxu0 %v4106_v2  ;;  %v3113_v1 = vcombine.high %v199_v59, %v207_v60  ;;  %v4118_v2 = vld [vmem:[%s4924_s1 + $0x348] sm:$0xff]  }
  0x87   : > { %2340 = vmatmul.mubr.bf16.gmra.mrb[48].mxu0 %v3138_v3  ;;  %3812 = vmatprep.subr.bf16.mxu1 %v4108_v4  ;;  %v4120_v3 = vld [vmem:[%s4924_s1 + $0x3c8] sm:$0xff]  }
  0x88   : > { %2445 = vmatmul.mubr.bf16.gmra.mrb[48].mxu1 %v3140_v5  ;;  %2347 = vmatprep.mubr.bf16.mxu0 %v3155_v6  ;;  %v4119_v4 = vld [vmem:[%s4924_s1 + $0x308] sm:$0xff]   ;;  %v214_v6 = vld [vmem:[%s4280_s13 + $0x120] sm:$0xff] }
  0x89   : > { %2452 = vmatprep.mubr.bf16.mxu1 %v3157_v7  ;;  %3743 = vmatpush3.bf16.msra.mxu0 %v4107_v8  ;;  %v4121_v5 = vld [vmem:[%s4924_s1 + $0x388] sm:$0xff]   ;;  %v222_v7 = vld [vmem:[%s4280_s13 + $0x160] sm:$0xff]  ;;  %v4122_v8 = vld [vmem:[%s4924_s1 + $0x350] sm:$0xff]  }
  0x8a   : > { %3813 = vmatpush3.bf16.msra.mxu1 %v4109_v9  ;;  %3744 = vmatprep.subr.bf16.mxu0 %v4110_v10  ;;  %v215_v9 = vld [vmem:[%s4280_s13 + $0x128] sm:$0xff]  ;;  %v3127_v14 = vcombine.high %v214_v6, %v222_v7  ;;  %v3126_v27 = vcombine.low %v214_v6, %v222_v7  ;;  %v294_v6 = vld [vmem:[%s4280_s13 + $0x3a0] sm:$0xff] }
  0x8b   : > { %3814 = vmatprep.subr.bf16.mxu1 %v4112_v13  ;;  %v223_v10 = vld [vmem:[%s4280_s13 + $0x168] sm:$0xff]  ;;  %v3112_v13 = vcombine.low %v199_v59, %v207_v60  ;;  %v302_v7 = vld [vmem:[%s4280_s13 + $0x3e0] sm:$0xff] }
  0x8c   : > { %v3129_v15 = vcombine.high %v215_v9, %v223_v10 }
  0x8d   : > { %3745 = vmatpush3.bf16.msra.mxu0 %v4111_v16  ;;  %v4123_v16 = vld [vmem:[%s4924_s1 + $0x310] sm:$0xff]  }
  0x8e   : > { %3815 = vmatpush3.bf16.msra.mxu1 %v4113_v17  ;;  %3870 = vmatprep.subr.bf16.mxu0 %v4114_v18  ;;  %v4125_v17 = vld [vmem:[%s4924_s1 + $0x390] sm:$0xff]   ;;  %v4126_v18 = vld [vmem:[%s4924_s1 + $0x358] sm:$0xff]  }
  0x8f   : > { %2348 = vmatmul.mubr.bf16.gmra.mrb[52].mxu0 %v3154_v19  ;;  %3940 = vmatprep.subr.bf16.mxu1 %v4116_v20  ;;  %v4128_v19 = vld [vmem:[%s4924_s1 + $0x3d8] sm:$0xff]   ;;  %v230_v20 = vld [vmem:[%s4280_s13 + $0x1a0] sm:$0xff] }
  0x90   : > { %2453 = vmatmul.mubr.bf16.gmra.mrb[52].mxu1 %v3156_v21  ;;  %2355 = vmatprep.mubr.bf16.mxu0 %v3171_v22  ;;  %v238_v21 = vld [vmem:[%s4280_s13 + $0x1e0] sm:$0xff]  ;;  %v231_v22 = vld [vmem:[%s4280_s13 + $0x1a8] sm:$0xff] }
  0x91   : > { %2460 = vmatprep.mubr.bf16.mxu1 %v3173_v23  ;;  %v4127_v23 = vld [vmem:[%s4924_s1 + $0x318] sm:$0xff]   ;;  %v3142_v43 = vcombine.low %v230_v20, %v238_v21 }
  0x97   : > { %2356 = vmatmul.mubr.bf16.gmra.mrb[56].mxu0 %v3170_v28  ;;  %v4132_v28 = vld [vmem:[%s4924_s1 + $0x3e0] sm:$0xff]  }
  0x98   : > { %2461 = vmatmul.mubr.bf16.gmra.mrb[56].mxu1 %v3172_v29  ;;  %2363 = vmatprep.mubr.bf16.mxu0 %v3187_v30  ;;  %v3128_v29 = vcombine.low %v215_v9, %v223_v10  ;;  %v3143_v30 = vcombine.high %v230_v20, %v238_v21  ;;  %v303_v9 = vld [vmem:[%s4280_s13 + $0x3e8] sm:$0xff] }
  0x99   : > { %2468 = vmatprep.mubr.bf16.mxu1 %v3189_v31  ;;  %v3145_v31 = vcombine.high %v231_v22, %v239_v24 }
  0x9f   : > { %2364 = vmatmul.mubr.bf16.gmra.mrb[60].mxu0 %v3186_v36  ;;  %v246_v36 = vld [vmem:[%s4280_s13 + $0x220] sm:$0xff] }
  0xa0   : > { %2469 = vmatmul.mubr.bf16.gmra.mrb[60].mxu1 %v3188_v37  ;;  %2371 = vmatprep.mubr.bf16.mxu0 %v3203_v38  ;;  %v254_v37 = vld [vmem:[%s4280_s13 + $0x260] sm:$0xff]  ;;  %v247_v38 = vld [vmem:[%s4280_s13 + $0x228] sm:$0xff] }
  0xa1   : > { %2476 = vmatprep.mubr.bf16.mxu1 %v3205_v39  ;;  %v4135_v39 = vld [vmem:[%s4924_s1 + $0x328] sm:$0xff]   ;;  %v3160_v59 = vcombine.low %v247_v38, %v255_v40 }
  0xa7   : > { %2372 = vmatmul.mubr.bf16.gmra.mrb[64].mxu0 %v3202_v44  ;;  %v4140_v44 = vld [vmem:[%s4924_s1 + $0x3f0] sm:$0xff]  }
  0xa8   : > { %2477 = vmatmul.mubr.bf16.gmra.mrb[64].mxu1 %v3204_v45  ;;  %2379 = vmatprep.mubr.bf16.mxu0 %v3219_v46  ;;  %v3144_v45 = vcombine.low %v231_v22, %v239_v24  ;;  %v3159_v46 = vcombine.high %v246_v36, %v254_v37  ;;  %v184_v22 = vld [vmem:[%s4280_s13 + $0x30] sm:$0xff]  ;;  %v185_v24 = vld [vmem:[%s4280_s13 + $0x38] sm:$0xff] }
  0xa9   : > { %2484 = vmatprep.mubr.bf16.mxu1 %v3221_v47  ;;  %v3161_v47 = vcombine.high %v247_v38, %v255_v40 }
  0xaf   : > { %2380 = vmatmul.mubr.bf16.gmra.mrb[68].mxu0 %v3218_v52  ;;  %v262_v52 = vld [vmem:[%s4280_s13 + $0x2a0] sm:$0xff] }
  0xb0   : > { %2485 = vmatmul.mubr.bf16.gmra.mrb[68].mxu1 %v3220_v53  ;;  %2525 = vmatprep.mubr.bf16.mxu0 %v3095_v54  ;;  %v270_v53 = vld [vmem:[%s4280_s13 + $0x2e0] sm:$0xff]  ;;  %v4143_v54 = vld [vmem:[%s4924_s1 + $0x338] sm:$0xff]  }
  0xb1   : > { %2630 = vmatprep.mubr.bf16.mxu1 %v3097_v55  ;;  %v263_v55 = vld [vmem:[%s4280_s13 + $0x2a8] sm:$0xff]  ;;  %v3175_v60 = vcombine.high %v262_v52, %v270_v53 }
  0xb7   : > { %2526 = vmatmul.mubr.bf16.vlgmr.msra.gmra.mrb[72].mxu0 %v3094_v58  ;;  %v3158_v58 = vcombine.low %v246_v36, %v254_v37  ;;  %v4695_v36 = vld [vmem:[%s4925_s2] ss:$0 sm:$0xff] }
  0xb8   : > { %2631 = vmatmul.mubr.bf16.vlgmr.msra.gmra.mrb[72].mxu1 %v3096_v61  ;;  %3871 = vmatpush3.bf16.msra.mxu0 %v4115_v62  ;;  %v3177_v61 = vcombine.high %v263_v55, %v271_v56  ;;  %v278_v62 = vld [vmem:[%s4280_s13 + $0x320] sm:$0xff] }
  0xb9   : > { %3941 = vmatpush3.bf16.msra.mxu1 %v4117_v63  ;;  %2533 = vmatprep.mubr.bf16.mxu0 %v3111_v0  ;;  %v286_v63 = vld [vmem:[%s4280_s13 + $0x360] sm:$0xff]  ;;  %v279_v0 = vld [vmem:[%s4280_s13 + $0x328] sm:$0xff] }
  0xba   : > { %2638 = vmatprep.mubr.bf16.mxu1 %v3113_v1  ;;  %3872 = vmatprep.subr.bf16.mxu0 %v4118_v2  ;;  %v287_v1 = vld [vmem:[%s4280_s13 + $0x368] sm:$0xff]  ;;  %v3174_v2 = vcombine.low %v262_v52, %v270_v53  ;;  %v3190_v10 = vcombine.low %v278_v62, %v286_v63 }
  0xbb   : > { %3942 = vmatprep.subr.bf16.mxu1 %v4120_v3  ;;  %v3176_v3 = vcombine.low %v263_v55, %v271_v56  ;;  %v224_v55 = vld [vmem:[%s4280_s13 + $0x170] sm:$0xff] }
  0xbc   : > { %3873 = vmatpush3.bf16.msra.mxu0 %v4119_v4  ;;  %v3191_v4 = vcombine.high %v278_v62, %v286_v63 }
  0xbd   : > { %3943 = vmatpush3.bf16.msra.mxu1 %v4121_v5  ;;  %3874 = vmatprep.subr.bf16.mxu0 %v4122_v8  ;;  %v3193_v5 = vcombine.high %v279_v0, %v287_v1  ;;  %v295_v8 = vld [vmem:[%s4280_s13 + $0x3a8] sm:$0xff] }
  0xbe   : > { %3944 = vmatprep.subr.bf16.mxu1 %v4124_v11  ;;  %v3192_v11 = vcombine.low %v279_v0, %v287_v1 }
  0xbf   : > { %2534 = vmatmul.mubr.bf16.gmra.mrb[76].mxu0 %v3110_v12  ;;  %v3207_v12 = vcombine.high %v294_v6, %v302_v7 }
  0xc0   : > { %2639 = vmatmul.mubr.bf16.gmra.mrb[76].mxu1 %v3112_v13  ;;  %2541 = vmatprep.mubr.bf16.mxu0 %v3127_v14  ;;  %v3209_v13 = vcombine.high %v295_v8, %v303_v9  ;;  %v310_v14 = vld [vmem:[%s4280_s13 + $0x420] sm:$0xff] }
  0xc1   : > { %2646 = vmatprep.mubr.bf16.mxu1 %v3129_v15  ;;  %3875 = vmatpush3.bf16.msra.mxu0 %v4123_v16  ;;  %v318_v15 = vld [vmem:[%s4280_s13 + $0x460] sm:$0xff]  ;;  %v311_v16 = vld [vmem:[%s4280_s13 + $0x428] sm:$0xff] }
  0xc2   : > { %3945 = vmatpush3.bf16.msra.mxu1 %v4125_v17  ;;  %3876 = vmatprep.subr.bf16.mxu0 %v4126_v18  ;;  %v319_v17 = vld [vmem:[%s4280_s13 + $0x468] sm:$0xff]  ;;  %v3206_v18 = vcombine.low %v294_v6, %v302_v7  ;;  %v3223_v20 = vcombine.high %v310_v14, %v318_v15 }
  0xc3   : > { %3946 = vmatprep.subr.bf16.mxu1 %v4128_v19  ;;  %v3208_v19 = vcombine.low %v295_v8, %v303_v9  ;;  %v3225_v21 = vcombine.high %v311_v16, %v319_v17 }
  0xc5   : > { %3877 = vmatpush3.bf16.msra.mxu0 %v4127_v23  ;;  %v192_v23 = vld [vmem:[%s4280_s13 + $0x70] sm:$0xff] }
  0xc6   : > { %3947 = vmatpush3.bf16.msra.mxu1 %v4129_v25  ;;  %3878 = vmatprep.subr.bf16.mxu0 %v4130_v26  ;;  %v193_v25 = vld [vmem:[%s4280_s13 + $0x78] sm:$0xff]  ;;  %v3222_v26 = vcombine.low %v310_v14, %v318_v15  ;;  %v3098_v38 = vcombine.low %v184_v22, %v192_v23  ;;  %v232_v14 = vld [vmem:[%s4280_s13 + $0x1b0] sm:$0xff] }
  0xc7   : > { %2542 = vmatmul.mubr.bf16.gmra.mrb[80].mxu0 %v3126_v27  ;;  %3948 = vmatprep.subr.bf16.mxu1 %v4132_v28  ;;  %v3224_v27 = vcombine.low %v311_v16, %v319_v17  ;;  %v3099_v28 = vcombine.high %v184_v22, %v192_v23  ;;  %v240_v15 = vld [vmem:[%s4280_s13 + $0x1f0] sm:$0xff] }
  0xc8   : > { %2647 = vmatmul.mubr.bf16.gmra.mrb[80].mxu1 %v3128_v29  ;;  %2549 = vmatprep.mubr.bf16.mxu0 %v3143_v30  ;;  %v3101_v29 = vcombine.high %v185_v24, %v193_v25  ;;  %v200_v30 = vld [vmem:[%s4280_s13 + $0xb0] sm:$0xff] }
  0xc9   : > { %2654 = vmatprep.mubr.bf16.mxu1 %v3145_v31  ;;  %3879 = vmatpush3.bf16.msra.mxu0 %v4131_v32  ;;  %v208_v31 = vld [vmem:[%s4280_s13 + $0xf0] sm:$0xff] }
  0xca   : > { %3949 = vmatpush3.bf16.msra.mxu1 %v4133_v33  ;;  %3880 = vmatprep.subr.bf16.mxu0 %v4134_v34  ;;  %v201_v33 = vld [vmem:[%s4280_s13 + $0xb8] sm:$0xff]  ;;  %v3114_v62 = vcombine.low %v200_v30, %v208_v31 }
  0xcb   : > { %3950 = vmatprep.subr.bf16.mxu1 %v4136_v35  ;;  %v209_v34 = vld [vmem:[%s4280_s13 + $0xf8] sm:$0xff] }
  0xcd   : > { %3881 = vmatpush3.bf16.msra.mxu0 %v4135_v39 }
  0xce   : > { %3951 = vmatpush3.bf16.msra.mxu1 %v4137_v41  ;;  %3882 = vmatprep.subr.bf16.mxu0 %v4138_v42  ;;  %v3100_v42 = vcombine.low %v185_v24, %v193_v25 }
  0xcf   : > { %2550 = vmatmul.mubr.bf16.gmra.mrb[84].mxu0 %v3142_v43  ;;  %3952 = vmatprep.subr.bf16.mxu1 %v4140_v44  ;;  %v3115_v43 = vcombine.high %v200_v30, %v208_v31 }
  0xd0   : > { %2655 = vmatmul.mubr.bf16.gmra.mrb[84].mxu1 %v3144_v45  ;;  %2557 = vmatprep.mubr.bf16.mxu0 %v3159_v46 }
  0xd1   : > { %2662 = vmatprep.mubr.bf16.mxu1 %v3161_v47  ;;  %3883 = vmatpush3.bf16.msra.mxu0 %v4139_v48  ;;  %v3117_v47 = vcombine.high %v201_v33, %v209_v34 }
  0xd2   : > { %3953 = vmatpush3.bf16.msra.mxu1 %v4141_v49  ;;  %3884 = vmatprep.subr.bf16.mxu0 %v4142_v50 }
  0xd3   : > { %3954 = vmatprep.subr.bf16.mxu1 %v4144_v51 }
  0xd5   : > { %3885 = vmatpush3.bf16.msra.mxu0 %v4143_v54  ;;  %v216_v54 = vld [vmem:[%s4280_s13 + $0x130] sm:$0xff] }
  0xd6   : > { %3955 = vmatpush3.bf16.msra.mxu1 %v4145_v57  ;;  %v3130_v22 = vcombine.low %v216_v54, %v224_v55 }
  0xd7   : > { %2558 = vmatmul.mubr.bf16.gmra.mrb[88].mxu0 %v3158_v58  ;;  %v217_v58 = vld [vmem:[%s4280_s13 + $0x138] sm:$0xff] }
  0xd8   : > { %2663 = vmatmul.mubr.bf16.gmra.mrb[88].mxu1 %v3160_v59  ;;  %2565 = vmatprep.mubr.bf16.mxu0 %v3175_v60  ;;  %v225_v59 = vld [vmem:[%s4280_s13 + $0x178] sm:$0xff] }
  0xd9   : > { %2670 = vmatprep.mubr.bf16.mxu1 %v3177_v61  ;;  %v3133_v7 = vcombine.high %v217_v58, %v225_v59 }
  0xdf   : > { %2566 = vmatmul.mubr.bf16.gmra.mrb[92].mxu0 %v3174_v2  ;;  %v3116_v2 = vcombine.low %v201_v33, %v209_v34 }
  0xe0   : > { %2671 = vmatmul.mubr.bf16.gmra.mrb[92].mxu1 %v3176_v3  ;;  %2573 = vmatprep.mubr.bf16.mxu0 %v3191_v4  ;;  %v3131_v3 = vcombine.high %v216_v54, %v224_v55 }
  0xe1   : > { %2678 = vmatprep.mubr.bf16.mxu1 %v3193_v5 }
  0xe7   : > { %2574 = vmatmul.mubr.bf16.gmra.mrb[96].mxu0 %v3190_v10 }
  0xe8   : > { %2679 = vmatmul.mubr.bf16.gmra.mrb[96].mxu1 %v3192_v11  ;;  %2581 = vmatprep.mubr.bf16.mxu0 %v3207_v12 }
  0xe9   : > { %2686 = vmatprep.mubr.bf16.mxu1 %v3209_v13 }
  0xef   : > { %2582 = vmatmul.mubr.bf16.gmra.mrb[100].mxu0 %v3206_v18  ;;  %v233_v18 = vld [vmem:[%s4280_s13 + $0x1b8] sm:$0xff] }
  0xf0   : > { %2687 = vmatmul.mubr.bf16.gmra.mrb[100].mxu1 %v3208_v19  ;;  %2589 = vmatprep.mubr.bf16.mxu0 %v3223_v20  ;;  %v241_v19 = vld [vmem:[%s4280_s13 + $0x1f8] sm:$0xff] }
  0xf1   : > { %2694 = vmatprep.mubr.bf16.mxu1 %v3225_v21  ;;  %v3149_v31 = vcombine.high %v233_v18, %v241_v19 }
  0xf7   : > { %2590 = vmatmul.mubr.bf16.gmra.mrb[104].mxu0 %v3222_v26  ;;  %v3132_v26 = vcombine.low %v217_v58, %v225_v59 }
  0xf8   : > { %2695 = vmatmul.mubr.bf16.gmra.mrb[104].mxu1 %v3224_v27  ;;  %2735 = vmatprep.mubr.bf16.mxu0 %v3099_v28  ;;  %v3147_v27 = vcombine.high %v232_v14, %v240_v15 }
  0xf9   : > { %2840 = vmatprep.mubr.bf16.mxu1 %v3101_v29 }
  0xfa   : > { %v3466_v32 = vpop.f32.mrb[0].mxu0 }
  0xfb   : > { %v3536_v35 = vpop.f32.mrb[0].mxu1  ;;  %v3467_v37 = vpop.f32.mrb[1].mxu0 }
  0xfc   : > { %v3468_v39 = vadd.f32 %v3467_v37, %v3466_v32  ;;  %v3537_v40 = vpop.f32.mrb[1].mxu1  ;;  %v3469_v41 = vpop.f32.mrb[2].mxu0 }
  0xfd   : > { %v3538_v44 = vadd.f32 %v3537_v40, %v3536_v35  ;;  %v3539_v45 = vpop.f32.mrb[2].mxu1  ;;  %v3470_v46 = vpop.f32.mrb[3].mxu0  ;;  %v256_v40 = vld [vmem:[%s4280_s13 + $0x270] sm:$0xff] }
  0xfe   : > { %v2108_v48 = vadd.f32 %v3468_v39, %v4695_v36  ;;  %v3471_v49 = vadd.f32 %v3470_v46, %v3469_v41  ;;  %v3540_v50 = vpop.f32.mrb[3].mxu1  ;;  %v248_v39 = vld [vmem:[%s4280_s13 + $0x230] sm:$0xff] }
  0xff   : > { %v3541_v51 = vadd.f32 %v3540_v50, %v3539_v45  ;;  %2736 = vmatmul.mubr.bf16.vlgmr.msra.gmra.mrb[108].mxu0 %v3098_v38 }
 0x100   : > { %v4698_v52 = vadd.f32 %v3538_v44, %v2108_v48  ;;  %v2111_v53 = vadd.f32 %v3471_v49, %v4695_v36  ;;  %2841 = vmatmul.mubr.bf16.vlgmr.msra.gmra.mrb[108].mxu1 %v3100_v42  ;;  %2743 = vmatprep.mubr.bf16.mxu0 %v3115_v43  ;;  %v249_v43 = vld [vmem:[%s4280_s13 + $0x238] sm:$0xff] }
 0x101   : > { %2848 = vmatprep.mubr.bf16.mxu1 %v3117_v47  ;;  %v257_v44 = vld [vmem:[%s4280_s13 + $0x278] sm:$0xff]  ;;  %v3146_v47 = vcombine.low %v232_v14, %v240_v15 }
 0x102   : > { %v4703_v56 = vadd.f32 %v3541_v51, %v2111_v53  ;;  %v3472_v57 = vpop.f32.mrb[4].mxu0  ;;  %v3148_v51 = vcombine.low %v233_v18, %v241_v19  ;;  %v3163_v53 = vcombine.high %v248_v39, %v256_v40  ;;  %v3165_v58 = vcombine.high %v249_v43, %v257_v44 }
 0x103   : > { %v3542_v60 = vpop.f32.mrb[4].mxu1  ;;  %v3473_v61 = vpop.f32.mrb[5].mxu0  ;;  %v3164_v14 = vcombine.low %v249_v43, %v257_v44 }
 0x104   : > { %v3474_v63 = vadd.f32 %v3473_v61, %v3472_v57  ;;  %v3543_v0 = vpop.f32.mrb[5].mxu1  ;;  %v3475_v1 = vpop.f32.mrb[6].mxu0 }
 0x105   : > { %v3544_v4 = vadd.f32 %v3543_v0, %v3542_v60  ;;  %v3545_v5 = vpop.f32.mrb[6].mxu1  ;;  %v3476_v6 = vpop.f32.mrb[7].mxu0 }
 0x106   : > { %v2116_v8 = vadd.f32 %v3474_v63, %v4695_v36  ;;  %v3477_v9 = vadd.f32 %v3476_v6, %v3475_v1  ;;  %v3546_v10 = vpop.f32.mrb[7].mxu1  ;;  %v264_v1 = vld [vmem:[%s4280_s13 + $0x2b0] sm:$0xff]  ;;  %v273_v6 = vld [vmem:[%s4280_s13 + $0x2f8] sm:$0xff] }
 0x107   : > { %v3547_v11 = vadd.f32 %v3546_v10, %v3545_v5  ;;  %2744 = vmatmul.mubr.bf16.gmra.mrb[112].mxu0 %v3114_v62  ;;  %v265_v5 = vld [vmem:[%s4280_s13 + $0x2b8] sm:$0xff] }
 0x108   : > { %v4708_v12 = vadd.f32 %v3544_v4, %v2116_v8  ;;  %v2119_v13 = vadd.f32 %v3477_v9, %v4695_v36  ;;  %2849 = vmatmul.mubr.bf16.gmra.mrb[112].mxu1 %v3116_v2  ;;  %2751 = vmatprep.mubr.bf16.mxu0 %v3131_v3  ;;  %v272_v2 = vld [vmem:[%s4280_s13 + $0x2f0] sm:$0xff]  ;;  %v3162_v9 = vcombine.low %v248_v39, %v256_v40 }
 0x109   : > { %2856 = vmatprep.mubr.bf16.mxu1 %v3133_v7  ;;  %v3179_v15 = vcombine.high %v264_v1, %v272_v2 }
 0x10a   : > { %v4713_v16 = vadd.f32 %v3547_v11, %v2119_v13  ;;  %v3478_v17 = vpop.f32.mrb[8].mxu0 }
 0x10b   : > { %v3548_v20 = vpop.f32.mrb[8].mxu1  ;;  %v3479_v21 = vpop.f32.mrb[9].mxu0 }
 0x10c   : > { %v3480_v23 = vadd.f32 %v3479_v21, %v3478_v17  ;;  %v3549_v24 = vpop.f32.mrb[9].mxu1  ;;  %v3481_v25 = vpop.f32.mrb[10].mxu0 }
 0x10d   : > { %v3550_v28 = vadd.f32 %v3549_v24, %v3548_v20  ;;  %v3551_v29 = vpop.f32.mrb[10].mxu1  ;;  %v3482_v30 = vpop.f32.mrb[11].mxu0  ;;  %v3181_v20 = vcombine.high %v265_v5, %v273_v6 }
 0x10e   : > { %v2124_v32 = vadd.f32 %v3480_v23, %v4695_v36  ;;  %v3483_v33 = vadd.f32 %v3482_v30, %v3481_v25  ;;  %v3552_v34 = vpop.f32.mrb[11].mxu1 }
 0x10f   : > { %v3553_v35 = vadd.f32 %v3552_v34, %v3551_v29  ;;  %2752 = vmatmul.mubr.bf16.gmra.mrb[116].mxu0 %v3130_v22 }
 0x110   : > { %v4718_v37 = vadd.f32 %v3550_v28, %v2124_v32  ;;  %v2127_v38 = vadd.f32 %v3483_v33, %v4695_v36  ;;  %2857 = vmatmul.mubr.bf16.gmra.mrb[116].mxu1 %v3132_v26  ;;  %2759 = vmatprep.mubr.bf16.mxu0 %v3147_v27  ;;  %v280_v27 = vld [vmem:[%s4280_s13 + $0x330] sm:$0xff]  ;;  %v289_v32 = vld [vmem:[%s4280_s13 + $0x378] sm:$0xff] }
 0x111   : > { %2864 = vmatprep.mubr.bf16.mxu1 %v3149_v31  ;;  %v288_v28 = vld [vmem:[%s4280_s13 + $0x370] sm:$0xff]  ;;  %v281_v31 = vld [vmem:[%s4280_s13 + $0x338] sm:$0xff] }
 0x112   : > { %v4723_v41 = vadd.f32 %v3553_v35, %v2127_v38  ;;  %v3484_v42 = vpop.f32.mrb[12].mxu0  ;;  %v3178_v35 = vcombine.low %v264_v1, %v272_v2  ;;  %v3195_v43 = vcombine.high %v280_v27, %v288_v28  ;;  %v3194_v1 = vcombine.low %v280_v27, %v288_v28 }
 0x113   : > { %v3554_v45 = vpop.f32.mrb[12].mxu1  ;;  %v3485_v46 = vpop.f32.mrb[13].mxu0 }
 0x114   : > { %v3486_v48 = vadd.f32 %v3485_v46, %v3484_v42  ;;  %v3555_v49 = vpop.f32.mrb[13].mxu1  ;;  %v3487_v50 = vpop.f32.mrb[14].mxu0  ;;  %v3180_v42 = vcombine.low %v265_v5, %v273_v6  ;;  %v3196_v6 = vcombine.low %v281_v31, %v289_v32 }
 0x115   : > { %v3556_v54 = vadd.f32 %v3555_v49, %v3554_v45  ;;  %v3557_v55 = vpop.f32.mrb[14].mxu1  ;;  %v3488_v57 = vpop.f32.mrb[15].mxu0 }
 0x116   : > { %v2132_v59 = vadd.f32 %v3486_v48, %v4695_v36  ;;  %v3489_v60 = vadd.f32 %v3488_v57, %v3487_v50  ;;  %v3558_v61 = vpop.f32.mrb[15].mxu1  ;;  %v304_v57 = vld [vmem:[%s4280_s13 + $0x3f0] sm:$0xff] }
 0x117   : > { %v3559_v62 = vadd.f32 %v3558_v61, %v3557_v55  ;;  %2760 = vmatmul.mubr.bf16.gmra.mrb[120].mxu0 %v3146_v47  ;;  %v3197_v47 = vcombine.high %v281_v31, %v289_v32  ;;  %v296_v55 = vld [vmem:[%s4280_s13 + $0x3b0] sm:$0xff]  ;;  %v305_v61 = vld [vmem:[%s4280_s13 + $0x3f8] sm:$0xff] }
 0x118   : > { %v4728_v63 = vadd.f32 %v3556_v54, %v2132_v59  ;;  %v2135_v0 = vadd.f32 %v3489_v60, %v4695_v36  ;;  %2865 = vmatmul.mubr.bf16.gmra.mrb[120].mxu1 %v3148_v51  ;;  %2767 = vmatprep.mubr.bf16.mxu0 %v3163_v53  ;;  %v297_v60 = vld [vmem:[%s4280_s13 + $0x3b8] sm:$0xff] }
 0x119   : > { %2872 = vmatprep.mubr.bf16.mxu1 %v3165_v58 }
 0x11a   : > { %v4733_v3 = vadd.f32 %v3559_v62, %v2135_v0  ;;  %v3490_v4 = vpop.f32.mrb[16].mxu0 }
 0x11b   : > { %v3560_v7 = vpop.f32.mrb[16].mxu1  ;;  %v3491_v8 = vpop.f32.mrb[17].mxu0 }
 0x11c   : > { %v3492_v10 = vadd.f32 %v3491_v8, %v3490_v4  ;;  %v3561_v11 = vpop.f32.mrb[17].mxu1  ;;  %v3493_v13 = vpop.f32.mrb[18].mxu0 }
 0x11d   : > { %v3562_v17 = vadd.f32 %v3561_v11, %v3560_v7  ;;  %v3563_v18 = vpop.f32.mrb[18].mxu1  ;;  %v3494_v19 = vpop.f32.mrb[19].mxu0  ;;  %v3211_v7 = vcombine.high %v296_v55, %v304_v57  ;;  %v3213_v11 = vcombine.high %v297_v60, %v305_v61 }
 0x11e   : > { %v2140_v21 = vadd.f32 %v3492_v10, %v4695_v36  ;;  %v3495_v22 = vadd.f32 %v3494_v19, %v3493_v13  ;;  %v3564_v23 = vpop.f32.mrb[19].mxu1 }
 0x11f   : > { %v3565_v24 = vadd.f32 %v3564_v23, %v3563_v18  ;;  %2768 = vmatmul.mubr.bf16.gmra.mrb[124].mxu0 %v3162_v9 }
 0x120   : > { %v4738_v25 = vadd.f32 %v3562_v17, %v2140_v21  ;;  %v2143_v26 = vadd.f32 %v3495_v22, %v4695_v36  ;;  %2873 = vmatmul.mubr.bf16.gmra.mrb[124].mxu1 %v3164_v14  ;;  %2775 = vmatprep.mubr.bf16.mxu0 %v3179_v15  ;;  %v320_v21 = vld [vmem:[%s4280_s13 + $0x470] sm:$0xff] }
 0x121   : > { %2880 = vmatprep.mubr.bf16.mxu1 %v3181_v20  ;;  %v312_v20 = vld [vmem:[%s4280_s13 + $0x430] sm:$0xff] }
 0x122   : > { %v4743_v29 = vadd.f32 %v3565_v24, %v2143_v26  ;;  %v3496_v30 = vpop.f32.mrb[20].mxu0  ;;  %v313_v24 = vld [vmem:[%s4280_s13 + $0x438] sm:$0xff] }
 0x123   : > { %v3566_v33 = vpop.f32.mrb[20].mxu1  ;;  %v3497_v34 = vpop.f32.mrb[21].mxu0  ;;  %v321_v26 = vld [vmem:[%s4280_s13 + $0x478] sm:$0xff]  ;;  %s3084_s13 = sshll.u32 %s4928_s19, 2 }
 0x124   : > { %v3498_v38 = vadd.f32 %v3497_v34, %v3496_v30  ;;  %v3567_v39 = vpop.f32.mrb[21].mxu1  ;;  %v3499_v40 = vpop.f32.mrb[22].mxu0  ;;  %v3210_v30 = vcombine.low %v296_v55, %v304_v57  ;;  %v3212_v34 = vcombine.low %v297_v60, %v305_v61  ;;  %v3226_v55 = vcombine.low %v312_v20, %v320_v21  ;;  %s4893_s9 = scalar_lea.vmem %s4926_s3, %s3084_s13 }
 0x125   : > { %v3568_v44 = vadd.f32 %v3567_v39, %v3566_v33  ;;  %v3569_v45 = vpop.f32.mrb[22].mxu1  ;;  %v3500_v46 = vpop.f32.mrb[23].mxu0  ;;  %v3228_v61 = vcombine.low %v313_v24, %v321_v26 }
 0x126   : > { %v2148_v48 = vadd.f32 %v3498_v38, %v4695_v36  ;;  %v3501_v49 = vadd.f32 %v3500_v46, %v3499_v40  ;;  %v3570_v50 = vpop.f32.mrb[23].mxu1 }
 0x127   : > { %v3571_v51 = vadd.f32 %v3570_v50, %v3569_v45  ;;  %2776 = vmatmul.mubr.bf16.gmra.mrb[128].mxu0 %v3178_v35  ;;  %v3227_v35 = vcombine.high %v312_v20, %v320_v21 }
 0x128   : > { %v4748_v53 = vadd.f32 %v3568_v44, %v2148_v48  ;;  %v2151_v54 = vadd.f32 %v3501_v49, %v4695_v36  ;;  %2881 = vmatmul.mubr.bf16.gmra.mrb[128].mxu1 %v3180_v42  ;;  %2783 = vmatprep.mubr.bf16.mxu0 %v3195_v43  ;;  %v3229_v42 = vcombine.high %v313_v24, %v321_v26 }
 0x129   : > { %2888 = vmatprep.mubr.bf16.mxu1 %v3197_v47 }
 0x12a   : > { %v4753_v58 = vadd.f32 %v3571_v51, %v2151_v54  ;;  %v3502_v59 = vpop.f32.mrb[24].mxu0 }
 0x12b   : > { %v3572_v62 = vpop.f32.mrb[24].mxu1  ;;  %v3503_v0 = vpop.f32.mrb[25].mxu0 }
 0x12c   : > { %v3504_v2 = vadd.f32 %v3503_v0, %v3502_v59  ;;  %v3573_v4 = vpop.f32.mrb[25].mxu1  ;;  %v3505_v5 = vpop.f32.mrb[26].mxu0 }
 0x12d   : > { %v3574_v8 = vadd.f32 %v3573_v4, %v3572_v62  ;;  %v3575_v9 = vpop.f32.mrb[26].mxu1  ;;  %v3506_v10 = vpop.f32.mrb[27].mxu0 }
 0x12e   : > { %v2156_v13 = vadd.f32 %v3504_v2, %v4695_v36  ;;  %v3507_v14 = vadd.f32 %v3506_v10, %v3505_v5  ;;  %v3576_v15 = vpop.f32.mrb[27].mxu1 }
 0x12f   : > { %v3577_v17 = vadd.f32 %v3576_v15, %v3575_v9  ;;  %2784 = vmatmul.mubr.bf16.gmra.mrb[132].mxu0 %v3194_v1 }
 0x130   : > { %v4758_v18 = vadd.f32 %v3574_v8, %v2156_v13  ;;  %v2159_v19 = vadd.f32 %v3507_v14, %v4695_v36  ;;  %2889 = vmatmul.mubr.bf16.gmra.mrb[132].mxu1 %v3196_v6  ;;  %2791 = vmatprep.mubr.bf16.mxu0 %v3211_v7 }
 0x131   : > { %2896 = vmatprep.mubr.bf16.mxu1 %v3213_v11 }
 0x132   : > { %v4763_v22 = vadd.f32 %v3577_v17, %v2159_v19  ;;  %v3508_v23 = vpop.f32.mrb[28].mxu0 }
 0x133   : > { %v3578_v27 = vpop.f32.mrb[28].mxu1  ;;  %v3509_v28 = vpop.f32.mrb[29].mxu0 }
 0x134   : > { %v3510_v31 = vadd.f32 %v3509_v28, %v3508_v23  ;;  %v3579_v32 = vpop.f32.mrb[29].mxu1  ;;  %v3511_v33 = vpop.f32.mrb[30].mxu0 }
 0x135   : > { %v3580_v38 = vadd.f32 %v3579_v32, %v3578_v27  ;;  %v3581_v39 = vpop.f32.mrb[30].mxu1  ;;  %v3512_v40 = vpop.f32.mrb[31].mxu0 }
 0x136   : > { %v2164_v43 = vadd.f32 %v3510_v31, %v4695_v36  ;;  %v3513_v44 = vadd.f32 %v3512_v40, %v3511_v33  ;;  %v3582_v45 = vpop.f32.mrb[31].mxu1 }
 0x137   : > { %v3583_v46 = vadd.f32 %v3582_v45, %v3581_v39  ;;  %2792 = vmatmul.mubr.bf16.gmra.mrb[136].mxu0 %v3210_v30 }
 0x138   : > { %v4768_v47 = vadd.f32 %v3580_v38, %v2164_v43  ;;  %v2167_v48 = vadd.f32 %v3513_v44, %v4695_v36  ;;  %2897 = vmatmul.mubr.bf16.gmra.mrb[136].mxu1 %v3212_v34  ;;  %2799 = vmatprep.mubr.bf16.mxu0 %v3227_v35 }
 0x139   : > { %2904 = vmatprep.mubr.bf16.mxu1 %v3229_v42 }
 0x13a   : > { %v4771_v49 = vadd.f32 %v3583_v46, %v2167_v48  ;;  %v3514_v50 = vpop.f32.mrb[32].mxu0 }
 0x13b   : > { %v3584_v51 = vpop.f32.mrb[32].mxu1  ;;  %v3515_v54 = vpop.f32.mrb[33].mxu0 }
 0x13c   : > { %v3516_v57 = vadd.f32 %v3515_v54, %v3514_v50  ;;  %v3585_v59 = vpop.f32.mrb[33].mxu1  ;;  %v3517_v60 = vpop.f32.mrb[34].mxu0 }
 0x13d   : > { %v3586_v62 = vadd.f32 %v3585_v59, %v3584_v51  ;;  %v3587_v0 = vpop.f32.mrb[34].mxu1  ;;  %v3518_v1 = vpop.f32.mrb[35].mxu0 }
 0x13e   : > { %v2172_v2 = vadd.f32 %v3516_v57, %v4695_v36  ;;  %v3519_v4 = vadd.f32 %v3518_v1, %v3517_v60  ;;  %v3588_v5 = vpop.f32.mrb[35].mxu1 }
 0x13f   : > { %v3589_v6 = vadd.f32 %v3588_v5, %v3587_v0  ;;  %2800 = vmatmul.mubr.bf16.gmra.mrb[140].mxu0 %v3226_v55 }
 0x140   : > { %v4774_v7 = vadd.f32 %v3586_v62, %v2172_v2  ;;  %v2175_v8 = vadd.f32 %v3519_v4, %v4695_v36  ;;  %2905 = vmatmul.mubr.bf16.gmra.mrb[140].mxu1 %v3228_v61 }
 0x142   : > { %v4777_v9 = vadd.f32 %v3589_v6, %v2175_v8  ;;  %v3606_v10 = vpop.f32.mrb[36].mxu0 }
 0x143   : > { %v3676_v11 = vpop.f32.mrb[36].mxu1  ;;  %v3607_v13 = vpop.f32.mrb[37].mxu0 }
 0x144   : > { %v3608_v14 = vadd.f32 %v3607_v13, %v3606_v10  ;;  %v3677_v15 = vpop.f32.mrb[37].mxu1  ;;  %v3609_v17 = vpop.f32.mrb[38].mxu0 }
 0x145   : > { %v3678_v19 = vadd.f32 %v3677_v15, %v3676_v11  ;;  %v3679_v20 = vpop.f32.mrb[38].mxu1  ;;  %v3610_v21 = vpop.f32.mrb[39].mxu0 }
 0x146   : > { %v2318_v23 = vadd.f32 %v3608_v14, %v4698_v52  ;;  %v3611_v24 = vadd.f32 %v3610_v21, %v3609_v17  ;;  %v3680_v26 = vpop.f32.mrb[39].mxu1 }
 0x147   : > { %v3681_v27 = vadd.f32 %v3680_v26, %v3679_v20 }
 0x148   : > { %v4780_v28 = vadd.f32 %v3678_v19, %v2318_v23  ;;  %v2321_v36 = vadd.f32 %v3611_v24, %v4703_v56 }
 0x14a   : > { %v4783_v30 = vadd.f32 %v3681_v27, %v2321_v36  ;;  %v3612_v31 = vpop.f32.mrb[40].mxu0 }
 0x14b   : > { %v3682_v32 = vpop.f32.mrb[40].mxu1  ;;  %v3613_v33 = vpop.f32.mrb[41].mxu0 }
 0x14c   : > { %v3614_v34 = vadd.f32 %v3613_v33, %v3612_v31  ;;  %v3683_v35 = vpop.f32.mrb[41].mxu1  ;;  %v3615_v38 = vpop.f32.mrb[42].mxu0 }
 0x14d   : > { %v3684_v39 = vadd.f32 %v3683_v35, %v3682_v32  ;;  %v3685_v40 = vpop.f32.mrb[42].mxu1  ;;  %v3616_v42 = vpop.f32.mrb[43].mxu0 }
 0x14e   : > { %v2326_v52 = vadd.f32 %v3614_v34, %v4708_v12  ;;  %v3617_v43 = vadd.f32 %v3616_v42, %v3615_v38  ;;  %v3686_v44 = vpop.f32.mrb[43].mxu1 }
 0x14f   : > { %v3687_v45 = vadd.f32 %v3686_v44, %v3685_v40 }
 0x150   : > { %v4786_v46 = vadd.f32 %v3684_v39, %v2326_v52  ;;  %v2329_v56 = vadd.f32 %v3617_v43, %v4713_v16 }
 0x152   : > { %v4789_v48 = vadd.f32 %v3687_v45, %v2329_v56  ;;  %v3618_v50 = vpop.f32.mrb[44].mxu0 }
 0x153   : > { %v3688_v51 = vpop.f32.mrb[44].mxu1  ;;  %v3619_v54 = vpop.f32.mrb[45].mxu0 }
 0x154   : > { %v3620_v55 = vadd.f32 %v3619_v54, %v3618_v50  ;;  %v3689_v57 = vpop.f32.mrb[45].mxu1  ;;  %v3621_v59 = vpop.f32.mrb[46].mxu0 }
 0x155   : > { %v3690_v60 = vadd.f32 %v3689_v57, %v3688_v51  ;;  %v3691_v61 = vpop.f32.mrb[46].mxu1  ;;  %v3622_v62 = vpop.f32.mrb[47].mxu0 }
 0x156   : > { %v2334_v12 = vadd.f32 %v3620_v55, %v4718_v37  ;;  %v3623_v0 = vadd.f32 %v3622_v62, %v3621_v59  ;;  %v3692_v1 = vpop.f32.mrb[47].mxu1 }
 0x157   : > { %v3693_v2 = vadd.f32 %v3692_v1, %v3691_v61 }
 0x158   : > { %v4792_v4 = vadd.f32 %v3690_v60, %v2334_v12  ;;  %v2337_v16 = vadd.f32 %v3623_v0, %v4723_v41 }
 0x15a   : > { %v4795_v5 = vadd.f32 %v3693_v2, %v2337_v16  ;;  %v3624_v6 = vpop.f32.mrb[48].mxu0 }
 0x15b   : > { %v3694_v8 = vpop.f32.mrb[48].mxu1  ;;  %v3625_v10 = vpop.f32.mrb[49].mxu0 }
 0x15c   : > { %v3626_v11 = vadd.f32 %v3625_v10, %v3624_v6  ;;  %v3695_v13 = vpop.f32.mrb[49].mxu1  ;;  %v3627_v14 = vpop.f32.mrb[50].mxu0 }
 0x15d   : > { %v3696_v15 = vadd.f32 %v3695_v13, %v3694_v8  ;;  %v3697_v17 = vpop.f32.mrb[50].mxu1  ;;  %v3628_v19 = vpop.f32.mrb[51].mxu0 }
 0x15e   : > { %v2342_v37 = vadd.f32 %v3626_v11, %v4728_v63  ;;  %v3629_v20 = vadd.f32 %v3628_v19, %v3627_v14  ;;  %v3698_v21 = vpop.f32.mrb[51].mxu1 }
 0x15f   : > { %v3699_v23 = vadd.f32 %v3698_v21, %v3697_v17 }
 0x160   : > { %v4798_v24 = vadd.f32 %v3696_v15, %v2342_v37  ;;  %v2345_v41 = vadd.f32 %v3629_v20, %v4733_v3 }
 0x162   : > { %v4801_v26 = vadd.f32 %v3699_v23, %v2345_v41  ;;  %v3630_v27 = vpop.f32.mrb[52].mxu0 }
 0x163   : > { %v3700_v36 = vpop.f32.mrb[52].mxu1  ;;  %v3631_v31 = vpop.f32.mrb[53].mxu0 }
 0x164   : > { %v3632_v32 = vadd.f32 %v3631_v31, %v3630_v27  ;;  %v3701_v33 = vpop.f32.mrb[53].mxu1  ;;  %v3633_v34 = vpop.f32.mrb[54].mxu0 }
 0x165   : > { %v3702_v35 = vadd.f32 %v3701_v33, %v3700_v36  ;;  %v3703_v38 = vpop.f32.mrb[54].mxu1  ;;  %v3634_v39 = vpop.f32.mrb[55].mxu0 }
 0x166   : > { %v2350_v63 = vadd.f32 %v3632_v32, %v4738_v25  ;;  %v3635_v40 = vadd.f32 %v3634_v39, %v3633_v34  ;;  %v3704_v42 = vpop.f32.mrb[55].mxu1 }
 0x167   : > { %v3705_v52 = vadd.f32 %v3704_v42, %v3703_v38 }
 0x168   : > { %v4804_v43 = vadd.f32 %v3702_v35, %v2350_v63  ;;  %v2353_v3 = vadd.f32 %v3635_v40, %v4743_v29 }
 0x16a   : > { %v4807_v44 = vadd.f32 %v3705_v52, %v2353_v3  ;;  %v3636_v45 = vpop.f32.mrb[56].mxu0 }
 0x16b   : > { %v3706_v56 = vpop.f32.mrb[56].mxu1  ;;  %v3637_v50 = vpop.f32.mrb[57].mxu0 }
 0x16c   : > { %v3638_v51 = vadd.f32 %v3637_v50, %v3636_v45  ;;  %v3707_v54 = vpop.f32.mrb[57].mxu1  ;;  %v3639_v55 = vpop.f32.mrb[58].mxu0 }
 0x16d   : > { %v3708_v57 = vadd.f32 %v3707_v54, %v3706_v56  ;;  %v3709_v59 = vpop.f32.mrb[58].mxu1  ;;  %v3640_v60 = vpop.f32.mrb[59].mxu0 }
 0x16e   : > { %v2358_v25 = vadd.f32 %v3638_v51, %v4748_v53  ;;  %v3641_v61 = vadd.f32 %v3640_v60, %v3639_v55  ;;  %v3710_v62 = vpop.f32.mrb[59].mxu1 }
 0x16f   : > { %v3711_v12 = vadd.f32 %v3710_v62, %v3709_v59 }
 0x170   : > { %v4810_v0 = vadd.f32 %v3708_v57, %v2358_v25  ;;  %v2361_v29 = vadd.f32 %v3641_v61, %v4753_v58 }
 0x172   : > { %v4813_v1 = vadd.f32 %v3711_v12, %v2361_v29  ;;  %v3642_v2 = vpop.f32.mrb[60].mxu0 }
 0x173   : > { %v3712_v16 = vpop.f32.mrb[60].mxu1  ;;  %v3643_v6 = vpop.f32.mrb[61].mxu0 }
 0x174   : > { %v3644_v8 = vadd.f32 %v3643_v6, %v3642_v2  ;;  %v3713_v10 = vpop.f32.mrb[61].mxu1  ;;  %v3645_v11 = vpop.f32.mrb[62].mxu0 }
 0x175   : > { %v3714_v13 = vadd.f32 %v3713_v10, %v3712_v16  ;;  %v3715_v14 = vpop.f32.mrb[62].mxu1  ;;  %v3646_v15 = vpop.f32.mrb[63].mxu0 }
 0x176   : > { %v2366_v53 = vadd.f32 %v3644_v8, %v4758_v18  ;;  %v3647_v17 = vadd.f32 %v3646_v15, %v3645_v11  ;;  %v3716_v19 = vpop.f32.mrb[63].mxu1 }
 0x177   : > { %v3717_v37 = vadd.f32 %v3716_v19, %v3715_v14 }
 0x178   : > { %v4816_v20 = vadd.f32 %v3714_v13, %v2366_v53  ;;  %v2369_v58 = vadd.f32 %v3647_v17, %v4763_v22 }
 0x17a   : > { %v4819_v21 = vadd.f32 %v3717_v37, %v2369_v58  ;;  %v3648_v23 = vpop.f32.mrb[64].mxu0 }
 0x17b   : > { %v3718_v41 = vpop.f32.mrb[64].mxu1  ;;  %v3649_v27 = vpop.f32.mrb[65].mxu0 }
 0x17c   : > { %v3650_v36 = vadd.f32 %v3649_v27, %v3648_v23  ;;  %v3719_v31 = vpop.f32.mrb[65].mxu1  ;;  %v3651_v32 = vpop.f32.mrb[66].mxu0 }
 0x17d   : > { %v3720_v33 = vadd.f32 %v3719_v31, %v3718_v41  ;;  %v3721_v34 = vpop.f32.mrb[66].mxu1  ;;  %v3652_v35 = vpop.f32.mrb[67].mxu0 }
 0x17e   : > { %v2374_v18 = vadd.f32 %v3650_v36, %v4768_v47  ;;  %v3653_v38 = vadd.f32 %v3652_v35, %v3651_v32  ;;  %v3722_v39 = vpop.f32.mrb[67].mxu1 }
 0x17f   : > { %v3723_v63 = vadd.f32 %v3722_v39, %v3721_v34 }
 0x180   : > { %v4822_v40 = vadd.f32 %v3720_v33, %v2374_v18  ;;  %v2377_v22 = vadd.f32 %v3653_v38, %v4771_v49 }
 0x182   : > { %v4825_v42 = vadd.f32 %v3723_v63, %v2377_v22  ;;  %v3654_v52 = vpop.f32.mrb[68].mxu0 }
 0x183   : > { %v3724_v3 = vpop.f32.mrb[68].mxu1  ;;  %v3655_v45 = vpop.f32.mrb[69].mxu0 }
 0x184   : > { %v3656_v56 = vadd.f32 %v3655_v45, %v3654_v52  ;;  %v3725_v50 = vpop.f32.mrb[69].mxu1  ;;  %v3657_v51 = vpop.f32.mrb[70].mxu0 }
 0x185   : > { %v3726_v54 = vadd.f32 %v3725_v50, %v3724_v3  ;;  %v3727_v55 = vpop.f32.mrb[70].mxu1  ;;  %v3658_v57 = vpop.f32.mrb[71].mxu0 }
 0x186   : > { %v2382_v47 = vadd.f32 %v3656_v56, %v4774_v7  ;;  %v3659_v59 = vadd.f32 %v3658_v57, %v3657_v51  ;;  %v3728_v60 = vpop.f32.mrb[71].mxu1 }
 0x187   : > { %v3729_v25 = vadd.f32 %v3728_v60, %v3727_v55 }
 0x188   : > { %v4828_v61 = vadd.f32 %v3726_v54, %v2382_v47  ;;  %v2385_v49 = vadd.f32 %v3659_v59, %v4777_v9 }
 0x18a   : > { %v4831_v62 = vadd.f32 %v3729_v25, %v2385_v49  ;;  %v3746_v12 = vpop.f32.mrb[72].mxu0 }
 0x18b   : > { %v3816_v29 = vpop.f32.mrb[72].mxu1  ;;  %v3747_v2 = vpop.f32.mrb[73].mxu0 }
 0x18c   : > { %v3748_v16 = vadd.f32 %v3747_v2, %v3746_v12  ;;  %v3817_v6 = vpop.f32.mrb[73].mxu1  ;;  %v3749_v8 = vpop.f32.mrb[74].mxu0 }
 0x18d   : > { %v3818_v10 = vadd.f32 %v3817_v6, %v3816_v29  ;;  %v3819_v11 = vpop.f32.mrb[74].mxu1  ;;  %v3750_v13 = vpop.f32.mrb[75].mxu0 }
 0x18e   : > { %v2528_v7 = vadd.f32 %v3748_v16, %v4780_v28  ;;  %v3751_v14 = vadd.f32 %v3750_v13, %v3749_v8  ;;  %v3820_v15 = vpop.f32.mrb[75].mxu1 }
 0x18f   : > { %v3821_v53 = vadd.f32 %v3820_v15, %v3819_v11 }
 0x190   : > { %v4834_v17 = vadd.f32 %v3818_v10, %v2528_v7  ;;  %v2531_v9 = vadd.f32 %v3751_v14, %v4783_v30 }
 0x192   : > { %v4837_v19 = vadd.f32 %v3821_v53, %v2531_v9  ;;  %v3752_v37 = vpop.f32.mrb[76].mxu0 }
 0x193   : > { %v3822_v58 = vpop.f32.mrb[76].mxu1  ;;  %v3753_v23 = vpop.f32.mrb[77].mxu0 }
 0x194   : > { %v3754_v41 = vadd.f32 %v3753_v23, %v3752_v37  ;;  %v3823_v27 = vpop.f32.mrb[77].mxu1  ;;  %v3755_v36 = vpop.f32.mrb[78].mxu0 }
 0x195   : > { %v3824_v31 = vadd.f32 %v3823_v27, %v3822_v58  ;;  %v3825_v32 = vpop.f32.mrb[78].mxu1  ;;  %v3756_v33 = vpop.f32.mrb[79].mxu0 }
 0x196   : > { %v2536_v28 = vadd.f32 %v3754_v41, %v4786_v46  ;;  %v3757_v34 = vadd.f32 %v3756_v33, %v3755_v36  ;;  %v3826_v35 = vpop.f32.mrb[79].mxu1 }
 0x197   : > { %v3827_v18 = vadd.f32 %v3826_v35, %v3825_v32 }
 0x198   : > { %v4840_v38 = vadd.f32 %v3824_v31, %v2536_v28  ;;  %v2539_v30 = vadd.f32 %v3757_v34, %v4789_v48 }
 0x19a   : > { %v4843_v39 = vadd.f32 %v3827_v18, %v2539_v30  ;;  %v3758_v63 = vpop.f32.mrb[80].mxu0 }
 0x19b   : > { %v3828_v22 = vpop.f32.mrb[80].mxu1  ;;  %v3759_v52 = vpop.f32.mrb[81].mxu0 }
 0x19c   : > { %v3760_v3 = vadd.f32 %v3759_v52, %v3758_v63  ;;  %v3829_v45 = vpop.f32.mrb[81].mxu1  ;;  %v3761_v56 = vpop.f32.mrb[82].mxu0 }
 0x19d   : > { %v3830_v50 = vadd.f32 %v3829_v45, %v3828_v22  ;;  %v3831_v51 = vpop.f32.mrb[82].mxu1  ;;  %v3762_v54 = vpop.f32.mrb[83].mxu0 }
 0x19e   : > { %v2544_v46 = vadd.f32 %v3760_v3, %v4792_v4  ;;  %v3763_v55 = vadd.f32 %v3762_v54, %v3761_v56  ;;  %v3832_v57 = vpop.f32.mrb[83].mxu1 }
 0x19f   : > { %v3833_v47 = vadd.f32 %v3832_v57, %v3831_v51 }
 0x1a0   : > { %v4846_v59 = vadd.f32 %v3830_v50, %v2544_v46  ;;  %v2547_v48 = vadd.f32 %v3763_v55, %v4795_v5 }
 0x1a2   : > { %v4849_v60 = vadd.f32 %v3833_v47, %v2547_v48  ;;  %v3764_v25 = vpop.f32.mrb[84].mxu0 }
 0x1a3   : > { %v3834_v49 = vpop.f32.mrb[84].mxu1  ;;  %v3765_v12 = vpop.f32.mrb[85].mxu0 }
 0x1a4   : > { %v3766_v29 = vadd.f32 %v3765_v12, %v3764_v25  ;;  %v3835_v2 = vpop.f32.mrb[85].mxu1  ;;  %v3767_v16 = vpop.f32.mrb[86].mxu0 }
 0x1a5   : > { %v3836_v6 = vadd.f32 %v3835_v2, %v3834_v49  ;;  %v3837_v8 = vpop.f32.mrb[86].mxu1  ;;  %v3768_v10 = vpop.f32.mrb[87].mxu0 }
 0x1a6   : > { %v2552_v4 = vadd.f32 %v3766_v29, %v4798_v24  ;;  %v3769_v11 = vadd.f32 %v3768_v10, %v3767_v16  ;;  %v3838_v13 = vpop.f32.mrb[87].mxu1 }
 0x1a7   : > { %v3839_v7 = vadd.f32 %v3838_v13, %v3837_v8 }
 0x1a8   : > { %v4852_v14 = vadd.f32 %v3836_v6, %v2552_v4  ;;  %v2555_v5 = vadd.f32 %v3769_v11, %v4801_v26 }
 0x1aa   : > { %v4855_v15 = vadd.f32 %v3839_v7, %v2555_v5  ;;  %v3770_v53 = vpop.f32.mrb[88].mxu0 }
 0x1ab   : > { %v3840_v9 = vpop.f32.mrb[88].mxu1  ;;  %v3771_v37 = vpop.f32.mrb[89].mxu0 }
 0x1ac   : > { %v3772_v58 = vadd.f32 %v3771_v37, %v3770_v53  ;;  %v3841_v23 = vpop.f32.mrb[89].mxu1  ;;  %v3773_v41 = vpop.f32.mrb[90].mxu0 }
 0x1ad   : > { %v3842_v27 = vadd.f32 %v3841_v23, %v3840_v9  ;;  %v3843_v36 = vpop.f32.mrb[90].mxu1  ;;  %v3774_v31 = vpop.f32.mrb[91].mxu0 }
 0x1ae   : > { %v2560_v24 = vadd.f32 %v3772_v58, %v4804_v43  ;;  %v3775_v32 = vadd.f32 %v3774_v31, %v3773_v41  ;;  %v3844_v33 = vpop.f32.mrb[91].mxu1 }
 0x1af   : > { %v3845_v28 = vadd.f32 %v3844_v33, %v3843_v36 }
 0x1b0   : > { %v4858_v34 = vadd.f32 %v3842_v27, %v2560_v24  ;;  %v2563_v26 = vadd.f32 %v3775_v32, %v4807_v44 }
 0x1b2   : > { %v4861_v35 = vadd.f32 %v3845_v28, %v2563_v26  ;;  %v3776_v18 = vpop.f32.mrb[92].mxu0 }
 0x1b3   : > { %v3846_v30 = vpop.f32.mrb[92].mxu1  ;;  %v3777_v63 = vpop.f32.mrb[93].mxu0 }
 0x1b4   : > { %v3778_v22 = vadd.f32 %v3777_v63, %v3776_v18  ;;  %v3847_v52 = vpop.f32.mrb[93].mxu1  ;;  %v3779_v3 = vpop.f32.mrb[94].mxu0 }
 0x1b5   : > { %v3848_v45 = vadd.f32 %v3847_v52, %v3846_v30  ;;  %v3849_v56 = vpop.f32.mrb[94].mxu1  ;;  %v3780_v50 = vpop.f32.mrb[95].mxu0 }
 0x1b6   : > { %v2568_v43 = vadd.f32 %v3778_v22, %v4810_v0  ;;  %v3781_v51 = vadd.f32 %v3780_v50, %v3779_v3  ;;  %v3850_v54 = vpop.f32.mrb[95].mxu1 }
 0x1b7   : > { %v3851_v46 = vadd.f32 %v3850_v54, %v3849_v56 }
 0x1b8   : > { %v4864_v55 = vadd.f32 %v3848_v45, %v2568_v43  ;;  %v2571_v44 = vadd.f32 %v3781_v51, %v4813_v1 }
 0x1ba   : > { %v4867_v57 = vadd.f32 %v3851_v46, %v2571_v44  ;;  %v3782_v47 = vpop.f32.mrb[96].mxu0 }
 0x1bb   : > { %v3852_v48 = vpop.f32.mrb[96].mxu1  ;;  %v3783_v25 = vpop.f32.mrb[97].mxu0 }
 0x1bc   : > { %v3784_v49 = vadd.f32 %v3783_v25, %v3782_v47  ;;  %v3853_v12 = vpop.f32.mrb[97].mxu1  ;;  %v3785_v29 = vpop.f32.mrb[98].mxu0 }
 0x1bd   : > { %v3854_v2 = vadd.f32 %v3853_v12, %v3852_v48  ;;  %v3855_v16 = vpop.f32.mrb[98].mxu1  ;;  %v3786_v6 = vpop.f32.mrb[99].mxu0 }
 0x1be   : > { %v2576_v0 = vadd.f32 %v3784_v49, %v4816_v20  ;;  %v3787_v8 = vadd.f32 %v3786_v6, %v3785_v29  ;;  %v3856_v10 = vpop.f32.mrb[99].mxu1 }
 0x1bf   : > { %v3857_v4 = vadd.f32 %v3856_v10, %v3855_v16 }
 0x1c0   : > { %v4870_v11 = vadd.f32 %v3854_v2, %v2576_v0  ;;  %v2579_v1 = vadd.f32 %v3787_v8, %v4819_v21 }
 0x1c2   : > { %v4873_v13 = vadd.f32 %v3857_v4, %v2579_v1  ;;  %v3788_v7 = vpop.f32.mrb[100].mxu0 }
 0x1c3   : > { %v3858_v5 = vpop.f32.mrb[100].mxu1  ;;  %v3789_v53 = vpop.f32.mrb[101].mxu0 }
 0x1c4   : > { %v3790_v9 = vadd.f32 %v3789_v53, %v3788_v7  ;;  %v3859_v37 = vpop.f32.mrb[101].mxu1  ;;  %v3791_v58 = vpop.f32.mrb[102].mxu0 }
 0x1c5   : > { %v3860_v23 = vadd.f32 %v3859_v37, %v3858_v5  ;;  %v3861_v41 = vpop.f32.mrb[102].mxu1  ;;  %v3792_v27 = vpop.f32.mrb[103].mxu0 }
 0x1c6   : > { %v2584_v20 = vadd.f32 %v3790_v9, %v4822_v40  ;;  %v3793_v36 = vadd.f32 %v3792_v27, %v3791_v58  ;;  %v3862_v31 = vpop.f32.mrb[103].mxu1 }
 0x1c7   : > { %v3863_v24 = vadd.f32 %v3862_v31, %v3861_v41 }
 0x1c8   : > { %v4876_v32 = vadd.f32 %v3860_v23, %v2584_v20  ;;  %v2587_v21 = vadd.f32 %v3793_v36, %v4825_v42 }
 0x1ca   : > { %v4879_v33 = vadd.f32 %v3863_v24, %v2587_v21  ;;  %v3794_v28 = vpop.f32.mrb[104].mxu0 }
 0x1cb   : > { %v3864_v26 = vpop.f32.mrb[104].mxu1  ;;  %v3795_v18 = vpop.f32.mrb[105].mxu0 }
 0x1cc   : > { %v3796_v30 = vadd.f32 %v3795_v18, %v3794_v28  ;;  %v3865_v63 = vpop.f32.mrb[105].mxu1  ;;  %v3797_v22 = vpop.f32.mrb[106].mxu0 }
 0x1cd   : > { %v3866_v52 = vadd.f32 %v3865_v63, %v3864_v26  ;;  %v3867_v3 = vpop.f32.mrb[106].mxu1  ;;  %v3798_v45 = vpop.f32.mrb[107].mxu0 }
 0x1ce   : > { %v2592_v40 = vadd.f32 %v3796_v30, %v4828_v61  ;;  %v3799_v56 = vadd.f32 %v3798_v45, %v3797_v22  ;;  %v3868_v50 = vpop.f32.mrb[107].mxu1 }
 0x1cf   : > { %v3869_v43 = vadd.f32 %v3868_v50, %v3867_v3 }
 0x1d0   : > { %v4882_v51 = vadd.f32 %v3866_v52, %v2592_v40  ;;  %v2595_v42 = vadd.f32 %v3799_v56, %v4831_v62 }
 0x1d2   : > { %v4885_v54 = vadd.f32 %v3869_v43, %v2595_v42  ;;  %v3886_v46 = vpop.f32.mrb[108].mxu0 }
 0x1d3   : > { %v3956_v44 = vpop.f32.mrb[108].mxu1  ;;  %v3887_v47 = vpop.f32.mrb[109].mxu0 }
 0x1d4   : > { %v3888_v48 = vadd.f32 %v3887_v47, %v3886_v46  ;;  %v3957_v25 = vpop.f32.mrb[109].mxu1  ;;  %v3889_v49 = vpop.f32.mrb[110].mxu0 }
 0x1d5   : > { %v3958_v12 = vadd.f32 %v3957_v25, %v3956_v44  ;;  %v3959_v29 = vpop.f32.mrb[110].mxu1  ;;  %v3890_v2 = vpop.f32.mrb[111].mxu0 }
 0x1d6   : > { %v2738_v61 = vadd.f32 %v3888_v48, %v4834_v17  ;;  %v3891_v16 = vadd.f32 %v3890_v2, %v3889_v49  ;;  %v3960_v6 = vpop.f32.mrb[111].mxu1 }
 0x1d7   : > { %v3961_v0 = vadd.f32 %v3960_v6, %v3959_v29 }
 0x1d8   : > { %v2843_v8 = vadd.f32 %v3958_v12, %v2738_v61  ;;  %v2741_v62 = vadd.f32 %v3891_v16, %v4837_v19 }
 0x1da   : > { %v2846_v10 = vadd.f32 %v3961_v0, %v2741_v62  ;;  %v3892_v4 = vpop.f32.mrb[112].mxu0  ;;  %v2913_v5 = vmax.f32 %v2843_v8, 0.0 }
 0x1db   : > { %v3962_v1 = vpop.f32.mrb[112].mxu1  ;;  %v3893_v7 = vpop.f32.mrb[113].mxu0 }
 0x1dc   : > { %v2914_v53 = vmax.f32 %v2846_v10, 0.0  ;;  %v3894_v9 = vadd.f32 %v3893_v7, %v3892_v4  ;;  %v3963_v37 = vpop.f32.mrb[113].mxu1  ;;  %v3895_v58 = vpop.f32.mrb[114].mxu0 }
 0x1dd   : > { %v3964_v17 = vadd.f32 %v3963_v37, %v3962_v1  ;;  %v3965_v23 = vpop.f32.mrb[114].mxu1  ;;  %v3896_v41 = vpop.f32.mrb[115].mxu0 }
 0x1de   : > { %v3400_v19 = vpack.c.bf16 %v2914_v53, %v2913_v5  ;;  %v2746_v27 = vadd.f32 %v3894_v9, %v4840_v38  ;;  %v3897_v20 = vadd.f32 %v3896_v41, %v3895_v58  ;;  %v3966_v36 = vpop.f32.mrb[115].mxu1 }
 0x1df   : > { %v3967_v31 = vadd.f32 %v3966_v36, %v3965_v23 }
 0x1e0   : > { %3401 = vst [vmem:[%s4893_s9] sm:$0xff] %v3400_v19   ;;  %v2851_v24 = vadd.f32 %v3964_v17, %v2746_v27  ;;  %v2749_v21 = vadd.f32 %v3897_v20, %v4843_v39 }
 0x1e2   : > { %v2854_v28 = vadd.f32 %v3967_v31, %v2749_v21  ;;  %v3898_v26 = vpop.f32.mrb[116].mxu0  ;;  %v2915_v63 = vmax.f32 %v2851_v24, 0.0 }
 0x1e3   : > { %v3968_v18 = vpop.f32.mrb[116].mxu1  ;;  %v3899_v30 = vpop.f32.mrb[117].mxu0 }
 0x1e4   : > { %v2916_v22 = vmax.f32 %v2854_v28, 0.0  ;;  %v3900_v52 = vadd.f32 %v3899_v30, %v3898_v26  ;;  %v3969_v3 = vpop.f32.mrb[117].mxu1  ;;  %v3901_v45 = vpop.f32.mrb[118].mxu0 }
 0x1e5   : > { %v3970_v40 = vadd.f32 %v3969_v3, %v3968_v18  ;;  %v3971_v56 = vpop.f32.mrb[118].mxu1  ;;  %v3902_v38 = vpop.f32.mrb[119].mxu0 }
 0x1e6   : > { %v3405_v50 = vpack.c.bf16 %v2916_v22, %v2915_v63  ;;  %v2754_v43 = vadd.f32 %v3900_v52, %v4846_v59  ;;  %v3903_v42 = vadd.f32 %v3902_v38, %v3901_v45  ;;  %v3972_v46 = vpop.f32.mrb[119].mxu1 }
 0x1e7   : > { %v3973_v44 = vadd.f32 %v3972_v46, %v3971_v56 }
 0x1e8   : > { %3442 = vst [vmem:[%s4893_s9 + $0x8] sm:$0xff] %v3405_v50   ;;  %v2859_v39 = vadd.f32 %v3970_v40, %v2754_v43  ;;  %v2757_v47 = vadd.f32 %v3903_v42, %v4849_v60 }
 0x1ea   : > { %v2862_v48 = vadd.f32 %v3973_v44, %v2757_v47  ;;  %v3904_v25 = vpop.f32.mrb[120].mxu0  ;;  %v2917_v29 = vmax.f32 %v2859_v39, 0.0 }
 0x1eb   : > { %v3974_v49 = vpop.f32.mrb[120].mxu1  ;;  %v3905_v12 = vpop.f32.mrb[121].mxu0 }
 0x1ec   : > { %v2918_v2 = vmax.f32 %v2862_v48, 0.0  ;;  %v3906_v61 = vadd.f32 %v3905_v12, %v3904_v25  ;;  %v3975_v16 = vpop.f32.mrb[121].mxu1  ;;  %v3907_v6 = vpop.f32.mrb[122].mxu0 }
 0x1ed   : > { %v3976_v0 = vadd.f32 %v3975_v16, %v3974_v49  ;;  %v3977_v8 = vpop.f32.mrb[122].mxu1  ;;  %v3908_v59 = vpop.f32.mrb[123].mxu0 }
 0x1ee   : > { %v3410_v62 = vpack.c.bf16 %v2918_v2, %v2917_v29  ;;  %v2762_v10 = vadd.f32 %v3906_v61, %v4852_v14  ;;  %v3909_v4 = vadd.f32 %v3908_v59, %v3907_v6  ;;  %v3978_v1 = vpop.f32.mrb[123].mxu1 }
 0x1ef   : > { %v3979_v7 = vadd.f32 %v3978_v1, %v3977_v8 }
 0x1f0   : > { %3443 = vst [vmem:[%s4893_s9 + $0x10] sm:$0xff] %v3410_v62   ;;  %v2867_v60 = vadd.f32 %v3976_v0, %v2762_v10  ;;  %v2765_v5 = vadd.f32 %v3909_v4, %v4855_v15 }
 0x1f2   : > { %v2870_v53 = vadd.f32 %v3979_v7, %v2765_v5  ;;  %v3910_v9 = vpop.f32.mrb[124].mxu0  ;;  %v2919_v17 = vmax.f32 %v2867_v60, 0.0 }
 0x1f3   : > { %v3980_v37 = vpop.f32.mrb[124].mxu1  ;;  %v3911_v58 = vpop.f32.mrb[125].mxu0 }
 0x1f4   : > { %v2920_v23 = vmax.f32 %v2870_v53, 0.0  ;;  %v3912_v41 = vadd.f32 %v3911_v58, %v3910_v9  ;;  %v3981_v19 = vpop.f32.mrb[125].mxu1  ;;  %v3913_v27 = vpop.f32.mrb[126].mxu0 }
 0x1f5   : > { %v3982_v20 = vadd.f32 %v3981_v19, %v3980_v37  ;;  %v3983_v36 = vpop.f32.mrb[126].mxu1  ;;  %v3914_v14 = vpop.f32.mrb[127].mxu0 }
 0x1f6   : > { %v3415_v31 = vpack.c.bf16 %v2920_v23, %v2919_v17  ;;  %v2770_v24 = vadd.f32 %v3912_v41, %v4858_v34  ;;  %v3915_v21 = vadd.f32 %v3914_v14, %v3913_v27  ;;  %v3984_v28 = vpop.f32.mrb[127].mxu1 }
 0x1f7   : > { %v3985_v26 = vadd.f32 %v3984_v28, %v3983_v36 }
 0x1f8   : > { %3444 = vst [vmem:[%s4893_s9 + $0x18] sm:$0xff] %v3415_v31   ;;  %v2875_v15 = vadd.f32 %v3982_v20, %v2770_v24  ;;  %v2773_v18 = vadd.f32 %v3915_v21, %v4861_v35 }
 0x1fa   : > { %v2878_v30 = vadd.f32 %v3985_v26, %v2773_v18  ;;  %v3916_v63 = vpop.f32.mrb[128].mxu0  ;;  %v2921_v3 = vmax.f32 %v2875_v15, 0.0 }
 0x1fb   : > { %v3986_v22 = vpop.f32.mrb[128].mxu1  ;;  %v3917_v52 = vpop.f32.mrb[129].mxu0 }
 0x1fc   : > { %v2922_v45 = vmax.f32 %v2878_v30, 0.0  ;;  %v3918_v40 = vadd.f32 %v3917_v52, %v3916_v63  ;;  %v3987_v56 = vpop.f32.mrb[129].mxu1  ;;  %v3919_v38 = vpop.f32.mrb[130].mxu0 }
 0x1fd   : > { %v3988_v50 = vadd.f32 %v3987_v56, %v3986_v22  ;;  %v3989_v43 = vpop.f32.mrb[130].mxu1  ;;  %v3920_v34 = vpop.f32.mrb[131].mxu0 }
 0x1fe   : > { %v3420_v42 = vpack.c.bf16 %v2922_v45, %v2921_v3  ;;  %v2778_v46 = vadd.f32 %v3918_v40, %v4864_v55  ;;  %v3921_v44 = vadd.f32 %v3920_v34, %v3919_v38  ;;  %v3990_v39 = vpop.f32.mrb[131].mxu1 }
 0x1ff   : > { %v3991_v47 = vadd.f32 %v3990_v39, %v3989_v43 }
 0x200   : > { %3445 = vst [vmem:[%s4893_s9 + $0x20] sm:$0xff] %v3420_v42   ;;  %v2883_v35 = vadd.f32 %v3988_v50, %v2778_v46  ;;  %v2781_v48 = vadd.f32 %v3921_v44, %v4867_v57 }
 0x202   : > { %v2886_v25 = vadd.f32 %v3991_v47, %v2781_v48  ;;  %v3922_v49 = vpop.f32.mrb[132].mxu0  ;;  %v2923_v2 = vmax.f32 %v2883_v35, 0.0 }
 0x203   : > { %v3992_v12 = vpop.f32.mrb[132].mxu1  ;;  %v3923_v29 = vpop.f32.mrb[133].mxu0 }
 0x204   : > { %v2924_v61 = vmax.f32 %v2886_v25, 0.0  ;;  %v3924_v16 = vadd.f32 %v3923_v29, %v3922_v49  ;;  %v3993_v6 = vpop.f32.mrb[133].mxu1  ;;  %v3925_v0 = vpop.f32.mrb[134].mxu0 }
 0x205   : > { %v3994_v8 = vadd.f32 %v3993_v6, %v3992_v12  ;;  %v3995_v59 = vpop.f32.mrb[134].mxu1  ;;  %v3926_v55 = vpop.f32.mrb[135].mxu0 }
 0x206   : > { %v3425_v62 = vpack.c.bf16 %v2924_v61, %v2923_v2  ;;  %v2786_v10 = vadd.f32 %v3924_v16, %v4870_v11  ;;  %v3927_v4 = vadd.f32 %v3926_v55, %v3925_v0  ;;  %v3996_v1 = vpop.f32.mrb[135].mxu1 }
 0x207   : > { %v3997_v7 = vadd.f32 %v3996_v1, %v3995_v59 }
 0x208   : > { %3446 = vst [vmem:[%s4893_s9 + $0x28] sm:$0xff] %v3425_v62   ;;  %v2891_v57 = vadd.f32 %v3994_v8, %v2786_v10  ;;  %v2789_v60 = vadd.f32 %v3927_v4, %v4873_v13 }
 0x20a   : > { %v2894_v5 = vadd.f32 %v3997_v7, %v2789_v60  ;;  %v3928_v53 = vpop.f32.mrb[136].mxu0  ;;  %v2925_v58 = vmax.f32 %v2891_v57, 0.0 }
 0x20b   : > { %v3998_v9 = vpop.f32.mrb[136].mxu1  ;;  %v3929_v37 = vpop.f32.mrb[137].mxu0 }
 0x20c   : > { %v2926_v17 = vmax.f32 %v2894_v5, 0.0  ;;  %v3930_v23 = vadd.f32 %v3929_v37, %v3928_v53  ;;  %v3999_v41 = vpop.f32.mrb[137].mxu1  ;;  %v3931_v19 = vpop.f32.mrb[138].mxu0 }
 0x20d   : > { %v4000_v27 = vadd.f32 %v3999_v41, %v3998_v9  ;;  %v4001_v20 = vpop.f32.mrb[138].mxu1  ;;  %v3932_v11 = vpop.f32.mrb[139].mxu0 }
 0x20e   : > { %v3430_v36 = vpack.c.bf16 %v2926_v17, %v2925_v58  ;;  %v2794_v14 = vadd.f32 %v3930_v23, %v4876_v32  ;;  %v3933_v31 = vadd.f32 %v3932_v11, %v3931_v19  ;;  %v4002_v24 = vpop.f32.mrb[139].mxu1 }
 0x20f   : > { %v4003_v21 = vadd.f32 %v4002_v24, %v4001_v20 }
 0x210   : > { %3447 = vst [vmem:[%s4893_s9 + $0x30] sm:$0xff] %v3430_v36   ;;  %v2899_v13 = vadd.f32 %v4000_v27, %v2794_v14  ;;  %v2797_v28 = vadd.f32 %v3933_v31, %v4879_v33 }
 0x212   : > { %v2902_v26 = vadd.f32 %v4003_v21, %v2797_v28  ;;  %v3934_v15 = vpop.f32.mrb[140].mxu0  ;;  %v2927_v63 = vmax.f32 %v2899_v13, 0.0 }
 0x213   : > { %v4004_v18 = vpop.f32.mrb[140].mxu1  ;;  %v3935_v30 = vpop.f32.mrb[141].mxu0 }
 0x214   : > { %v2928_v22 = vmax.f32 %v2902_v26, 0.0  ;;  %v3936_v52 = vadd.f32 %v3935_v30, %v3934_v15  ;;  %v4005_v3 = vpop.f32.mrb[141].mxu1  ;;  %v3937_v45 = vpop.f32.mrb[142].mxu0 }
 0x215   : > { %v4006_v40 = vadd.f32 %v4005_v3, %v4004_v18  ;;  %v4007_v32 = vpop.f32.mrb[142].mxu1  ;;  %v3938_v56 = vpop.f32.mrb[143].mxu0 }
 0x216   : > { %v3435_v38 = vpack.c.bf16 %v2928_v22, %v2927_v63  ;;  %v2802_v50 = vadd.f32 %v3936_v52, %v4882_v51  ;;  %v3939_v43 = vadd.f32 %v3938_v56, %v3937_v45  ;;  %v4008_v34 = vpop.f32.mrb[143].mxu1 }
 0x217   : > { %v4009_v33 = vadd.f32 %v4008_v34, %v4007_v32 }
 0x218   : > { %3448 = vst [vmem:[%s4893_s9 + $0x38] sm:$0xff] %v3435_v38   ;;  %v2907_v42 = vadd.f32 %v4006_v40, %v2802_v50  ;;  %v2805_v46 = vadd.f32 %v3939_v43, %v4885_v54 }
 0x21a   : > { %v2910_v44 = vadd.f32 %v4009_v33, %v2805_v46  ;;  %v2929_v39 = vmax.f32 %v2907_v42, 0.0 }
 0x21c   : > { %v2930_v47 = vmax.f32 %v2910_v44, 0.0 }
 0x21e   : > { %v3440_v35 = vpack.c.bf16 %v2930_v47, %v2929_v39 }
 0x220   : > { %3449 = vst [vmem:[%s4893_s9 + $0x40] sm:$0xff] %v3440_v35  }
 0x221 PF: > { %s13_s12 = sadd.s32 1, %s4152_s12  }
 0x222   : > { %p10_p4 = scmp.ge.s32.totalorder %s13_s12, 4  }
 0x224   :  { %12 = sbr.rel (!%p10_p4) target bundleno = 1 (0x1), region = 62 }

// kernel: brain_dqn_forward.5
= control target key start
LH: loop header
LB: loop body
LE: loop exit
PB: predicated region body
PF: predicated region fallthrough
CT: control target
= control target key end

     0   :  { %10 = vsyncpa [#allocation4], 0  ;;  %s3678_s18 = smov 0   ;;  %s4150_s0 = inlined_call_operand.vmem [shape: bf16[2,9216], index: 0, kind: input, shape index: {}]   ;;  %s4151_s1 = inlined_call_operand.vmem [shape: bf16[9216,256], index: 1, kind: input, shape index: {}]   ;;  %s4152_s2 = inlined_call_operand.vmem [shape: f32[1,256], index: 2, kind: input, shape index: {}]   ;;  %s4153_s3 = inlined_call_operand.vmem [shape: bf16[256,2], index: 3, kind: input, shape index: {}]   ;;  %s4154_s4 = inlined_call_operand.vmem [shape: f32[1,2], index: 4, kind: input, shape index: {}]   ;;  %s4155_s5 = inlined_call_operand.hbm [shape: f32[2,2], index: 5, kind: output, shape index: {}]  }
   0x1 LB: > { %s3684_s19 = sadd.s32 4294967295, %s3642_s18   ;;  %p2770_p0 = scmp.ge.s32.totalorder %s3642_s18, 1  ;;  %s3642_s18 = sphi %s3678_s18, %s16_s18  }
   0x2   : > { %p195_p1 = scmp.lt.s32.totalorder %s3642_s18, 5 }
   0x4   : > { %p196_p2 = pnand %p2770_p0, %p195_p1 }
   0x5   : > { %s223_s20 = smul.u32 (!%p196_p2), 18, %s3684_s19  ;;  %p2773_p5 = scmp.ne.s32.totalorder (!%p196_p2), %s3684_s19, 0 }
   0x6   : > { %199 = sbr.rel (%p196_p2) target bundleno = 827 (0x33b), region = 40 }
   0x7   : > { %s228_s21 = smul.u32 (!%p196_p2), 288, %s3684_s19  ;;  %p224_p3 = scmp.lt.s32.totalorder (!%p196_p2), %s223_s20, 71 }
   0x9   : > { %p229_p4 = scmp.lt.s32.totalorder (!%p196_p2), %s228_s21, 1151 }
   0xd   : > { %s4157_s20 = smov (!%p224_p3, %s223_s20), 71  ;;  %s4159_s21 = smov (!%p229_p4, %s228_s21), 1151 }
   0xe   : > { %s3693_s24 = scalar_lea.vmem %s4150_s0, %s4157_s20  ;;  %s3085_s25 = sshll.u32 %s4159_s21, 3  ;;  %v3644_v0 = vmov (!%p2773_p5), 0.0  }
   0xf   : > { %s3698_s28 = scalar_lea.vmem %s4151_s1, %s3085_s25  ;;  %239 = sbr.rel (%p2773_p5) target bundleno = 22 (0x16), region = 44  ;;  %240 = vst [vmem:[#allocation2] sm:$0xf] (!%p2773_p5), %v3644_v0 }
  0x16 PF: > { %v3156_v1 = vld [vmem:[%s3698_s28 + $0x4] ss:$8 sps:$4 sm:$0xff]   ;;  %v3160_v3 = vld [vmem:[%s3698_s28] ss:$8 sps:$4 sm:$0xff]   ;;  %v3162_v5 = vld [vmem:[%s3698_s28 + $0x14] ss:$8 sps:$4 sm:$0xff]   ;;  %v540_v39 = vlaneseq }
  0x17   : > { %v3158_v2 = vld [vmem:[%s3698_s28 + $0x404] ss:$8 sps:$4 sm:$0xff]   ;;  %2114 = vmatprep.subr.bf16.mxu1 %v3156_v1  ;;  %v3161_v4 = vld [vmem:[%s3698_s28 + $0x400] ss:$8 sps:$4 sm:$0xff]   ;;  %v3164_v6 = vld [vmem:[%s3698_s28 + $0x414] ss:$8 sps:$4 sm:$0xff]  }
  0x18   : > { %2278 = vmatprep.subr.bf16.mxu0 %v3158_v2  ;;  %2115 = vmatpush1.bf16.msra.mxu1 %v3160_v3  ;;  %v3166_v7 = vld [vmem:[%s3698_s28 + $0x10] ss:$8 sps:$4 sm:$0xff]   ;;  %v3168_v9 = vld [vmem:[%s3698_s28 + $0x24] ss:$8 sps:$4 sm:$0xff]   ;;  %v3172_v11 = vld [vmem:[%s3698_s28 + $0x20] ss:$8 sps:$4 sm:$0xff]  }
  0x19   : > { %2279 = vmatpush1.bf16.msra.mxu0 %v3161_v4  ;;  %2116 = vmatprep.subr.bf16.mxu1 %v3162_v5  ;;  %v3167_v8 = vld [vmem:[%s3698_s28 + $0x410] ss:$8 sps:$4 sm:$0xff]   ;;  %v3170_v10 = vld [vmem:[%s3698_s28 + $0x424] ss:$8 sps:$4 sm:$0xff]   ;;  %v3173_v12 = vld [vmem:[%s3698_s28 + $0x420] ss:$8 sps:$4 sm:$0xff]  }
  0x1a   : > { %2280 = vmatprep.subr.bf16.mxu0 %v3164_v6  ;;  %v3174_v13 = vld [vmem:[%s3698_s28 + $0x34] ss:$8 sps:$4 sm:$0xff]   ;;  %v3178_v15 = vld [vmem:[%s3698_s28 + $0x30] ss:$8 sps:$4 sm:$0xff]   ;;  %v3180_v17 = vld [vmem:[%s3698_s28 + $0x44] ss:$8 sps:$4 sm:$0xff]  }
  0x1b   : > { %v3176_v14 = vld [vmem:[%s3698_s28 + $0x434] ss:$8 sps:$4 sm:$0xff]   ;;  %v3179_v16 = vld [vmem:[%s3698_s28 + $0x430] ss:$8 sps:$4 sm:$0xff]   ;;  %v3182_v18 = vld [vmem:[%s3698_s28 + $0x444] ss:$8 sps:$4 sm:$0xff]  }
  0x1c   : > { %2117 = vmatpush1.bf16.msra.mxu1 %v3166_v7  ;;  %v3184_v19 = vld [vmem:[%s3698_s28 + $0x40] ss:$8 sps:$4 sm:$0xff]   ;;  %v3186_v21 = vld [vmem:[%s3698_s28 + $0x54] ss:$8 sps:$4 sm:$0xff]   ;;  %v3190_v23 = vld [vmem:[%s3698_s28 + $0x50] ss:$8 sps:$4 sm:$0xff]  }
  0x1d   : > { %2281 = vmatpush1.bf16.msra.mxu0 %v3167_v8  ;;  %2118 = vmatprep.subr.bf16.mxu1 %v3168_v9  ;;  %v3185_v20 = vld [vmem:[%s3698_s28 + $0x440] ss:$8 sps:$4 sm:$0xff]   ;;  %v3188_v22 = vld [vmem:[%s3698_s28 + $0x454] ss:$8 sps:$4 sm:$0xff]   ;;  %v3191_v24 = vld [vmem:[%s3698_s28 + $0x450] ss:$8 sps:$4 sm:$0xff]  }
  0x1e   : > { %2282 = vmatprep.subr.bf16.mxu0 %v3170_v10  ;;  %v3192_v25 = vld [vmem:[%s3698_s28 + $0x64] ss:$8 sps:$4 sm:$0xff]   ;;  %v3196_v27 = vld [vmem:[%s3698_s28 + $0x60] ss:$8 sps:$4 sm:$0xff]   ;;  %v3198_v29 = vld [vmem:[%s3698_s28 + $0x74] ss:$8 sps:$4 sm:$0xff]  }
  0x1f   : > { %v3194_v26 = vld [vmem:[%s3698_s28 + $0x464] ss:$8 sps:$4 sm:$0xff]   ;;  %v3197_v28 = vld [vmem:[%s3698_s28 + $0x460] ss:$8 sps:$4 sm:$0xff]   ;;  %v3200_v30 = vld [vmem:[%s3698_s28 + $0x474] ss:$8 sps:$4 sm:$0xff]  }
  0x20   : > { %2119 = vmatpush1.bf16.msra.mxu1 %v3172_v11  ;;  %v3202_v31 = vld [vmem:[%s3698_s28 + $0x70] ss:$8 sps:$4 sm:$0xff]   ;;  %v3204_v33 = vld [vmem:[%s3698_s28 + $0x84] ss:$8 sps:$4 sm:$0xff]   ;;  %v3208_v35 = vld [vmem:[%s3698_s28 + $0x80] ss:$8 sps:$4 sm:$0xff]  }
  0x21   : > { %2283 = vmatpush1.bf16.msra.mxu0 %v3173_v12  ;;  %2120 = vmatprep.subr.bf16.mxu1 %v3174_v13  ;;  %v3203_v32 = vld [vmem:[%s3698_s28 + $0x470] ss:$8 sps:$4 sm:$0xff]   ;;  %v3206_v34 = vld [vmem:[%s3698_s28 + $0x484] ss:$8 sps:$4 sm:$0xff]   ;;  %v3209_v36 = vld [vmem:[%s3698_s28 + $0x480] ss:$8 sps:$4 sm:$0xff]  }
  0x22   : > { %2284 = vmatprep.subr.bf16.mxu0 %v3176_v14  ;;  %v3645_v37 = vmov 1966171168   ;;  %v3210_v40 = vld [vmem:[%s3698_s28 + $0x94] ss:$8 sps:$4 sm:$0xff]   ;;  %v3214_v42 = vld [vmem:[%s3698_s28 + $0x90] ss:$8 sps:$4 sm:$0xff]  }
  0x23   : > { %v538_v38 = vunpack.c.l.s4 %v3645_v37  ;;  %v3212_v41 = vld [vmem:[%s3698_s28 + $0x494] ss:$8 sps:$4 sm:$0xff]   ;;  %v3740_v44 = vshrl.u32 %v540_v39, 7  ;;  %v3215_v45 = vld [vmem:[%s3698_s28 + $0x490] ss:$8 sps:$4 sm:$0xff]   ;;  %v3753_v53 = vld [vmem:[%s3693_s24] sm:$0xff] }
  0x24   : > { %2121 = vmatpush1.bf16.msra.mxu1 %v3178_v15  ;;  %v3216_v46 = vld [vmem:[%s3698_s28 + $0xa4] ss:$8 sps:$4 sm:$0xff]   ;;  %v3220_v48 = vld [vmem:[%s3698_s28 + $0xa0] ss:$8 sps:$4 sm:$0xff]   ;;  %v3222_v51 = vld [vmem:[%s3698_s28 + $0xb4] ss:$8 sps:$4 sm:$0xff]  }
  0x25   : > { %2285 = vmatpush1.bf16.msra.mxu0 %v3179_v16  ;;  %2122 = vmatprep.subr.bf16.mxu1 %v3180_v17  ;;  %v539_v43 = vunpack.c.0.s8 %v538_v38  ;;  %v3218_v47 = vld [vmem:[%s3698_s28 + $0x4a4] ss:$8 sps:$4 sm:$0xff]   ;;  %v3221_v49 = vld [vmem:[%s3698_s28 + $0x4a0] ss:$8 sps:$4 sm:$0xff]   ;;  %v3224_v52 = vld [vmem:[%s3698_s28 + $0x4b4] ss:$8 sps:$4 sm:$0xff]  }
  0x26   : > { %2286 = vmatprep.subr.bf16.mxu0 %v3182_v18  ;;  %v3226_v54 = vld [vmem:[%s3698_s28 + $0xb0] ss:$8 sps:$4 sm:$0xff]   ;;  %v3760_v57 = vld [vmem:[%s3693_s24 + $0x8] sm:$0xff]  ;;  %v3234_v2 = vld [vmem:[%s3698_s28 + $0xd4] ss:$8 sps:$4 sm:$0xff]   ;;  %p3063_p6 = scmp.ne.s32.totalorder %s3684_s19, 3 }
  0x27   : > { %v3748_v50 = vsub.s32 %v539_v43, %v3740_v44  ;;  %v3227_v56 = vld [vmem:[%s3698_s28 + $0x4b0] ss:$8 sps:$4 sm:$0xff]   ;;  %v3228_v58 = vld [vmem:[%s3698_s28 + $0xc4] ss:$8 sps:$4 sm:$0xff]   ;;  %v3232_v0 = vld [vmem:[%s3698_s28 + $0xc0] ss:$8 sps:$4 sm:$0xff]  }
  0x28   : > { %2123 = vmatpush1.bf16.msra.mxu1 %v3184_v19  ;;  %v3230_v59 = vld [vmem:[%s3698_s28 + $0x4c4] ss:$8 sps:$4 sm:$0xff]   ;;  %v3233_v1 = vld [vmem:[%s3698_s28 + $0x4c0] ss:$8 sps:$4 sm:$0xff]   ;;  %v3236_v3 = vld [vmem:[%s3698_s28 + $0x4d4] ss:$8 sps:$4 sm:$0xff]  }
  0x29   : > { %2287 = vmatpush1.bf16.msra.mxu0 %v3185_v20  ;;  %2124 = vmatprep.subr.bf16.mxu1 %v3186_v21  ;;  %v543_v55 = vrot.slane %v3753_v53, %v3748_v50  ;;  %v592_v61 = vrot.slane %v3760_v57, %v3748_v50  ;;  %v3238_v5 = vld [vmem:[%s3698_s28 + $0xd0] ss:$8 sps:$4 sm:$0xff]   ;;  %v3240_v7 = vld [vmem:[%s3698_s28 + $0xe4] ss:$8 sps:$4 sm:$0xff]   ;;  %v3244_v9 = vld [vmem:[%s3698_s28 + $0xe0] ss:$8 sps:$4 sm:$0xff]  }
  0x2a   : > { %2288 = vmatprep.subr.bf16.mxu0 %v3188_v22  ;;  %v3239_v6 = vld [vmem:[%s3698_s28 + $0x4d0] ss:$8 sps:$4 sm:$0xff]   ;;  %v3242_v8 = vld [vmem:[%s3698_s28 + $0x4e4] ss:$8 sps:$4 sm:$0xff]   ;;  %v3245_v10 = vld [vmem:[%s3698_s28 + $0x4e0] ss:$8 sps:$4 sm:$0xff]  }
  0x2b   : > { %v551_v60 = vcombine.high %v543_v55, %v543_v55  ;;  %v600_v63 = vcombine.high %v592_v61, %v592_v61  ;;  %v3246_v11 = vld [vmem:[%s3698_s28 + $0xf4] ss:$8 sps:$4 sm:$0xff]   ;;  %v3250_v13 = vld [vmem:[%s3698_s28 + $0xf0] ss:$8 sps:$4 sm:$0xff]   ;;  %v3255_v15 = vld [vmem:[%s3698_s28 + $0x104] ss:$8 sps:$4 sm:$0xff]   ;;  %v3785_v17 = vrot.slane %v543_v55, %v3748_v50  ;;  %v3788_v18 = vrot.slane %v592_v61, %v3748_v50 }
  0x2c   : > { %2125 = vmatpush1.bf16.msra.mxu1 %v3190_v23  ;;  %v3248_v12 = vld [vmem:[%s3698_s28 + $0x4f4] ss:$8 sps:$4 sm:$0xff]   ;;  %v3251_v14 = vld [vmem:[%s3698_s28 + $0x4f0] ss:$8 sps:$4 sm:$0xff]   ;;  %v3259_v16 = vld [vmem:[%s3698_s28 + $0x504] ss:$8 sps:$4 sm:$0xff]  }
  0x2d   : > { %2289 = vmatpush1.bf16.msra.mxu0 %v3191_v24  ;;  %2126 = vmatprep.subr.bf16.mxu1 %v3192_v25  ;;  %v573_v62 = vrot.slane %v551_v60, %v3748_v50  ;;  %v622_v4 = vrot.slane %v600_v63, %v3748_v50  ;;  %v3253_v19 = vld [vmem:[%s3698_s28 + $0x100] ss:$8 sps:$4 sm:$0xff]   ;;  %v3262_v21 = vld [vmem:[%s3698_s28 + $0x114] ss:$8 sps:$4 sm:$0xff]   ;;  %v3260_v25 = vld [vmem:[%s3698_s28 + $0x110] ss:$8 sps:$4 sm:$0xff]  }
  0x2e   : > { %2290 = vmatprep.subr.bf16.mxu0 %v3194_v26  ;;  %v3257_v20 = vld [vmem:[%s3698_s28 + $0x500] ss:$8 sps:$4 sm:$0xff]   ;;  %v3265_v22 = vld [vmem:[%s3698_s28 + $0x514] ss:$8 sps:$4 sm:$0xff]   ;;  %v3263_v26 = vld [vmem:[%s3698_s28 + $0x510] ss:$8 sps:$4 sm:$0xff]  }
  0x2f   : > { %2146 = vmatprep.mubr.bf16.mxu1 %v573_v62  ;;  %2310 = vmatprep.mubr.bf16.mxu0 %v622_v4  ;;  %v583_v23 = vcombine.high %v573_v62, %v573_v62  ;;  %v632_v24 = vcombine.high %v622_v4, %v622_v4  ;;  %v3278_v37 = vld [vmem:[%s3698_s28 + $0x140] ss:$8 sps:$4 sm:$0xff]   ;;  %v3286_v39 = vld [vmem:[%s3698_s28 + $0x154] ss:$8 sps:$4 sm:$0xff]   ;;  %v3292_v43 = vld [vmem:[%s3698_s28 + $0x164] ss:$8 sps:$4 sm:$0xff]  }
  0x30   : > { %2127 = vmatpush1.bf16.msra.mxu1 %v3196_v27  ;;  %v3268_v27 = vld [vmem:[%s3698_s28 + $0x124] ss:$8 sps:$4 sm:$0xff]   ;;  %v3281_v38 = vld [vmem:[%s3698_s28 + $0x540] ss:$8 sps:$4 sm:$0xff]   ;;  %v3313_v60 = vld [vmem:[%s3698_s28 + $0x594] ss:$8 sps:$4 sm:$0xff]  }
  0x31   : > { %2291 = vmatpush1.bf16.msra.mxu0 %v3197_v28  ;;  %2128 = vmatprep.subr.bf16.mxu1 %v3198_v29  ;;  %v3271_v28 = vld [vmem:[%s3698_s28 + $0x524] ss:$8 sps:$4 sm:$0xff]   ;;  %v3266_v29 = vld [vmem:[%s3698_s28 + $0x120] ss:$8 sps:$4 sm:$0xff]   ;;  %v3308_v61 = vld [vmem:[%s3698_s28 + $0x190] ss:$8 sps:$4 sm:$0xff]  }
  0x32   : > { %2292 = vmatprep.subr.bf16.mxu0 %v3200_v30  ;;  %v3269_v30 = vld [vmem:[%s3698_s28 + $0x520] ss:$8 sps:$4 sm:$0xff]   ;;  %v3307_v55 = vld [vmem:[%s3698_s28 + $0x584] ss:$8 sps:$4 sm:$0xff]   ;;  %v3311_v62 = vld [vmem:[%s3698_s28 + $0x590] ss:$8 sps:$4 sm:$0xff]  }
  0x33   : > { %v3316_v63 = vld [vmem:[%s3698_s28 + $0x1a4] ss:$8 sps:$4 sm:$0xff]   ;;  %v3325_v4 = vld [vmem:[%s3698_s28 + $0x5b4] ss:$8 sps:$4 sm:$0xff]   ;;  %vm2710_vm0 = vcmask (!%p3063_p6), 9216  }
  0x34   : > { %2129 = vmatpush1.bf16.msra.mxu1 %v3202_v31  ;;  %v3274_v31 = vld [vmem:[%s3698_s28 + $0x134] ss:$8 sps:$4 sm:$0xff]  }
  0x35   : > { %2293 = vmatpush1.bf16.msra.mxu0 %v3203_v32  ;;  %2130 = vmatprep.subr.bf16.mxu1 %v3204_v33  ;;  %v3277_v32 = vld [vmem:[%s3698_s28 + $0x534] ss:$8 sps:$4 sm:$0xff]   ;;  %v3272_v33 = vld [vmem:[%s3698_s28 + $0x130] ss:$8 sps:$4 sm:$0xff]  }
  0x36   : > { %2294 = vmatprep.subr.bf16.mxu0 %v3206_v34  ;;  %v3275_v34 = vld [vmem:[%s3698_s28 + $0x530] ss:$8 sps:$4 sm:$0xff]  }
  0x38   : > { %2131 = vmatpush1.bf16.msra.mxu1 %v3208_v35  ;;  %v3280_v35 = vld [vmem:[%s3698_s28 + $0x144] ss:$8 sps:$4 sm:$0xff]  }
  0x39   : > { %2295 = vmatpush1.bf16.msra.mxu0 %v3209_v36  ;;  %2132 = vmatprep.subr.bf16.mxu1 %v3210_v40  ;;  %v3283_v36 = vld [vmem:[%s3698_s28 + $0x544] ss:$8 sps:$4 sm:$0xff]   ;;  %v3289_v40 = vld [vmem:[%s3698_s28 + $0x554] ss:$8 sps:$4 sm:$0xff]  }
  0x3a   : > { %2296 = vmatprep.subr.bf16.mxu0 %v3212_v41  ;;  %v3284_v41 = vld [vmem:[%s3698_s28 + $0x150] ss:$8 sps:$4 sm:$0xff]  }
  0x3c   : > { %2133 = vmatpush1.bf16.msra.mxu1 %v3214_v42  ;;  %v3287_v42 = vld [vmem:[%s3698_s28 + $0x550] ss:$8 sps:$4 sm:$0xff]  }
  0x3d   : > { %2297 = vmatpush1.bf16.msra.mxu0 %v3215_v45  ;;  %2134 = vmatprep.subr.bf16.mxu1 %v3216_v46  ;;  %v3295_v45 = vld [vmem:[%s3698_s28 + $0x564] ss:$8 sps:$4 sm:$0xff]   ;;  %v3290_v46 = vld [vmem:[%s3698_s28 + $0x160] ss:$8 sps:$4 sm:$0xff]  }
  0x3e   : > { %2298 = vmatprep.subr.bf16.mxu0 %v3218_v47  ;;  %v3293_v47 = vld [vmem:[%s3698_s28 + $0x560] ss:$8 sps:$4 sm:$0xff]  }
  0x40   : > { %2135 = vmatpush1.bf16.msra.mxu1 %v3220_v48  ;;  %v3298_v48 = vld [vmem:[%s3698_s28 + $0x174] ss:$8 sps:$4 sm:$0xff]  }
  0x41   : > { %2299 = vmatpush1.bf16.msra.mxu0 %v3221_v49  ;;  %2136 = vmatprep.subr.bf16.mxu1 %v3222_v51  ;;  %v3301_v49 = vld [vmem:[%s3698_s28 + $0x574] ss:$8 sps:$4 sm:$0xff]   ;;  %v3296_v51 = vld [vmem:[%s3698_s28 + $0x170] ss:$8 sps:$4 sm:$0xff]  }
  0x42   : > { %2300 = vmatprep.subr.bf16.mxu0 %v3224_v52  ;;  %v3299_v52 = vld [vmem:[%s3698_s28 + $0x570] ss:$8 sps:$4 sm:$0xff]  }
  0x44   : > { %2137 = vmatpush1.bf16.msra.mxu1 %v3226_v54  ;;  %v3304_v54 = vld [vmem:[%s3698_s28 + $0x184] ss:$8 sps:$4 sm:$0xff]  }
  0x45   : > { %2301 = vmatpush1.bf16.msra.mxu0 %v3227_v56  ;;  %2138 = vmatprep.subr.bf16.mxu1 %v3228_v58  ;;  %v3302_v56 = vld [vmem:[%s3698_s28 + $0x180] ss:$8 sps:$4 sm:$0xff]  }
  0x46   : > { %2302 = vmatprep.subr.bf16.mxu0 %v3230_v59  ;;  %v3305_v58 = vld [vmem:[%s3698_s28 + $0x580] ss:$8 sps:$4 sm:$0xff]   ;;  %v3310_v59 = vld [vmem:[%s3698_s28 + $0x194] ss:$8 sps:$4 sm:$0xff]  }
  0x48   : > { %2139 = vmatpush1.bf16.msra.mxu1 %v3232_v0  ;;  %v3319_v0 = vld [vmem:[%s3698_s28 + $0x5a4] ss:$8 sps:$4 sm:$0xff]  }
  0x49   : > { %2303 = vmatpush1.bf16.msra.mxu0 %v3233_v1  ;;  %2140 = vmatprep.subr.bf16.mxu1 %v3234_v2  ;;  %v3314_v1 = vld [vmem:[%s3698_s28 + $0x1a0] ss:$8 sps:$4 sm:$0xff]  }
  0x4a   : > { %2304 = vmatprep.subr.bf16.mxu0 %v3236_v3  ;;  %v3317_v2 = vld [vmem:[%s3698_s28 + $0x5a0] ss:$8 sps:$4 sm:$0xff]   ;;  %v3322_v3 = vld [vmem:[%s3698_s28 + $0x1b4] ss:$8 sps:$4 sm:$0xff]  }
  0x4c   : > { %2141 = vmatpush1.bf16.msra.mxu1 %v3238_v5  ;;  %v3320_v5 = vld [vmem:[%s3698_s28 + $0x1b0] ss:$8 sps:$4 sm:$0xff]  }
  0x4d   : > { %2305 = vmatpush1.bf16.msra.mxu0 %v3239_v6  ;;  %2142 = vmatprep.subr.bf16.mxu1 %v3240_v7  ;;  %v3323_v6 = vld [vmem:[%s3698_s28 + $0x5b0] ss:$8 sps:$4 sm:$0xff]   ;;  %v3328_v7 = vld [vmem:[%s3698_s28 + $0x1c4] ss:$8 sps:$4 sm:$0xff]  }
  0x4e   : > { %2306 = vmatprep.subr.bf16.mxu0 %v3242_v8  ;;  %v3331_v8 = vld [vmem:[%s3698_s28 + $0x5c4] ss:$8 sps:$4 sm:$0xff]  }
  0x50   : > { %2143 = vmatpush1.bf16.msra.mxu1 %v3244_v9  ;;  %v3326_v9 = vld [vmem:[%s3698_s28 + $0x1c0] ss:$8 sps:$4 sm:$0xff]  }
  0x51   : > { %2307 = vmatpush1.bf16.msra.mxu0 %v3245_v10  ;;  %2144 = vmatprep.subr.bf16.mxu1 %v3246_v11  ;;  %v3329_v10 = vld [vmem:[%s3698_s28 + $0x5c0] ss:$8 sps:$4 sm:$0xff]   ;;  %v3334_v11 = vld [vmem:[%s3698_s28 + $0x1d4] ss:$8 sps:$4 sm:$0xff]  }
  0x52   : > { %2308 = vmatprep.subr.bf16.mxu0 %v3248_v12  ;;  %v3337_v12 = vld [vmem:[%s3698_s28 + $0x5d4] ss:$8 sps:$4 sm:$0xff]  }
  0x54   : > { %2145 = vmatpush1.bf16.msra.mxu1 %v3250_v13  ;;  %v3332_v13 = vld [vmem:[%s3698_s28 + $0x1d0] ss:$8 sps:$4 sm:$0xff]  }
  0x55   : > { %2309 = vmatpush1.bf16.msra.mxu0 %v3251_v14  ;;  %2155 = vmatprep.subr.bf16.mxu1 %v3255_v15  ;;  %v3335_v14 = vld [vmem:[%s3698_s28 + $0x5d0] ss:$8 sps:$4 sm:$0xff]   ;;  %v3340_v15 = vld [vmem:[%s3698_s28 + $0x1e4] ss:$8 sps:$4 sm:$0xff]  }
  0x56   : > { %2319 = vmatprep.subr.bf16.mxu0 %v3259_v16  ;;  %v3343_v16 = vld [vmem:[%s3698_s28 + $0x5e4] ss:$8 sps:$4 sm:$0xff]  }
  0x57   : > { %2147 = vmatmul.mubr.bf16.vlgmr.msra.gmra.mrb[0].mxu1 %v3785_v17 }
  0x58   : > { %2311 = vmatmul.mubr.bf16.vlgmr.msra.gmra.mrb[0].mxu0 %v3788_v18  ;;  %2156 = vmatpush1.bf16.msra.mxu1 %v3253_v19  ;;  %v536_v19 = vcombine.high %v3753_v53, %v3753_v53  ;;  %v3344_v53 = vld [vmem:[%s3698_s28 + $0x1f0] ss:$8 sps:$4 sm:$0xff]  }
  0x59   : > { %2320 = vmatpush1.bf16.msra.mxu0 %v3257_v20  ;;  %2157 = vmatprep.subr.bf16.mxu1 %v3262_v21  ;;  %v585_v20 = vcombine.high %v3760_v57, %v3760_v57  ;;  %v3338_v21 = vld [vmem:[%s3698_s28 + $0x1e0] ss:$8 sps:$4 sm:$0xff]   ;;  %v3347_v57 = vld [vmem:[%s3698_s28 + $0x5f0] ss:$8 sps:$4 sm:$0xff]  }
  0x5a   : > { %2321 = vmatprep.subr.bf16.mxu0 %v3265_v22  ;;  %2187 = vmatprep.mubr.bf16.mxu1 %v583_v23  ;;  %v3341_v22 = vld [vmem:[%s3698_s28 + $0x5e0] ss:$8 sps:$4 sm:$0xff]   ;;  %v3346_v23 = vld [vmem:[%s3698_s28 + $0x1f4] ss:$8 sps:$4 sm:$0xff]  }
  0x5b   : > { %2351 = vmatprep.mubr.bf16.mxu0 %v632_v24  ;;  %v3349_v24 = vld [vmem:[%s3698_s28 + $0x5f4] ss:$8 sps:$4 sm:$0xff]  }
  0x5c   : > { %2158 = vmatpush1.bf16.msra.mxu1 %v3260_v25  ;;  %v3857_v25 = vrot.slane %v536_v19, %v3748_v50  ;;  %v3416_v19 = vld [vmem:[%s3698_s28 + $0x2b0] ss:$8 sps:$4 sm:$0xff]  }
  0x5d   : > { %2322 = vmatpush1.bf16.msra.mxu0 %v3263_v26  ;;  %2159 = vmatprep.subr.bf16.mxu1 %v3268_v27  ;;  %v3860_v26 = vrot.slane %v585_v20, %v3748_v50  ;;  %v3352_v27 = vld [vmem:[%s3698_s28 + $0x204] ss:$8 sps:$4 sm:$0xff]   ;;  %v3419_v20 = vld [vmem:[%s3698_s28 + $0x6b0] ss:$8 sps:$4 sm:$0xff]  }
  0x5e   : > { %2323 = vmatprep.subr.bf16.mxu0 %v3271_v28  ;;  %v3355_v28 = vld [vmem:[%s3698_s28 + $0x604] ss:$8 sps:$4 sm:$0xff]  }
  0x60   : > { %2160 = vmatpush1.bf16.msra.mxu1 %v3266_v29  ;;  %v552_v29 = vcombine.high %v3857_v25, %v3857_v25 }
  0x61   : > { %2324 = vmatpush1.bf16.msra.mxu0 %v3269_v30  ;;  %2161 = vmatprep.subr.bf16.mxu1 %v3274_v31  ;;  %v601_v30 = vcombine.high %v3860_v26, %v3860_v26  ;;  %v581_v31 = vcombine.high %v3785_v17, %v3785_v17 }
  0x62   : > { %2325 = vmatprep.subr.bf16.mxu0 %v3277_v32  ;;  %v630_v32 = vcombine.high %v3788_v18, %v3788_v18  ;;  %v3356_v18 = vld [vmem:[%s3698_s28 + $0x210] ss:$8 sps:$4 sm:$0xff]  }
  0x63   : > { %v3882_v17 = vrot.slane %v601_v30, %v3748_v50  ;;  %v3439_v30 = vld [vmem:[%s3698_s28 + $0x6e4] ss:$8 sps:$4 sm:$0xff]  }
  0x64   : > { %2162 = vmatpush1.bf16.msra.mxu1 %v3272_v33  ;;  %v3350_v33 = vld [vmem:[%s3698_s28 + $0x200] ss:$8 sps:$4 sm:$0xff]  }
  0x65   : > { %2326 = vmatpush1.bf16.msra.mxu0 %v3275_v34  ;;  %2163 = vmatprep.subr.bf16.mxu1 %v3280_v35  ;;  %v3353_v34 = vld [vmem:[%s3698_s28 + $0x600] ss:$8 sps:$4 sm:$0xff]   ;;  %v3358_v35 = vld [vmem:[%s3698_s28 + $0x214] ss:$8 sps:$4 sm:$0xff]  }
  0x66   : > { %2327 = vmatprep.subr.bf16.mxu0 %v3283_v36  ;;  %v3361_v36 = vld [vmem:[%s3698_s28 + $0x614] ss:$8 sps:$4 sm:$0xff]  }
  0x68   : > { %2164 = vmatpush1.bf16.msra.mxu1 %v3278_v37  ;;  %v3879_v37 = vrot.slane %v552_v29, %v3748_v50  ;;  %v3436_v29 = vld [vmem:[%s3698_s28 + $0x2e4] ss:$8 sps:$4 sm:$0xff]  }
  0x69   : > { %2328 = vmatpush1.bf16.msra.mxu0 %v3281_v38  ;;  %2165 = vmatprep.subr.bf16.mxu1 %v3286_v39  ;;  %v3359_v38 = vld [vmem:[%s3698_s28 + $0x610] ss:$8 sps:$4 sm:$0xff]   ;;  %v3364_v39 = vld [vmem:[%s3698_s28 + $0x224] ss:$8 sps:$4 sm:$0xff]  }
  0x6a   : > { %2329 = vmatprep.subr.bf16.mxu0 %v3289_v40  ;;  %v3367_v40 = vld [vmem:[%s3698_s28 + $0x624] ss:$8 sps:$4 sm:$0xff]  }
  0x6c   : > { %2166 = vmatpush1.bf16.msra.mxu1 %v3284_v41  ;;  %v3362_v41 = vld [vmem:[%s3698_s28 + $0x220] ss:$8 sps:$4 sm:$0xff]  }
  0x6d   : > { %2330 = vmatpush1.bf16.msra.mxu0 %v3287_v42  ;;  %2167 = vmatprep.subr.bf16.mxu1 %v3292_v43  ;;  %v3365_v42 = vld [vmem:[%s3698_s28 + $0x620] ss:$8 sps:$4 sm:$0xff]   ;;  %v3370_v43 = vld [vmem:[%s3698_s28 + $0x234] ss:$8 sps:$4 sm:$0xff]  }
  0x6e   : > { %2331 = vmatprep.subr.bf16.mxu0 %v3295_v45  ;;  %v3373_v45 = vld [vmem:[%s3698_s28 + $0x634] ss:$8 sps:$4 sm:$0xff]  }
  0x70   : > { %2168 = vmatpush1.bf16.msra.mxu1 %v3290_v46  ;;  %v3368_v46 = vld [vmem:[%s3698_s28 + $0x230] ss:$8 sps:$4 sm:$0xff]  }
  0x71   : > { %2332 = vmatpush1.bf16.msra.mxu0 %v3293_v47  ;;  %2169 = vmatprep.subr.bf16.mxu1 %v3298_v48  ;;  %v3371_v47 = vld [vmem:[%s3698_s28 + $0x630] ss:$8 sps:$4 sm:$0xff]   ;;  %v3376_v48 = vld [vmem:[%s3698_s28 + $0x244] ss:$8 sps:$4 sm:$0xff]  }
  0x72   : > { %2333 = vmatprep.subr.bf16.mxu0 %v3301_v49  ;;  %v3379_v49 = vld [vmem:[%s3698_s28 + $0x644] ss:$8 sps:$4 sm:$0xff]  }
  0x74   : > { %2170 = vmatpush1.bf16.msra.mxu1 %v3296_v51  ;;  %v3374_v51 = vld [vmem:[%s3698_s28 + $0x240] ss:$8 sps:$4 sm:$0xff]  }
  0x75   : > { %2334 = vmatpush1.bf16.msra.mxu0 %v3299_v52  ;;  %2171 = vmatprep.subr.bf16.mxu1 %v3304_v54  ;;  %v3377_v52 = vld [vmem:[%s3698_s28 + $0x640] ss:$8 sps:$4 sm:$0xff]   ;;  %v3382_v54 = vld [vmem:[%s3698_s28 + $0x254] ss:$8 sps:$4 sm:$0xff]  }
  0x76   : > { %2335 = vmatprep.subr.bf16.mxu0 %v3307_v55  ;;  %v3385_v55 = vld [vmem:[%s3698_s28 + $0x654] ss:$8 sps:$4 sm:$0xff]  }
  0x78   : > { %2172 = vmatpush1.bf16.msra.mxu1 %v3302_v56  ;;  %v3380_v56 = vld [vmem:[%s3698_s28 + $0x250] ss:$8 sps:$4 sm:$0xff]  }
  0x79   : > { %2336 = vmatpush1.bf16.msra.mxu0 %v3305_v58  ;;  %2173 = vmatprep.subr.bf16.mxu1 %v3310_v59  ;;  %v3383_v58 = vld [vmem:[%s3698_s28 + $0x650] ss:$8 sps:$4 sm:$0xff]   ;;  %v3388_v59 = vld [vmem:[%s3698_s28 + $0x264] ss:$8 sps:$4 sm:$0xff]  }
  0x7a   : > { %2337 = vmatprep.subr.bf16.mxu0 %v3313_v60  ;;  %v3391_v60 = vld [vmem:[%s3698_s28 + $0x664] ss:$8 sps:$4 sm:$0xff]  }
  0x7c   : > { %2174 = vmatpush1.bf16.msra.mxu1 %v3308_v61  ;;  %v3386_v61 = vld [vmem:[%s3698_s28 + $0x260] ss:$8 sps:$4 sm:$0xff]  }
  0x7d   : > { %2338 = vmatpush1.bf16.msra.mxu0 %v3311_v62  ;;  %2175 = vmatprep.subr.bf16.mxu1 %v3316_v63  ;;  %v3389_v62 = vld [vmem:[%s3698_s28 + $0x660] ss:$8 sps:$4 sm:$0xff]   ;;  %v3394_v63 = vld [vmem:[%s3698_s28 + $0x274] ss:$8 sps:$4 sm:$0xff]  }
  0x7e   : > { %2339 = vmatprep.subr.bf16.mxu0 %v3319_v0  ;;  %v3397_v0 = vld [vmem:[%s3698_s28 + $0x674] ss:$8 sps:$4 sm:$0xff]  }
  0x80   : > { %2176 = vmatpush1.bf16.msra.mxu1 %v3314_v1  ;;  %v3392_v1 = vld [vmem:[%s3698_s28 + $0x270] ss:$8 sps:$4 sm:$0xff]  }
  0x81   : > { %2340 = vmatpush1.bf16.msra.mxu0 %v3317_v2  ;;  %2177 = vmatprep.subr.bf16.mxu1 %v3322_v3  ;;  %v3395_v2 = vld [vmem:[%s3698_s28 + $0x670] ss:$8 sps:$4 sm:$0xff]   ;;  %v3400_v3 = vld [vmem:[%s3698_s28 + $0x284] ss:$8 sps:$4 sm:$0xff]  }
  0x82   : > { %2341 = vmatprep.subr.bf16.mxu0 %v3325_v4  ;;  %v3403_v4 = vld [vmem:[%s3698_s28 + $0x684] ss:$8 sps:$4 sm:$0xff]  }
  0x84   : > { %2178 = vmatpush1.bf16.msra.mxu1 %v3320_v5  ;;  %v3398_v5 = vld [vmem:[%s3698_s28 + $0x280] ss:$8 sps:$4 sm:$0xff]  }
  0x85   : > { %2342 = vmatpush1.bf16.msra.mxu0 %v3323_v6  ;;  %2179 = vmatprep.subr.bf16.mxu1 %v3328_v7  ;;  %v3401_v6 = vld [vmem:[%s3698_s28 + $0x680] ss:$8 sps:$4 sm:$0xff]   ;;  %v3406_v7 = vld [vmem:[%s3698_s28 + $0x294] ss:$8 sps:$4 sm:$0xff]  }
  0x86   : > { %2343 = vmatprep.subr.bf16.mxu0 %v3331_v8  ;;  %v3409_v8 = vld [vmem:[%s3698_s28 + $0x694] ss:$8 sps:$4 sm:$0xff]  }
  0x88   : > { %2180 = vmatpush1.bf16.msra.mxu1 %v3326_v9  ;;  %v3404_v9 = vld [vmem:[%s3698_s28 + $0x290] ss:$8 sps:$4 sm:$0xff]  }
  0x89   : > { %2344 = vmatpush1.bf16.msra.mxu0 %v3329_v10  ;;  %2181 = vmatprep.subr.bf16.mxu1 %v3334_v11  ;;  %v3407_v10 = vld [vmem:[%s3698_s28 + $0x690] ss:$8 sps:$4 sm:$0xff]   ;;  %v3412_v11 = vld [vmem:[%s3698_s28 + $0x2a4] ss:$8 sps:$4 sm:$0xff]  }
  0x8a   : > { %2345 = vmatprep.subr.bf16.mxu0 %v3337_v12  ;;  %v3415_v12 = vld [vmem:[%s3698_s28 + $0x6a4] ss:$8 sps:$4 sm:$0xff]  }
  0x8c   : > { %2182 = vmatpush1.bf16.msra.mxu1 %v3332_v13  ;;  %v3410_v13 = vld [vmem:[%s3698_s28 + $0x2a0] ss:$8 sps:$4 sm:$0xff]  }
  0x8d   : > { %2346 = vmatpush1.bf16.msra.mxu0 %v3335_v14  ;;  %2183 = vmatprep.subr.bf16.mxu1 %v3340_v15  ;;  %v3413_v14 = vld [vmem:[%s3698_s28 + $0x6a0] ss:$8 sps:$4 sm:$0xff]   ;;  %v3418_v15 = vld [vmem:[%s3698_s28 + $0x2b4] ss:$8 sps:$4 sm:$0xff]  }
  0x8e   : > { %2347 = vmatprep.subr.bf16.mxu0 %v3343_v16  ;;  %v3421_v16 = vld [vmem:[%s3698_s28 + $0x6b4] ss:$8 sps:$4 sm:$0xff]  }
  0x90   : > { %2184 = vmatpush1.bf16.msra.mxu1 %v3338_v21  ;;  %v3424_v21 = vld [vmem:[%s3698_s28 + $0x2c4] ss:$8 sps:$4 sm:$0xff]  }
  0x91   : > { %2348 = vmatpush1.bf16.msra.mxu0 %v3341_v22  ;;  %2185 = vmatprep.subr.bf16.mxu1 %v3346_v23  ;;  %v3427_v22 = vld [vmem:[%s3698_s28 + $0x6c4] ss:$8 sps:$4 sm:$0xff]   ;;  %v3422_v23 = vld [vmem:[%s3698_s28 + $0x2c0] ss:$8 sps:$4 sm:$0xff]  }
  0x92   : > { %2349 = vmatprep.subr.bf16.mxu0 %v3349_v24  ;;  %v3425_v24 = vld [vmem:[%s3698_s28 + $0x6c0] ss:$8 sps:$4 sm:$0xff]  }
  0x94   : > { %2186 = vmatpush1.bf16.msra.mxu1 %v3344_v53  ;;  %v3430_v53 = vld [vmem:[%s3698_s28 + $0x2d4] ss:$8 sps:$4 sm:$0xff]  }
  0x95   : > { %2350 = vmatpush1.bf16.msra.mxu0 %v3347_v57  ;;  %2196 = vmatprep.subr.bf16.mxu1 %v3352_v27  ;;  %v3433_v57 = vld [vmem:[%s3698_s28 + $0x6d4] ss:$8 sps:$4 sm:$0xff]   ;;  %v3428_v27 = vld [vmem:[%s3698_s28 + $0x2d0] ss:$8 sps:$4 sm:$0xff]  }
  0x96   : > { %2360 = vmatprep.subr.bf16.mxu0 %v3355_v28  ;;  %v3431_v28 = vld [vmem:[%s3698_s28 + $0x6d0] ss:$8 sps:$4 sm:$0xff]  }
  0x97   : > { %2188 = vmatmul.mubr.bf16.vlgmr.msra.gmra.mrb[0].mxu1 %v581_v31  ;;  %v3434_v31 = vld [vmem:[%s3698_s28 + $0x2e0] ss:$8 sps:$4 sm:$0xff]  }
  0x98   : > { %2352 = vmatmul.mubr.bf16.vlgmr.msra.gmra.mrb[0].mxu0 %v630_v32  ;;  %2197 = vmatpush1.bf16.msra.mxu1 %v3350_v33  ;;  %v3437_v32 = vld [vmem:[%s3698_s28 + $0x6e0] ss:$8 sps:$4 sm:$0xff]   ;;  %v3442_v33 = vld [vmem:[%s3698_s28 + $0x2f4] ss:$8 sps:$4 sm:$0xff]  }
  0x99   : > { %2361 = vmatpush1.bf16.msra.mxu0 %v3353_v34  ;;  %2198 = vmatprep.subr.bf16.mxu1 %v3358_v35  ;;  %v3445_v34 = vld [vmem:[%s3698_s28 + $0x6f4] ss:$8 sps:$4 sm:$0xff]   ;;  %v3440_v35 = vld [vmem:[%s3698_s28 + $0x2f0] ss:$8 sps:$4 sm:$0xff]  }
  0x9a   : > { %2362 = vmatprep.subr.bf16.mxu0 %v3361_v36  ;;  %2228 = vmatprep.mubr.bf16.mxu1 %v3879_v37  ;;  %v3443_v36 = vld [vmem:[%s3698_s28 + $0x6f0] ss:$8 sps:$4 sm:$0xff]  }
  0x9b   : > { %2392 = vmatprep.mubr.bf16.mxu0 %v3882_v17 }
  0x9c   : > { %2199 = vmatpush1.bf16.msra.mxu1 %v3356_v18  ;;  %v3448_v18 = vld [vmem:[%s3698_s28 + $0x304] ss:$8 sps:$4 sm:$0xff]  }
  0x9d   : > { %2363 = vmatpush1.bf16.msra.mxu0 %v3359_v38  ;;  %2200 = vmatprep.subr.bf16.mxu1 %v3364_v39  ;;  %v3451_v38 = vld [vmem:[%s3698_s28 + $0x704] ss:$8 sps:$4 sm:$0xff]   ;;  %v3948_v39 = vrot.slane %v3857_v25, %v3748_v50  ;;  %v584_v25 = vcombine.high %v3879_v37, %v3879_v37 }
  0x9e   : > { %2364 = vmatprep.subr.bf16.mxu0 %v3367_v40  ;;  %v3952_v40 = vrot.slane %v3860_v26, %v3748_v50  ;;  %v3452_v26 = vld [vmem:[%s3698_s28 + $0x310] ss:$8 sps:$4 sm:$0xff]   ;;  %v3460_v37 = vld [vmem:[%s3698_s28 + $0x324] ss:$8 sps:$4 sm:$0xff]  }
  0xa0   : > { %2201 = vmatpush1.bf16.msra.mxu1 %v3362_v41  ;;  %v3446_v41 = vld [vmem:[%s3698_s28 + $0x300] ss:$8 sps:$4 sm:$0xff]  }
  0xa1   : > { %2365 = vmatpush1.bf16.msra.mxu0 %v3365_v42  ;;  %2202 = vmatprep.subr.bf16.mxu1 %v3370_v43  ;;  %v3449_v42 = vld [vmem:[%s3698_s28 + $0x700] ss:$8 sps:$4 sm:$0xff]   ;;  %v3454_v43 = vld [vmem:[%s3698_s28 + $0x314] ss:$8 sps:$4 sm:$0xff]  }
  0xa2   : > { %2366 = vmatprep.subr.bf16.mxu0 %v3373_v45  ;;  %v3457_v45 = vld [vmem:[%s3698_s28 + $0x714] ss:$8 sps:$4 sm:$0xff]  }
  0xa4   : > { %2203 = vmatpush1.bf16.msra.mxu1 %v3368_v46  ;;  %v633_v46 = vcombine.high %v3882_v17, %v3882_v17  ;;  %v3458_v17 = vld [vmem:[%s3698_s28 + $0x320] ss:$8 sps:$4 sm:$0xff]  }
  0xa5   : > { %2367 = vmatpush1.bf16.msra.mxu0 %v3371_v47  ;;  %2204 = vmatprep.subr.bf16.mxu1 %v3376_v48  ;;  %v3455_v47 = vld [vmem:[%s3698_s28 + $0x710] ss:$8 sps:$4 sm:$0xff]   ;;  %v3463_v48 = vld [vmem:[%s3698_s28 + $0x724] ss:$8 sps:$4 sm:$0xff]  }
  0xa6   : > { %2368 = vmatprep.subr.bf16.mxu0 %v3379_v49  ;;  %v3461_v49 = vld [vmem:[%s3698_s28 + $0x720] ss:$8 sps:$4 sm:$0xff]  }
  0xa8   : > { %2205 = vmatpush1.bf16.msra.mxu1 %v3374_v51  ;;  %v3466_v51 = vld [vmem:[%s3698_s28 + $0x334] ss:$8 sps:$4 sm:$0xff]  }
  0xa9   : > { %2369 = vmatpush1.bf16.msra.mxu0 %v3377_v52  ;;  %2206 = vmatprep.subr.bf16.mxu1 %v3382_v54  ;;  %v3469_v52 = vld [vmem:[%s3698_s28 + $0x734] ss:$8 sps:$4 sm:$0xff]   ;;  %v3464_v54 = vld [vmem:[%s3698_s28 + $0x330] ss:$8 sps:$4 sm:$0xff]  }
  0xaa   : > { %2370 = vmatprep.subr.bf16.mxu0 %v3385_v55  ;;  %v3467_v55 = vld [vmem:[%s3698_s28 + $0x730] ss:$8 sps:$4 sm:$0xff]  }
  0xac   : > { %2207 = vmatpush1.bf16.msra.mxu1 %v3380_v56  ;;  %v3472_v56 = vld [vmem:[%s3698_s28 + $0x344] ss:$8 sps:$4 sm:$0xff]  }
  0xad   : > { %2371 = vmatpush1.bf16.msra.mxu0 %v3383_v58  ;;  %2208 = vmatprep.subr.bf16.mxu1 %v3388_v59  ;;  %v3475_v58 = vld [vmem:[%s3698_s28 + $0x744] ss:$8 sps:$4 sm:$0xff]   ;;  %v3470_v59 = vld [vmem:[%s3698_s28 + $0x340] ss:$8 sps:$4 sm:$0xff]  }
  0xae   : > { %2372 = vmatprep.subr.bf16.mxu0 %v3391_v60  ;;  %v3473_v60 = vld [vmem:[%s3698_s28 + $0x740] ss:$8 sps:$4 sm:$0xff]  }
  0xb0   : > { %2209 = vmatpush1.bf16.msra.mxu1 %v3386_v61  ;;  %v3478_v61 = vld [vmem:[%s3698_s28 + $0x354] ss:$8 sps:$4 sm:$0xff]  }
  0xb1   : > { %2373 = vmatpush1.bf16.msra.mxu0 %v3389_v62  ;;  %2210 = vmatprep.subr.bf16.mxu1 %v3394_v63  ;;  %v3481_v62 = vld [vmem:[%s3698_s28 + $0x754] ss:$8 sps:$4 sm:$0xff]   ;;  %v3476_v63 = vld [vmem:[%s3698_s28 + $0x350] ss:$8 sps:$4 sm:$0xff]  }
  0xb2   : > { %2374 = vmatprep.subr.bf16.mxu0 %v3397_v0  ;;  %v3479_v0 = vld [vmem:[%s3698_s28 + $0x750] ss:$8 sps:$4 sm:$0xff]  }
  0xb4   : > { %2211 = vmatpush1.bf16.msra.mxu1 %v3392_v1  ;;  %v3484_v1 = vld [vmem:[%s3698_s28 + $0x364] ss:$8 sps:$4 sm:$0xff]  }
  0xb5   : > { %2375 = vmatpush1.bf16.msra.mxu0 %v3395_v2  ;;  %2212 = vmatprep.subr.bf16.mxu1 %v3400_v3  ;;  %v3487_v2 = vld [vmem:[%s3698_s28 + $0x764] ss:$8 sps:$4 sm:$0xff]   ;;  %v3482_v3 = vld [vmem:[%s3698_s28 + $0x360] ss:$8 sps:$4 sm:$0xff]  }
  0xb6   : > { %2376 = vmatprep.subr.bf16.mxu0 %v3403_v4  ;;  %v3485_v4 = vld [vmem:[%s3698_s28 + $0x760] ss:$8 sps:$4 sm:$0xff]  }
  0xb8   : > { %2213 = vmatpush1.bf16.msra.mxu1 %v3398_v5  ;;  %v3490_v5 = vld [vmem:[%s3698_s28 + $0x374] ss:$8 sps:$4 sm:$0xff]  }
  0xb9   : > { %2377 = vmatpush1.bf16.msra.mxu0 %v3401_v6  ;;  %2214 = vmatprep.subr.bf16.mxu1 %v3406_v7  ;;  %v3493_v6 = vld [vmem:[%s3698_s28 + $0x774] ss:$8 sps:$4 sm:$0xff]   ;;  %v3488_v7 = vld [vmem:[%s3698_s28 + $0x370] ss:$8 sps:$4 sm:$0xff]  }
  0xba   : > { %2378 = vmatprep.subr.bf16.mxu0 %v3409_v8  ;;  %v3491_v8 = vld [vmem:[%s3698_s28 + $0x770] ss:$8 sps:$4 sm:$0xff]  }
  0xbc   : > { %2215 = vmatpush1.bf16.msra.mxu1 %v3404_v9  ;;  %v3496_v9 = vld [vmem:[%s3698_s28 + $0x384] ss:$8 sps:$4 sm:$0xff]  }
  0xbd   : > { %2379 = vmatpush1.bf16.msra.mxu0 %v3407_v10  ;;  %2216 = vmatprep.subr.bf16.mxu1 %v3412_v11  ;;  %v3499_v10 = vld [vmem:[%s3698_s28 + $0x784] ss:$8 sps:$4 sm:$0xff]   ;;  %v3494_v11 = vld [vmem:[%s3698_s28 + $0x380] ss:$8 sps:$4 sm:$0xff]  }
  0xbe   : > { %2380 = vmatprep.subr.bf16.mxu0 %v3415_v12  ;;  %v3497_v12 = vld [vmem:[%s3698_s28 + $0x780] ss:$8 sps:$4 sm:$0xff]  }
  0xc0   : > { %2217 = vmatpush1.bf16.msra.mxu1 %v3410_v13  ;;  %v3502_v13 = vld [vmem:[%s3698_s28 + $0x394] ss:$8 sps:$4 sm:$0xff]  }
  0xc1   : > { %2381 = vmatpush1.bf16.msra.mxu0 %v3413_v14  ;;  %2218 = vmatprep.subr.bf16.mxu1 %v3418_v15  ;;  %v3505_v14 = vld [vmem:[%s3698_s28 + $0x794] ss:$8 sps:$4 sm:$0xff]   ;;  %v3500_v15 = vld [vmem:[%s3698_s28 + $0x390] ss:$8 sps:$4 sm:$0xff]  }
  0xc2   : > { %2382 = vmatprep.subr.bf16.mxu0 %v3421_v16  ;;  %v3503_v16 = vld [vmem:[%s3698_s28 + $0x790] ss:$8 sps:$4 sm:$0xff]  }
  0xc4   : > { %2219 = vmatpush1.bf16.msra.mxu1 %v3416_v19  ;;  %v3508_v19 = vld [vmem:[%s3698_s28 + $0x3a4] ss:$8 sps:$4 sm:$0xff]  }
  0xc5   : > { %2383 = vmatpush1.bf16.msra.mxu0 %v3419_v20  ;;  %2220 = vmatprep.subr.bf16.mxu1 %v3424_v21  ;;  %v3511_v20 = vld [vmem:[%s3698_s28 + $0x7a4] ss:$8 sps:$4 sm:$0xff]   ;;  %v3506_v21 = vld [vmem:[%s3698_s28 + $0x3a0] ss:$8 sps:$4 sm:$0xff]  }
  0xc6   : > { %2384 = vmatprep.subr.bf16.mxu0 %v3427_v22  ;;  %v3509_v22 = vld [vmem:[%s3698_s28 + $0x7a0] ss:$8 sps:$4 sm:$0xff]  }
  0xc8   : > { %2221 = vmatpush1.bf16.msra.mxu1 %v3422_v23  ;;  %v3514_v23 = vld [vmem:[%s3698_s28 + $0x3b4] ss:$8 sps:$4 sm:$0xff]  }
  0xc9   : > { %2385 = vmatpush1.bf16.msra.mxu0 %v3425_v24  ;;  %2222 = vmatprep.subr.bf16.mxu1 %v3430_v53  ;;  %v3517_v24 = vld [vmem:[%s3698_s28 + $0x7b4] ss:$8 sps:$4 sm:$0xff]   ;;  %v3512_v53 = vld [vmem:[%s3698_s28 + $0x3b0] ss:$8 sps:$4 sm:$0xff]  }
  0xca   : > { %2386 = vmatprep.subr.bf16.mxu0 %v3433_v57  ;;  %v3515_v57 = vld [vmem:[%s3698_s28 + $0x7b0] ss:$8 sps:$4 sm:$0xff]  }
  0xcc   : > { %2223 = vmatpush1.bf16.msra.mxu1 %v3428_v27  ;;  %v3520_v27 = vld [vmem:[%s3698_s28 + $0x3c4] ss:$8 sps:$4 sm:$0xff]  }
  0xcd   : > { %2387 = vmatpush1.bf16.msra.mxu0 %v3431_v28  ;;  %2224 = vmatprep.subr.bf16.mxu1 %v3436_v29  ;;  %v3523_v28 = vld [vmem:[%s3698_s28 + $0x7c4] ss:$8 sps:$4 sm:$0xff]   ;;  %v3518_v29 = vld [vmem:[%s3698_s28 + $0x3c0] ss:$8 sps:$4 sm:$0xff]  }
  0xce   : > { %2388 = vmatprep.subr.bf16.mxu0 %v3439_v30  ;;  %v3521_v30 = vld [vmem:[%s3698_s28 + $0x7c0] ss:$8 sps:$4 sm:$0xff]  }
  0xd0   : > { %2225 = vmatpush1.bf16.msra.mxu1 %v3434_v31  ;;  %v3526_v31 = vld [vmem:[%s3698_s28 + $0x3d4] ss:$8 sps:$4 sm:$0xff]  }
  0xd1   : > { %2389 = vmatpush1.bf16.msra.mxu0 %v3437_v32  ;;  %2226 = vmatprep.subr.bf16.mxu1 %v3442_v33  ;;  %v3529_v32 = vld [vmem:[%s3698_s28 + $0x7d4] ss:$8 sps:$4 sm:$0xff]   ;;  %v3524_v33 = vld [vmem:[%s3698_s28 + $0x3d0] ss:$8 sps:$4 sm:$0xff]  }
  0xd2   : > { %2390 = vmatprep.subr.bf16.mxu0 %v3445_v34  ;;  %v3527_v34 = vld [vmem:[%s3698_s28 + $0x7d0] ss:$8 sps:$4 sm:$0xff]  }
  0xd4   : > { %2227 = vmatpush1.bf16.msra.mxu1 %v3440_v35  ;;  %v3532_v35 = vld [vmem:[%s3698_s28 + $0x3e4] ss:$8 sps:$4 sm:$0xff]  }
  0xd5   : > { %2391 = vmatpush1.bf16.msra.mxu0 %v3443_v36  ;;  %2237 = vmatprep.subr.bf16.mxu1 %v3448_v18  ;;  %v3535_v36 = vld [vmem:[%s3698_s28 + $0x7e4] ss:$8 sps:$4 sm:$0xff]   ;;  %v3530_v18 = vld [vmem:[%s3698_s28 + $0x3e0] ss:$8 sps:$4 sm:$0xff]  }
  0xd6   : > { %2401 = vmatprep.subr.bf16.mxu0 %v3451_v38  ;;  %v3533_v38 = vld [vmem:[%s3698_s28 + $0x7e0] ss:$8 sps:$4 sm:$0xff]  }
  0xd7   : > { %2229 = vmatmul.mubr.bf16.vlgmr.msra.gmra.mrb[0].mxu1 %v3948_v39 }
  0xd8   : > { %2393 = vmatmul.mubr.bf16.vlgmr.msra.gmra.mrb[0].mxu0 %v3952_v40  ;;  %2238 = vmatpush1.bf16.msra.mxu1 %v3446_v41  ;;  %v3538_v41 = vld [vmem:[%s3698_s28 + $0x3f4] ss:$8 sps:$4 sm:$0xff]  }
  0xd9   : > { %2402 = vmatpush1.bf16.msra.mxu0 %v3449_v42  ;;  %2239 = vmatprep.subr.bf16.mxu1 %v3454_v43  ;;  %v3541_v42 = vld [vmem:[%s3698_s28 + $0x7f4] ss:$8 sps:$4 sm:$0xff]   ;;  %v4021_v43 = vld.sshfl [vmem:[%s3693_s24 + $0x10] sm:$0x11 pattern:$0x75316420] }
  0xda   : > { %2403 = vmatprep.subr.bf16.mxu0 %v3457_v45  ;;  %2269 = vmatprep.mubr.bf16.mxu1 %v584_v25  ;;  %v3536_v45 = vld [vmem:[%s3698_s28 + $0x3f0] ss:$8 sps:$4 sm:$0xff]  }
  0xdb   : > { %2433 = vmatprep.mubr.bf16.mxu0 %v633_v46  ;;  %v3539_v25 = vld [vmem:[%s3698_s28 + $0x7f0] ss:$8 sps:$4 sm:$0xff]   ;;  %v641_v46 = vcombine.high %v4021_v43, %v4021_v43 }
  0xdc   : > { %2240 = vmatpush1.bf16.msra.mxu1 %v3452_v26  ;;  %v3544_v26 = vld [vmem:[%s3698_s28 + $0x804] ss:$8 sps:$4 sm:$0xff]  }
  0xdd   : > { %2404 = vmatpush1.bf16.msra.mxu0 %v3455_v47  ;;  %2241 = vmatprep.subr.bf16.mxu1 %v3460_v37  ;;  %v582_v47 = vcombine.high %v3948_v39, %v3948_v39  ;;  %v631_v37 = vcombine.high %v3952_v40, %v3952_v40  ;;  %v3545_v39 = vld [vmem:[%s3698_s28 + $0x810] ss:$8 sps:$4 sm:$0xff]   ;;  %v3550_v40 = vld [vmem:[%s3698_s28 + $0x824] ss:$8 sps:$4 sm:$0xff]  }
  0xde   : > { %2405 = vmatprep.subr.bf16.mxu0 %v3463_v48  ;;  %v3542_v48 = vld [vmem:[%s3698_s28 + $0x800] ss:$8 sps:$4 sm:$0xff]  }
  0xe0   : > { %2242 = vmatpush1.bf16.msra.mxu1 %v3458_v17  ;;  %v655_v17 = vrot.slane %v641_v46, %v3748_v50  ;;  %v3598_v46 = vld [vmem:[%s4153_s3 + $0x60] sm:$0xff] (!%p3063_p6)  }
  0xe1   : > { %2406 = vmatpush1.bf16.msra.mxu0 %v3461_v49  ;;  %2243 = vmatprep.subr.bf16.mxu1 %v3466_v51  ;;  %v3547_v49 = vld [vmem:[%s3698_s28 + $0x814] ss:$8 sps:$4 sm:$0xff]   ;;  %v3548_v51 = vld [vmem:[%s3698_s28 + $0x820] ss:$8 sps:$4 sm:$0xff]  }
  0xe2   : > { %2407 = vmatprep.subr.bf16.mxu0 %v3469_v52  ;;  %v3553_v52 = vld [vmem:[%s3698_s28 + $0x834] ss:$8 sps:$4 sm:$0xff]  }
  0xe4   : > { %2244 = vmatpush1.bf16.msra.mxu1 %v3464_v54  ;;  %v3551_v54 = vld [vmem:[%s3698_s28 + $0x830] ss:$8 sps:$4 sm:$0xff]  }
  0xe5   : > { %2408 = vmatpush1.bf16.msra.mxu0 %v3467_v55  ;;  %2245 = vmatprep.subr.bf16.mxu1 %v3472_v56  ;;  %v3556_v55 = vld [vmem:[%s3698_s28 + $0x844] ss:$8 sps:$4 sm:$0xff]   ;;  %v3554_v56 = vld [vmem:[%s3698_s28 + $0x840] ss:$8 sps:$4 sm:$0xff]  }
  0xe6   : > { %2409 = vmatprep.subr.bf16.mxu0 %v3475_v58  ;;  %v3559_v58 = vld [vmem:[%s3698_s28 + $0x854] ss:$8 sps:$4 sm:$0xff]  }
  0xe8   : > { %2246 = vmatpush1.bf16.msra.mxu1 %v3470_v59  ;;  %v3557_v59 = vld [vmem:[%s3698_s28 + $0x850] ss:$8 sps:$4 sm:$0xff]  }
  0xe9   : > { %2410 = vmatpush1.bf16.msra.mxu0 %v3473_v60  ;;  %2247 = vmatprep.subr.bf16.mxu1 %v3478_v61  ;;  %v3562_v60 = vld [vmem:[%s3698_s28 + $0x864] ss:$8 sps:$4 sm:$0xff]   ;;  %v3560_v61 = vld [vmem:[%s3698_s28 + $0x860] ss:$8 sps:$4 sm:$0xff]  }
  0xea   : > { %2411 = vmatprep.subr.bf16.mxu0 %v3481_v62  ;;  %v3565_v62 = vld [vmem:[%s3698_s28 + $0x874] ss:$8 sps:$4 sm:$0xff]  }
  0xec   : > { %2248 = vmatpush1.bf16.msra.mxu1 %v3476_v63  ;;  %v3563_v63 = vld [vmem:[%s3698_s28 + $0x870] ss:$8 sps:$4 sm:$0xff]  }
  0xed   : > { %2412 = vmatpush1.bf16.msra.mxu0 %v3479_v0  ;;  %2249 = vmatprep.subr.bf16.mxu1 %v3484_v1  ;;  %v3568_v0 = vld [vmem:[%s3698_s28 + $0x884] ss:$8 sps:$4 sm:$0xff]   ;;  %v3566_v1 = vld [vmem:[%s3698_s28 + $0x880] ss:$8 sps:$4 sm:$0xff]  }
  0xee   : > { %2413 = vmatprep.subr.bf16.mxu0 %v3487_v2  ;;  %v3571_v2 = vld [vmem:[%s3698_s28 + $0x894] ss:$8 sps:$4 sm:$0xff]  }
  0xf0   : > { %2250 = vmatpush1.bf16.msra.mxu1 %v3482_v3  ;;  %v3569_v3 = vld [vmem:[%s3698_s28 + $0x890] ss:$8 sps:$4 sm:$0xff]  }
  0xf1   : > { %2414 = vmatpush1.bf16.msra.mxu0 %v3485_v4  ;;  %2251 = vmatprep.subr.bf16.mxu1 %v3490_v5  ;;  %v3574_v4 = vld [vmem:[%s3698_s28 + $0x8a4] ss:$8 sps:$4 sm:$0xff]   ;;  %v3572_v5 = vld [vmem:[%s3698_s28 + $0x8a0] ss:$8 sps:$4 sm:$0xff]  }
  0xf2   : > { %2415 = vmatprep.subr.bf16.mxu0 %v3493_v6  ;;  %v3577_v6 = vld [vmem:[%s3698_s28 + $0x8b4] ss:$8 sps:$4 sm:$0xff]  }
  0xf4   : > { %2252 = vmatpush1.bf16.msra.mxu1 %v3488_v7  ;;  %v3575_v7 = vld [vmem:[%s3698_s28 + $0x8b0] ss:$8 sps:$4 sm:$0xff]  }
  0xf5   : > { %2416 = vmatpush1.bf16.msra.mxu0 %v3491_v8  ;;  %2253 = vmatprep.subr.bf16.mxu1 %v3496_v9  ;;  %v3580_v8 = vld [vmem:[%s3698_s28 + $0x8c4] ss:$8 sps:$4 sm:$0xff]   ;;  %v3578_v9 = vld [vmem:[%s3698_s28 + $0x8c0] ss:$8 sps:$4 sm:$0xff]  }
  0xf6   : > { %2417 = vmatprep.subr.bf16.mxu0 %v3499_v10  ;;  %v3583_v10 = vld [vmem:[%s3698_s28 + $0x8d4] ss:$8 sps:$4 sm:$0xff]  }
  0xf8   : > { %2254 = vmatpush1.bf16.msra.mxu1 %v3494_v11  ;;  %v3581_v11 = vld [vmem:[%s3698_s28 + $0x8d0] ss:$8 sps:$4 sm:$0xff]  }
  0xf9   : > { %2418 = vmatpush1.bf16.msra.mxu0 %v3497_v12  ;;  %2255 = vmatprep.subr.bf16.mxu1 %v3502_v13  ;;  %v3586_v12 = vld [vmem:[%s3698_s28 + $0x8e4] ss:$8 sps:$4 sm:$0xff]   ;;  %v3584_v13 = vld [vmem:[%s3698_s28 + $0x8e0] ss:$8 sps:$4 sm:$0xff]  }
  0xfa   : > { %2419 = vmatprep.subr.bf16.mxu0 %v3505_v14  ;;  %v3589_v14 = vld [vmem:[%s3698_s28 + $0x8f4] ss:$8 sps:$4 sm:$0xff]  }
  0xfc   : > { %2256 = vmatpush1.bf16.msra.mxu1 %v3500_v15  ;;  %v3587_v15 = vld [vmem:[%s3698_s28 + $0x8f0] ss:$8 sps:$4 sm:$0xff]  }
  0xfd   : > { %2420 = vmatpush1.bf16.msra.mxu0 %v3503_v16  ;;  %2257 = vmatprep.subr.bf16.mxu1 %v3508_v19  ;;  %v648_v16 = vrot.slane %v4021_v43, %v3748_v50  ;;  %v3595_v43 = vld [vmem:[%s4153_s3 + $0x10] sm:$0xff] (!%p3063_p6)  }
  0xfe   : > { %2421 = vmatprep.subr.bf16.mxu0 %v3511_v20 }
 0x100   : > { %2258 = vmatpush1.bf16.msra.mxu1 %v3506_v21 }
 0x101   : > { %2422 = vmatpush1.bf16.msra.mxu0 %v3509_v22  ;;  %2259 = vmatprep.subr.bf16.mxu1 %v3514_v23  ;;  %v3646_v23 = vmov 1983009808  }
 0x102   : > { %2423 = vmatprep.subr.bf16.mxu0 %v3517_v24  ;;  %v2487_v24 = vunpack.c.l.s4 %v3646_v23 }
 0x104   : > { %2260 = vmatpush1.bf16.msra.mxu1 %v3512_v53  ;;  %v2488_v53 = vunpack.c.0.s8 %v2487_v24 }
 0x105   : > { %2424 = vmatpush1.bf16.msra.mxu0 %v3515_v57  ;;  %2261 = vmatprep.subr.bf16.mxu1 %v3520_v27 }
 0x106   : > { %2425 = vmatprep.subr.bf16.mxu0 %v3523_v28 }
 0x108   : > { %2262 = vmatpush1.bf16.msra.mxu1 %v3518_v29 }
 0x109   : > { %2426 = vmatpush1.bf16.msra.mxu0 %v3521_v30  ;;  %2263 = vmatprep.subr.bf16.mxu1 %v3526_v31  ;;  %v2491_v30 = vsub.s32 %v2488_v53, %v3740_v44 }
 0x10a   : > { %2427 = vmatprep.subr.bf16.mxu0 %v3529_v32 }
 0x10c   : > { %2264 = vmatpush1.bf16.msra.mxu1 %v3524_v33 }
 0x10d   : > { %2428 = vmatpush1.bf16.msra.mxu0 %v3527_v34  ;;  %2265 = vmatprep.subr.bf16.mxu1 %v3532_v35  ;;  %v241_v34 = vld [vmem:[#allocation2] sm:$0xf] }
 0x10e   : > { %2429 = vmatprep.subr.bf16.mxu0 %v3535_v36  ;;  %v3590_v36 = vld [vmem:[%s4153_s3 + $0x40] sm:$0xff] (!%p3063_p6)  }
 0x110   : > { %2266 = vmatpush1.bf16.msra.mxu1 %v3530_v18  ;;  %v3591_v18 = vld [vmem:[%s4153_s3] sm:$0xff] (!%p3063_p6)  }
 0x111   : > { %2430 = vmatpush1.bf16.msra.mxu0 %v3533_v38  ;;  %2267 = vmatprep.subr.bf16.mxu1 %v3538_v41  ;;  %v3592_v38 = vld [vmem:[%s4153_s3 + $0x48] sm:$0xff] (!%p3063_p6)  }
 0x112   : > { %2431 = vmatprep.subr.bf16.mxu0 %v3541_v42  ;;  %v3593_v41 = vld [vmem:[%s4153_s3 + $0x8] sm:$0xff] (!%p3063_p6)   ;;  %v3594_v42 = vld [vmem:[%s4153_s3 + $0x50] sm:$0xff] (!%p3063_p6)  }
 0x114   : > { %2268 = vmatpush1.bf16.msra.mxu1 %v3536_v45  ;;  %v3596_v45 = vld [vmem:[%s4153_s3 + $0x58] sm:$0xff] (!%p3063_p6)  }
 0x115   : > { %2432 = vmatpush1.bf16.msra.mxu0 %v3539_v25  ;;  %v3597_v25 = vld [vmem:[%s4153_s3 + $0x18] sm:$0xff] (!%p3063_p6)  }
 0x116   : > { %2442 = vmatprep.subr.bf16.mxu0 %v3544_v26  ;;  %v2505_v26 = vsub.s32 (!%p3063_p6), 0, %v3740_v44 }
 0x117   : > { %2270 = vmatmul.mubr.bf16.vlgmr.msra.gmra.mrb[0].mxu1 %v582_v47  ;;  %v2509_v47 = vsub.s32 (!%p3063_p6), 1, %v3740_v44  ;;  %v3601_v44 = vld [vmem:[%s4153_s3 + $0x28] sm:$0xff] (!%p3063_p6)  }
 0x118   : > { %2434 = vmatmul.mubr.bf16.vlgmr.msra.gmra.mrb[0].mxu0 %v631_v37  ;;  %v3599_v37 = vld [vmem:[%s4153_s3 + $0x20] sm:$0xff] (!%p3063_p6)  }
 0x119   : > { %2443 = vmatpush1.bf16.msra.mxu0 %v3542_v48  ;;  %2474 = vmatprep.mubr.bf16.mxu0 %v655_v17  ;;  %v3600_v48 = vld [vmem:[%s4153_s3 + $0x68] sm:$0xff] (!%p3063_p6)   ;;  %v2501_v17 = vld [vmem:[%s4152_s2] sm:$0x3] (!%p3063_p6) }
 0x11a   : > { %2444 = vmatprep.subr.bf16.mxu0 %v3547_v49  ;;  %v2506_v49 = vrot.slane (!%p3063_p6), %v2501_v17, %v2505_v26 }
 0x11d   : > { %2445 = vmatpush1.bf16.msra.mxu0 %v3545_v39  ;;  %v2510_v39 = vrot.slane (!%p3063_p6), %v2501_v17, %v2509_v47 }
 0x11e   : > { %2446 = vmatprep.subr.bf16.mxu0 %v3550_v40 }
 0x11f   : > { %v2511_v40 = vcombine.low (!%p3063_p6), %v2506_v49, %v2510_v39 }
 0x121   : > { %2447 = vmatpush1.bf16.msra.mxu0 %v3548_v51  ;;  %v3602_v51 = vld [vmem:[%s4153_s3 + $0x70] sm:$0xff] (!%p3063_p6)  }
 0x122   : > { %2448 = vmatprep.subr.bf16.mxu0 %v3553_v52 }
 0x125   : > { %2449 = vmatpush1.bf16.msra.mxu0 %v3551_v54  ;;  %v2518_v54 = vrot.slane (!%p3063_p6), %v2511_v40, %v2491_v30 }
 0x126   : > { %2450 = vmatprep.subr.bf16.mxu0 %v3556_v55  ;;  %v3603_v55 = vld [vmem:[%s4153_s3 + $0x30] sm:$0xff] (!%p3063_p6)  }
 0x129   : > { %2451 = vmatpush1.bf16.msra.mxu0 %v3554_v56 }
 0x12a   : > { %2452 = vmatprep.subr.bf16.mxu0 %v3559_v58  ;;  %v3604_v58 = vld [vmem:[%s4153_s3 + $0x78] sm:$0xff] (!%p3063_p6)  }
 0x12d   : > { %2453 = vmatpush1.bf16.msra.mxu0 %v3557_v59 }
 0x12e   : > { %2454 = vmatprep.subr.bf16.mxu0 %v3562_v60  ;;  %v3605_v60 = vld [vmem:[%s4153_s3 + $0x38] sm:$0xff] (!%p3063_p6)  }
 0x131   : > { %2455 = vmatpush1.bf16.msra.mxu0 %v3560_v61 }
 0x132   : > { %2456 = vmatprep.subr.bf16.mxu0 %v3565_v62 }
 0x135   : > { %2457 = vmatpush1.bf16.msra.mxu0 %v3563_v63 }
 0x136   : > { %2458 = vmatprep.subr.bf16.mxu0 %v3568_v0 }
 0x139   : > { %2459 = vmatpush1.bf16.msra.mxu0 %v3566_v1 }
 0x13a   : > { %2460 = vmatprep.subr.bf16.mxu0 %v3571_v2  ;;  %v3064_v2 = vld [vmem:[%s4154_s4] ss:$0 sm:$0xff] (!%p3063_p6) }
 0x13d   : > { %2461 = vmatpush1.bf16.msra.mxu0 %v3569_v3 }
 0x13e   : > { %2462 = vmatprep.subr.bf16.mxu0 %v3574_v4 }
 0x141   : > { %2463 = vmatpush1.bf16.msra.mxu0 %v3572_v5 }
 0x142   : > { %2464 = vmatprep.subr.bf16.mxu0 %v3577_v6 }
 0x145   : > { %2465 = vmatpush1.bf16.msra.mxu0 %v3575_v7 }
 0x146   : > { %2466 = vmatprep.subr.bf16.mxu0 %v3580_v8 }
 0x149   : > { %2467 = vmatpush1.bf16.msra.mxu0 %v3578_v9 }
 0x14a   : > { %2468 = vmatprep.subr.bf16.mxu0 %v3583_v10 }
 0x14d   : > { %2469 = vmatpush1.bf16.msra.mxu0 %v3581_v11 }
 0x14e   : > { %2470 = vmatprep.subr.bf16.mxu0 %v3586_v12 }
 0x151   : > { %2471 = vmatpush1.bf16.msra.mxu0 %v3584_v13 }
 0x152   : > { %2472 = vmatprep.subr.bf16.mxu0 %v3589_v14 }
 0x155   : > { %2473 = vmatpush1.bf16.msra.mxu0 %v3587_v15 }
 0x156   : > { %3086 = vmatprep.subr.bf16.mxu0 (!%p3063_p6), %v3590_v36 }
 0x158   : > { %2475 = vmatmul.mubr.bf16.vlgmr.msra.gmra.mrb[0].mxu0 %v648_v16 }
 0x159   : > { %3087 = vmatpush3.bf16.msra.mxu0 (!%p3063_p6), %v3591_v18 }
 0x15a   : > { %3088 = vmatprep.subr.bf16.mxu0 (!%p3063_p6), %v3592_v38 }
 0x15d   : > { %3089 = vmatpush3.bf16.msra.mxu0 (!%p3063_p6), %v3593_v41 }
 0x15e   : > { %3090 = vmatprep.subr.bf16.mxu0 (!%p3063_p6), %v3594_v42 }
 0x161   : > { %3091 = vmatpush3.bf16.msra.mxu0 (!%p3063_p6), %v3595_v43 }
 0x162   : > { %3092 = vmatprep.subr.bf16.mxu0 (!%p3063_p6), %v3596_v45 }
 0x165   : > { %3093 = vmatpush3.bf16.msra.mxu0 (!%p3063_p6), %v3597_v25 }
 0x166   : > { %3094 = vmatprep.subr.bf16.mxu0 (!%p3063_p6), %v3598_v46 }
 0x169   : > { %3095 = vmatpush3.bf16.msra.mxu0 (!%p3063_p6), %v3599_v37 }
 0x16a   : > { %3096 = vmatprep.subr.bf16.mxu0 (!%p3063_p6), %v3600_v48 }
 0x16d   : > { %3097 = vmatpush3.bf16.msra.mxu0 (!%p3063_p6), %v3601_v44 }
 0x16e   : > { %3098 = vmatprep.subr.bf16.mxu0 (!%p3063_p6), %v3602_v51 }
 0x171   : > { %3099 = vmatpush3.bf16.msra.mxu0 (!%p3063_p6), %v3603_v55 }
 0x172   : > { %3100 = vmatprep.subr.bf16.mxu0 (!%p3063_p6), %v3604_v58 }
 0x175   : > { %3101 = vmatpush3.bf16.msra.mxu0 (!%p3063_p6), %v3605_v60 }
 0x1ea   : > { %v2271_v19 = vpop.f32.mrb[0].mxu1 }
 0x1eb   : > { %v2273_v20 = vpop.f32.mrb[1].mxu1 }
 0x1ec   : > { %v2275_v21 = vpop.f32.mrb[2].mxu1 }
 0x1ed   : > { %v2276_v22 = vpop.f32.mrb[3].mxu1 }
 0x22b   : > { %v2476_v57 = vpop.f32.mrb[0].mxu0 }
 0x22c   : > { %v3108_v27 = vadd.f32 %v2476_v57, %v2271_v19  ;;  %v2478_v28 = vpop.f32.mrb[1].mxu0 }
 0x22d   : > { %v3109_v29 = vadd.f32 %v2478_v28, %v2273_v20  ;;  %v2480_v31 = vpop.f32.mrb[2].mxu0 }
 0x22e   : > { %v2481_v32 = vpop.f32.mrb[3].mxu0 }
 0x22f   : > { %v2485_v33 = vcombine.low %v3108_v27, %v3109_v29  ;;  %2499 = sbr.rel (%p3063_p6) target bundleno = 802 (0x322), region = 48 }
 0x231   : > { %v2492_v50 = vrot.slane %v2485_v33, %v2491_v30 }
 0x233   : > { %v2494_v35 = vadd.f32 %v2492_v50, %v241_v34 }
 0x235   : > { %2495 = vst [vmem:[#allocation2] sm:$0xf] %v2494_v35 }
 0x23c   : > { %v2500_v52 = vld [vmem:[#allocation2] sm:$0xf] }
 0x23d   : > { %v2520_v56 = vadd.f32 %v2518_v54, %v2500_v52 }
 0x23f   : > { %v2521_v59 = vmax.f32 %v2520_v56, 0.0 }
 0x241   : > { %v2529_v61 = vrot.slane %v2521_v59, %v2491_v30 }
 0x243   : > { %v2530_v62 = vcombine.high %v2529_v61, %v2529_v61  ;;  %v2533_v63 = vpack.c.bf16 %v2529_v61, %v2529_v61 }
 0x245   : > { %v2534_v0 = vpack.c.bf16 %v2530_v62, %v2530_v62 }
 0x247   : > { %2702 = vmatprep.mubr.bf16.mxu0 %v2534_v0 }
 0x248   : > { %2703 = vmatmul.mubr.bf16.vlgmr.msra.gmra.mrb[0].mxu0 %v2533_v63 }
 0x31b   : > { %v3102_v1 = vpop.f32.mrb[0].mxu0 }
 0x31c   : > { %v3103_v3 = vpop.f32.mrb[1].mxu0 }
 0x31d   : > { %v3104_v4 = vadd.f32 %v3103_v3, %v3102_v1  ;;  %v3105_v5 = vpop.f32.mrb[2].mxu0 }
 0x31e   : > { %v3106_v6 = vpop.f32.mrb[3].mxu0 }
 0x31f   : > { %v2705_v7 = vadd.f32 %v3104_v4, %v3064_v2 }
 0x321   : > { %2711 = vst.msk [vmem:[#allocation3] sm:$0x3] %vm2710_vm0, %v2705_v7 }
 0x322 PF: > { %p3142_p7 = scmp.eq.s32.totalorder %s3684_s19, 3  ;;  %s3647_s17 = smov [#allocation3]  }
 0x323   : > { %s2719_s20 = sshll.u32 %s3647_s17, 4  ;;  %s2720_s20 = int_to_ptr.vmem [resolvable:$true] %s2719_s20 }
 0x324   : > { %s3606_s21 = scalar_lea.vmem %s2720_s20, 32  ;;  %p3613_p11 = scmp.lt.s32.totalorder %s2720_s20, %s2720_s20 }
 0x325   : > { %p3607_p8 = scmp.ne.s32.totalorder %s2720_s20, %s3606_s21  ;;  %p3614_p12 = scmp.lt.s32.totalorder %s3606_s21, %s3606_s21 }
 0x327   : > { %p3608_p9 = pnand %p3607_p8, %p3142_p7  ;;  %p3615_p13 = por %p3614_p12, %p3613_p11 }
 0x329   : > { %p3609_p10 = pneg %p3608_p9 }
 0x32b   : > { %p3616_p0 = pnand %p3615_p13, %p3609_p10 }
 0x32d   : > { %3619 = shalt.err (!%p3616_p0)
}
 0x32e   : > { %s3620_s24 = scalar_lea.hbm %s4155_s5, 32 }
 0x32f   : > { %p3621_p1 = scmp.ne.s32.totalorder %s4155_s5, %s3620_s24  ;;  %p3626_p4 = scmp.lt.u32.totalorder %s3620_s24, %s4155_s5 }
 0x331   : > { %p3622_p2 = pnand %p3621_p1, %p3142_p7 }
 0x333   : > { %p3623_p3 = pneg %p3622_p2 }
 0x335   : > { %p3628_p5 = pnand %p3626_p4, %p3623_p3 }
 0x337   : > { %3631 = shalt.err (!%p3628_p5)
}
 0x338   : > { %3139 = dma.vmem_to_hbm [thread:$0]  (%p3142_p7), %s2720_s20, 32, %s4155_s5, [#allocation4]  }
 0x339   : > { %3637 = dma.done.wait (%p3142_p7), [#allocation4], 32  }
 0x33a   : > { %3639 = vsyncadd (%p3142_p7), [#allocation4], 4294967264 }
 0x33b PF: > { %s16_s18 = sadd.s32 1, %s3642_s18  }
 0x33c   : > { %p13_p6 = scmp.ge.s32.totalorder %s16_s18, 6  }
 0x33e   :  { %15 = sbr.rel (!%p13_p6) target bundleno = 1 (0x1), region = 78 }
 0x345   :  { %2732 = vsyncpa [#allocation4], 1 }
 0x346   :  { %2734 = vsyncpa [#allocation4 + $0x1], 1 }

</bundles_post_ra>
